<compile_context>
chip_gen: v7x
topology: tpu7x:2x2x1
jax: 0.10.0
libtpu: 0.0.40
codegen_flags: <defaults>
</compile_context>

<pallas_src>
import functools

import jax
import jax.numpy as jnp
from jax.experimental import pallas as pl
from jax.experimental.pallas import tpu as pltpu

LANE = 128


def _round_up(x, m):
    return ((x + m - 1) // m) * m


def _vmem_capacity_bytes():
    """Physical VMEM per core; conservative fallback if the query is unavailable."""
    try:
        return int(getattr(pltpu.get_tpu_info(), "vmem_capacity_bytes", 64 << 20))
    except Exception:
        return 64 << 20  # v7x per-TensorCore VMEM (most restrictive generation)


def _derive_tiling(q_total, halo):
    """Generation-aware spatial tile + scoped-VMEM limit.

    Per-row VMEM bytes (all rows are <=128 lanes wide):
      bf16 image tile, double-buffered : 2 * 256
      f32 staging copy of the tile     : 512
      f32 lane-padded patch scratch    : 512
    Budget ~1/4 of physical VMEM for the streamed tiles, leaving headroom for
    the (double-buffered) resident weights, accumulator and output.
    """
    cap = _vmem_capacity_bytes()
    per_row = 2 * 256 + 512 + 512
    budget_rows = (cap // 4) // per_row - halo
    tile_q = max(8, min((budget_rows // 8) * 8, _round_up(q_total, 8)))
    n_tiles = -(-q_total // tile_q)
    vmem_limit = min(cap * 3 // 4, 100 * 1024 * 1024)
    return tile_q, n_tiles, int(vmem_limit)


# ---------------------------------------------------------------------------
# Fused kernel: in-VMEM im2col -> conv matmul + ReLU -> masked pooled sum
# -> (last step) mean -> projection + ReLU -> selected classification head.
# ---------------------------------------------------------------------------
def _fused_kernel(inv_count, tap_offsets,
                  hidx_ref, x_ref, mask_ref, cw_ref, cb_ref, pw_ref, pb_ref,
                  hw_ref, hb_ref, o_ref, stage_ref, patch_ref, acc_ref):
    del hidx_ref  # consumed only by the index_maps (head selection)
    s = pl.program_id(1)
    tile_q = patch_ref.shape[0]
    c_in = x_ref.shape[-1]

    @pl.when(s == 0)
    def _init():
        acc_ref[...] = jnp.zeros_like(acc_ref)
        # Zero the K-padding lanes once; they are never written afterwards, so
        # the conv contraction over 128 lanes stays numerics-preserving.
        patch_ref[...] = jnp.zeros_like(patch_ref)

    # ---- in-kernel im2col (no 9x patch matrix in HBM) --------------------
    # Widen the bf16 image tile to f32 once; the nine 3x3 taps are then plain
    # static row-slices of the flattened padded image (offset dy*Wp + dx),
    # written into the lane-padded patch scratch.
    stage_ref[...] = x_ref[...].astype(jnp.float32)
    for tap, off in enumerate(tap_offsets):
        patch_ref[:, tap * c_in:(tap + 1) * c_in] = stage_ref[off:off + tile_q, :]

    # Conv as a lane-dense (TILE_Q, 128) x (128, CC_P) MXU matmul.
    conv = jnp.dot(patch_ref[...], cw_ref[...], preferred_element_type=jnp.float32)
    conv = jnp.maximum(conv + cb_ref[...], 0.0)

    # Masked global-average-pool accumulation into a (1, CC_P) scratch.  The
    # mask drops the 2 junk columns per image row (padded-width grid) and any
    # tail-padding rows of the last tile.
    acc_ref[...] += jnp.sum(conv * mask_ref[...], axis=0, keepdims=True)

    @pl.when(s == pl.num_programs(1) - 1)
    def _finalize():
        pooled = acc_ref[...] * inv_count                                # (1, CC_P)
        feats = jnp.dot(pooled, pw_ref[...], preferred_element_type=jnp.float32)
        feats = jnp.maximum(feats + pb_ref[...], 0.0)                    # (1, F_P)
        logits = jnp.dot(feats, hw_ref[...], preferred_element_type=jnp.float32)
        o_ref[...] = logits + hb_ref[...]                                # (1, NC_P)


# ---------------------------------------------------------------------------
# Wrapper-side glue.
# ---------------------------------------------------------------------------
def im2col_3x3(x_nhwc):
    """3x3 / stride-1 / pad-1 im2col -> [B, H*W, 9*C].  Reference path only."""
    B, H, W, C = x_nhwc.shape
    xp = jnp.pad(x_nhwc, ((0, 0), (1, 1), (1, 1), (0, 0)))
    cols = [xp[:, dy:dy + H, dx:dx + W, :] for dy in range(3) for dx in range(3)]
    patches = jnp.stack(cols, axis=-2)              # [B, H, W, 9, C]
    return patches.reshape(B, H * W, 9 * C)


def _pad_params(p):
    """Zero-pad weight dims to 128 lanes (numerics-preserving, tiny arrays)."""
    k, cc = p["conv_w"].shape
    f = p["proj_w"].shape[1]
    nc = p["heads_w"].shape[2]
    k_p, cc_p, f_p, nc_p = (_round_up(d, LANE) for d in (k, cc, f, nc))
    return {
        "conv_w": jnp.pad(p["conv_w"], ((0, k_p - k), (0, cc_p - cc))),
        "conv_b": jnp.pad(p["conv_b"], ((0, 0), (0, cc_p - cc))),
        "proj_w": jnp.pad(p["proj_w"], ((0, cc_p - cc), (0, f_p - f))),
        "proj_b": jnp.pad(p["proj_b"], ((0, 0), (0, f_p - f))),
        "heads_w": jnp.pad(p["heads_w"], ((0, 0), (0, f_p - f), (0, nc_p - nc))),
        "heads_b": jnp.pad(p["heads_b"], ((0, 0), (0, 0), (0, nc_p - nc))),
    }


def init_params(key, c_in, c_conv, feat_dim, num_heads, num_classes):
    k = jax.random.split(key, 6)
    scale = 0.05
    return {
        # conv weight stored in im2col-matmul layout [(ky*kx*ci), c_out]
        "conv_w": scale * jax.random.normal(k[0], (9 * c_in, c_conv), jnp.float32),
        "conv_b": scale * jax.random.normal(k[1], (1, c_conv), jnp.float32),
        "proj_w": scale * jax.random.normal(k[2], (c_conv, feat_dim), jnp.float32),
        "proj_b": scale * jax.random.normal(k[3], (1, feat_dim), jnp.float32),
        # stacked classification heads (Linear stored as [in, out])
        "heads_w": scale * jax.random.normal(k[4], (num_heads, feat_dim, num_classes), jnp.float32),
        "heads_b": scale * jax.random.normal(k[5], (num_heads, 1, num_classes), jnp.float32),
    }


@jax.jit
def multihead_classifier_forward(x_nchw, params, head_idx):
    """features = image_encoder(x); logits = classification_heads[head_idx](features)."""
    B, C, H, W = x_nchw.shape
    Hp, Wp = H + 2, W + 2                  # spatial pad=1 for the 3x3 conv
    Q = H * Wp                             # conv-output positions on the padded-width grid
    NC = params["heads_w"].shape[2]

    halo = 2 * Wp + 2                      # rows of look-ahead needed by the 3x3 taps
    tile_q, n_tiles, vmem_limit = _derive_tiling(Q, halo)

    # --- light preprocessing: ~one pass over the raw image, streamed bf16 ---
    x = jnp.transpose(x_nchw, (0, 2, 3, 1)).astype(jnp.bfloat16)    # NHWC, bf16
    x = jnp.pad(x, ((0, 0), (1, 1), (1, 1), (0, 0)))                # conv padding
    x_flat = x.reshape(B, Hp * Wp, C)                               # flattened padded image
    rows_needed = n_tiles * tile_q + halo
    x_flat = jnp.pad(x_flat, ((0, 0), (0, rows_needed - Hp * Wp), (0, 0)))
    # Halo-duplicated spatial tiles (duplication factor halo/tile_q, a few % at most).
    xt = jnp.stack([x_flat[:, t * tile_q: t * tile_q + tile_q + halo, :]
                    for t in range(n_tiles)], axis=1)               # (B, n_tiles, tile_q+halo, C)

    # Pool-validity mask: drop the 2 junk columns per row and any tail rows.
    q_idx = jnp.arange(n_tiles * tile_q, dtype=jnp.int32)
    valid = ((q_idx % Wp) < W) & (q_idx < Q)
    mask = valid.astype(jnp.float32).reshape(n_tiles, tile_q, 1)

    pp = _pad_params(params)               # lane-dense (...,128) parameters
    K_P, CC_P = pp["conv_w"].shape
    F_P = pp["proj_w"].shape[1]
    NC_P = pp["heads_w"].shape[2]

    tap_offsets = tuple(dy * Wp + dx for dy in range(3) for dx in range(3))
    hidx = jnp.reshape(jnp.asarray(head_idx, jnp.int32), (1,))

    grid_spec = pltpu.PrefetchScalarGridSpec(
        num_scalar_prefetch=1,
        grid=(B, n_tiles),
        in_specs=[
            # halo'd image tile per (batch, spatial-tile) grid point (bf16 stream)
            pl.BlockSpec((pl.Squeezed(), pl.Squeezed(), tile_q + halo, C),
                         lambda b, s, h: (b, s, 0, 0)),
            # pooling validity mask for this spatial tile
            pl.BlockSpec((pl.Squeezed(), tile_q, 1), lambda b, s, h: (s, 0, 0)),
            # encoder weights: resident in VMEM for the whole grid
            # TODO(synk): pipeline_mode=pl.Buffered(1) on these grid-invariant
            # blocks once confirmed on the target jax build.
            pl.BlockSpec((K_P, CC_P), lambda b, s, h: (0, 0)),
            pl.BlockSpec((1, CC_P), lambda b, s, h: (0, 0)),
            pl.BlockSpec((CC_P, F_P), lambda b, s, h: (0, 0)),
            pl.BlockSpec((1, F_P), lambda b, s, h: (0, 0)),
            # classification head selected by the prefetched scalar index
            pl.BlockSpec((pl.Squeezed(), F_P, NC_P), lambda b, s, h: (h[0], 0, 0)),
            pl.BlockSpec((pl.Squeezed(), 1, NC_P), lambda b, s, h: (h[0], 0, 0)),
        ],
        out_specs=pl.BlockSpec((pl.Squeezed(), 1, NC_P), lambda b, s, h: (b, 0, 0)),
        scratch_shapes=[
            pltpu.VMEM((tile_q + halo, C), jnp.float32),   # f32 staging of the image tile
            pltpu.VMEM((tile_q, K_P), jnp.float32),        # K padded to 128 in VMEM only
            pltpu.VMEM((1, CC_P), jnp.float32),            # pooled-sum accumulator
        ],
    )

    logits_pad = pl.pallas_call(
        functools.partial(_fused_kernel, 1.0 / (H * W), tap_offsets),
        out_shape=jax.ShapeDtypeStruct((B, 1, NC_P), jnp.float32),
        grid_spec=grid_spec,
        compiler_params=pltpu.CompilerParams(
            dimension_semantics=("parallel", "arbitrary"),
            vmem_limit_bytes=vmem_limit),
    )(hidx, xt, mask, pp["conv_w"], pp["conv_b"], pp["proj_w"], pp["proj_b"],
      pp["heads_w"], pp["heads_b"])

    return logits_pad.reshape(B, NC_P)[:, :NC]


def _reference_forward(x_nchw, params, head_idx):
    """Pure-JAX reference (same bf16 activation quantization as the kernel)."""
    x_nhwc = jnp.transpose(x_nchw, (0, 2, 3, 1)).astype(jnp.bfloat16).astype(jnp.float32)
    patches = im2col_3x3(x_nhwc)                                    # [B, H*W, 9C]
    conv = jnp.maximum(patches @ params["conv_w"] + params["conv_b"], 0.0)
    pooled = conv.mean(axis=1)                                      # [B, Cc]
    feats = jnp.maximum(pooled @ params["proj_w"] + params["proj_b"], 0.0)
    w = params["heads_w"][head_idx]
    b = params["heads_b"][head_idx]
    return feats @ w + b


if __name__ == "__main__":
    # Small shapes consistent with the module's forward: NCHW image batch.
    B, C_IN, H, W = 2, 4, 16, 16
    C_CONV, FEAT_DIM = 8, 32
    NUM_HEADS, NUM_CLASSES = 3, 10
    HEAD_IDX = 1

    key = jax.random.PRNGKey(0)
    kx, kp = jax.random.split(key)
    x = jax.random.normal(kx, (B, C_IN, H, W), dtype=jnp.float32)
    params = init_params(kp, C_IN, C_CONV, FEAT_DIM, NUM_HEADS, NUM_CLASSES)

    out = multihead_classifier_forward(x, params, HEAD_IDX)
    out = jax.block_until_ready(out)

    ref = _reference_forward(x, params, HEAD_IDX)
    assert out.shape == (B, NUM_CLASSES)
    # Tolerance accounts for bf16 activation streaming + tile-wise pooling order.
    assert jnp.allclose(out, ref, atol=1e-3, rtol=1e-3), float(jnp.max(jnp.abs(out - ref)))

    print("KERNEL_OK")
</pallas_src>

<mosaic_0001>
module attributes {stable_mosaic.version = 11 : i64} {
  func.func @_fused_kernel(%arg0: i32, %arg1: i32, %arg2: memref<1xi32, #tpu.memory_space<smem>>, %arg3: memref<1x1x326x4xbf16, #tpu.memory_space<vmem>>, %arg4: memref<1x288x1xf32, #tpu.memory_space<vmem>>, %arg5: memref<128x128xf32, #tpu.memory_space<vmem>>, %arg6: memref<1x128xf32, #tpu.memory_space<vmem>>, %arg7: memref<128x128xf32, #tpu.memory_space<vmem>>, %arg8: memref<1x128xf32, #tpu.memory_space<vmem>>, %arg9: memref<1x128x128xf32, #tpu.memory_space<vmem>>, %arg10: memref<1x1x128xf32, #tpu.memory_space<vmem>>, %arg11: memref<1x1x128xf32, #tpu.memory_space<vmem>>, %arg12: memref<326x4xf32, #tpu.memory_space<vmem>>, %arg13: memref<288x128xf32, #tpu.memory_space<vmem>>, %arg14: memref<1x128xf32, #tpu.memory_space<vmem>>) attributes {dimension_semantics = [#tpu.dimension_semantics<parallel>, #tpu.dimension_semantics<arbitrary>], iteration_bounds = array<i64: 2, 1>, scalar_prefetch = 1 : i64, scratch_operands = 3 : i64, tpu.core_type = #tpu.core_type<tc>, window_params = [{transform_indices = @transform_0, window_bounds = array<i64: 1, 1, 326, 4>}, {transform_indices = @transform_1, window_bounds = array<i64: 1, 288, 1>}, {pipeline_mode = #tpu.pipeline_mode<synchronous>, transform_indices = @transform_2, window_bounds = array<i64: 128, 128>}, {pipeline_mode = #tpu.pipeline_mode<synchronous>, transform_indices = @transform_3, window_bounds = array<i64: 1, 128>}, {pipeline_mode = #tpu.pipeline_mode<synchronous>, transform_indices = @transform_4, window_bounds = array<i64: 128, 128>}, {pipeline_mode = #tpu.pipeline_mode<synchronous>, transform_indices = @transform_5, window_bounds = array<i64: 1, 128>}, {transform_indices = @transform_6, window_bounds = array<i64: 1, 128, 128>}, {transform_indices = @transform_7, window_bounds = array<i64: 1, 1, 128>}, {transform_indices = @transform_8, window_bounds = array<i64: 1, 1, 128>}]} {
    %c0_i32 = arith.constant 0 : i32
    %0 = arith.cmpi eq, %arg1, %c0_i32 : i32
    %1 = arith.extui %0 : i1 to i32
    %c0_i32_0 = arith.constant 0 : i32
    %2 = arith.cmpi ne, %1, %c0_i32_0 : i32
    scf.if %2 {
      %cst_44 = arith.constant 0.000000e+00 : f32
      %45 = vector.broadcast %cst_44 : f32 to vector<1x128xf32>
      %c0_45 = arith.constant 0 : index
      %c0_46 = arith.constant 0 : index
      %46 = vector.load %arg14[%c0_45, %c0_46] : memref<1x128xf32, #tpu.memory_space<vmem>>, vector<1x128xf32>
      tpu.vector_store %arg14[%c0_45, %c0_46], %45 {strides = array<i32>} : memref<1x128xf32, #tpu.memory_space<vmem>>, vector<1x128xf32>,
      %cst_47 = arith.constant 0.000000e+00 : f32
      %47 = vector.broadcast %cst_47 : f32 to vector<288x128xf32>
      %c0_48 = arith.constant 0 : index
      %c0_49 = arith.constant 0 : index
      %48 = vector.load %arg13[%c0_48, %c0_49] : memref<288x128xf32, #tpu.memory_space<vmem>>, vector<288x128xf32>
      tpu.vector_store %arg13[%c0_48, %c0_49], %47 {strides = array<i32>} : memref<288x128xf32, #tpu.memory_space<vmem>>, vector<288x128xf32>,
    } else {
    }
    %c0 = arith.constant 0 : index
    %c0_1 = arith.constant 0 : index
    %c0_2 = arith.constant 0 : index
    %c0_3 = arith.constant 0 : index
    %3 = vector.load %arg3[%c0, %c0_1, %c0_2, %c0_3] : memref<1x1x326x4xbf16, #tpu.memory_space<vmem>>, vector<1x1x326x4xbf16>
    %4 = vector.shape_cast %3 : vector<1x1x326x4xbf16> to vector<326x4xbf16>
    %5 = arith.extf %4 : vector<326x4xbf16> to vector<326x4xf32>
    %c0_4 = arith.constant 0 : index
    %c0_5 = arith.constant 0 : index
    %6 = vector.load %arg12[%c0_4, %c0_5] : memref<326x4xf32, #tpu.memory_space<vmem>>, vector<326x4xf32>
    tpu.vector_store %arg12[%c0_4, %c0_5], %5 {strides = array<i32>} : memref<326x4xf32, #tpu.memory_space<vmem>>, vector<326x4xf32>,
    %c0_6 = arith.constant 0 : index
    %c0_7 = arith.constant 0 : index
    %7 = vector.load %arg12[%c0_6, %c0_7] : memref<326x4xf32, #tpu.memory_space<vmem>>, vector<288x4xf32>
    %c0_8 = arith.constant 0 : index
    %c0_9 = arith.constant 0 : index
    %8 = vector.load %arg13[%c0_8, %c0_9] : memref<288x128xf32, #tpu.memory_space<vmem>>, vector<288x4xf32>
    tpu.vector_store %arg13[%c0_8, %c0_9], %7 {strides = array<i32>} : memref<288x128xf32, #tpu.memory_space<vmem>>, vector<288x4xf32>,
    %c1 = arith.constant 1 : index
    %c0_10 = arith.constant 0 : index
    %9 = vector.load %arg12[%c1, %c0_10] : memref<326x4xf32, #tpu.memory_space<vmem>>, vector<288x4xf32>
    %c0_11 = arith.constant 0 : index
    %c4 = arith.constant 4 : index
    %10 = vector.load %arg13[%c0_11, %c4] : memref<288x128xf32, #tpu.memory_space<vmem>>, vector<288x4xf32>
    tpu.vector_store %arg13[%c0_11, %c4], %9 {strides = array<i32>} : memref<288x128xf32, #tpu.memory_space<vmem>>, vector<288x4xf32>,
    %c2 = arith.constant 2 : index
    %c0_12 = arith.constant 0 : index
    %11 = vector.load %arg12[%c2, %c0_12] : memref<326x4xf32, #tpu.memory_space<vmem>>, vector<288x4xf32>
    %c0_13 = arith.constant 0 : index
    %c8 = arith.constant 8 : index
    %12 = vector.load %arg13[%c0_13, %c8] : memref<288x128xf32, #tpu.memory_space<vmem>>, vector<288x4xf32>
    tpu.vector_store %arg13[%c0_13, %c8], %11 {strides = array<i32>} : memref<288x128xf32, #tpu.memory_space<vmem>>, vector<288x4xf32>,
    %c18 = arith.constant 18 : index
    %c0_14 = arith.constant 0 : index
    %13 = vector.load %arg12[%c18, %c0_14] : memref<326x4xf32, #tpu.memory_space<vmem>>, vector<288x4xf32>
    %c0_15 = arith.constant 0 : index
    %c12 = arith.constant 12 : index
    %14 = vector.load %arg13[%c0_15, %c12] : memref<288x128xf32, #tpu.memory_space<vmem>>, vector<288x4xf32>
    tpu.vector_store %arg13[%c0_15, %c12], %13 {strides = array<i32>} : memref<288x128xf32, #tpu.memory_space<vmem>>, vector<288x4xf32>,
    %c19 = arith.constant 19 : index
    %c0_16 = arith.constant 0 : index
    %15 = vector.load %arg12[%c19, %c0_16] : memref<326x4xf32, #tpu.memory_space<vmem>>, vector<288x4xf32>
    %c0_17 = arith.constant 0 : index
    %c16 = arith.constant 16 : index
    %16 = vector.load %arg13[%c0_17, %c16] : memref<288x128xf32, #tpu.memory_space<vmem>>, vector<288x4xf32>
    tpu.vector_store %arg13[%c0_17, %c16], %15 {strides = array<i32>} : memref<288x128xf32, #tpu.memory_space<vmem>>, vector<288x4xf32>,
    %c20 = arith.constant 20 : index
    %c0_18 = arith.constant 0 : index
    %17 = vector.load %arg12[%c20, %c0_18] : memref<326x4xf32, #tpu.memory_space<vmem>>, vector<288x4xf32>
    %c0_19 = arith.constant 0 : index
    %c20_20 = arith.constant 20 : index
    %18 = vector.load %arg13[%c0_19, %c20_20] : memref<288x128xf32, #tpu.memory_space<vmem>>, vector<288x4xf32>
    tpu.vector_store %arg13[%c0_19, %c20_20], %17 {strides = array<i32>} : memref<288x128xf32, #tpu.memory_space<vmem>>, vector<288x4xf32>,
    %c36 = arith.constant 36 : index
    %c0_21 = arith.constant 0 : index
    %19 = vector.load %arg12[%c36, %c0_21] : memref<326x4xf32, #tpu.memory_space<vmem>>, vector<288x4xf32>
    %c0_22 = arith.constant 0 : index
    %c24 = arith.constant 24 : index
    %20 = vector.load %arg13[%c0_22, %c24] : memref<288x128xf32, #tpu.memory_space<vmem>>, vector<288x4xf32>
    tpu.vector_store %arg13[%c0_22, %c24], %19 {strides = array<i32>} : memref<288x128xf32, #tpu.memory_space<vmem>>, vector<288x4xf32>,
    %c37 = arith.constant 37 : index
    %c0_23 = arith.constant 0 : index
    %21 = vector.load %arg12[%c37, %c0_23] : memref<326x4xf32, #tpu.memory_space<vmem>>, vector<288x4xf32>
    %c0_24 = arith.constant 0 : index
    %c28 = arith.constant 28 : index
    %22 = vector.load %arg13[%c0_24, %c28] : memref<288x128xf32, #tpu.memory_space<vmem>>, vector<288x4xf32>
    tpu.vector_store %arg13[%c0_24, %c28], %21 {strides = array<i32>} : memref<288x128xf32, #tpu.memory_space<vmem>>, vector<288x4xf32>,
    %c38 = arith.constant 38 : index
    %c0_25 = arith.constant 0 : index
    %23 = vector.load %arg12[%c38, %c0_25] : memref<326x4xf32, #tpu.memory_space<vmem>>, vector<288x4xf32>
    %c0_26 = arith.constant 0 : index
    %c32 = arith.constant 32 : index
    %24 = vector.load %arg13[%c0_26, %c32] : memref<288x128xf32, #tpu.memory_space<vmem>>, vector<288x4xf32>
    tpu.vector_store %arg13[%c0_26, %c32], %23 {strides = array<i32>} : memref<288x128xf32, #tpu.memory_space<vmem>>, vector<288x4xf32>,
    %c0_27 = arith.constant 0 : index
    %c0_28 = arith.constant 0 : index
    %25 = vector.load %arg13[%c0_27, %c0_28] : memref<288x128xf32, #tpu.memory_space<vmem>>, vector<288x128xf32>
    %c0_29 = arith.constant 0 : index
    %c0_30 = arith.constant 0 : index
    %26 = vector.load %arg5[%c0_29, %c0_30] : memref<128x128xf32, #tpu.memory_space<vmem>>, vector<128x128xf32>
    %cst = arith.constant dense<0.000000e+00> : vector<288x128xf32>
    %27 = tpu.matmul %25, %26, %cst {dimension_numbers = #tpu.dot_dimension_numbers<[1], [0], [0], [1], [0, 0, 1, 1], [], []>} : vector<288x128xf32>, vector<128x128xf32>, vector<288x128xf32> -> vector<288x128xf32>
    %c0_31 = arith.constant 0 : index
    %c0_32 = arith.constant 0 : index
    %28 = vector.load %arg6[%c0_31, %c0_32] : memref<1x128xf32, #tpu.memory_space<vmem>>, vector<1x128xf32>
    %29 = vector.broadcast %28 : vector<1x128xf32> to vector<288x128xf32>
    %30 = arith.addf %27, %29 : vector<288x128xf32>
    %cst_33 = arith.constant 0.000000e+00 : f32
    %31 = vector.broadcast %cst_33 : f32 to vector<288x128xf32>
    %32 = arith.maximumf %30, %31 : vector<288x128xf32>
    %c0_34 = arith.constant 0 : index
    %c0_35 = arith.constant 0 : index
    %33 = vector.load %arg14[%c0_34, %c0_35] : memref<1x128xf32, #tpu.memory_space<vmem>>, vector<1x128xf32>
    %c0_36 = arith.constant 0 : index
    %c0_37 = arith.constant 0 : index
    %c0_38 = arith.constant 0 : index
    %34 = vector.load %arg4[%c0_36, %c0_37, %c0_38] : memref<1x288x1xf32, #tpu.memory_space<vmem>>, vector<1x288x1xf32>
    %35 = vector.shape_cast %34 : vector<1x288x1xf32> to vector<288x1xf32>
    %36 = vector.broadcast %35 : vector<288x1xf32> to vector<288x128xf32>
    %37 = arith.mulf %32, %36 : vector<288x128xf32>
    %cst_39 = arith.constant dense<0.000000e+00> : vector<128xf32>
    %38 = vector.multi_reduction <add>, %37, %cst_39 [0] : vector<288x128xf32> to vector<128xf32>
    %39 = vector.shape_cast %38 : vector<128xf32> to vector<1x128xf32>
    %40 = arith.addf %33, %39 : vector<1x128xf32>
    %c0_40 = arith.constant 0 : index
    %c0_41 = arith.constant 0 : index
    %41 = vector.load %arg14[%c0_40, %c0_41] : memref<1x128xf32, #tpu.memory_space<vmem>>, vector<1x128xf32>
    tpu.vector_store %arg14[%c0_40, %c0_41], %40 {strides = array<i32>} : memref<1x128xf32, #tpu.memory_space<vmem>>, vector<1x128xf32>,
    %c0_i32_42 = arith.constant 0 : i32
    %42 = arith.cmpi eq, %arg1, %c0_i32_42 : i32
    %43 = arith.extui %42 : i1 to i32
    %c0_i32_43 = arith.constant 0 : i32
    %44 = arith.cmpi ne, %43, %c0_i32_43 : i32
    scf.if %44 {
      %c0_44 = arith.constant 0 : index
      %c0_45 = arith.constant 0 : index
      %45 = vector.load %arg14[%c0_44, %c0_45] : memref<1x128xf32, #tpu.memory_space<vmem>>, vector<1x128xf32>
      %cst_46 = arith.constant 3.906250e-03 : f32
      %46 = vector.broadcast %cst_46 : f32 to vector<1x128xf32>
      %47 = arith.mulf %45, %46 : vector<1x128xf32>
      %c0_47 = arith.constant 0 : index
      %c0_48 = arith.constant 0 : index
      %48 = vector.load %arg7[%c0_47, %c0_48] : memref<128x128xf32, #tpu.memory_space<vmem>>, vector<128x128xf32>
      %cst_49 = arith.constant dense<0.000000e+00> : vector<1x128xf32>
      %49 = tpu.matmul %47, %48, %cst_49 {dimension_numbers = #tpu.dot_dimension_numbers<[1], [0], [0], [1], [0, 0, 1, 1], [], []>} : vector<1x128xf32>, vector<128x128xf32>, vector<1x128xf32> -> vector<1x128xf32>
      %c0_50 = arith.constant 0 : index
      %c0_51 = arith.constant 0 : index
      %50 = vector.load %arg8[%c0_50, %c0_51] : memref<1x128xf32, #tpu.memory_space<vmem>>, vector<1x128xf32>
      %51 = arith.addf %49, %50 : vector<1x128xf32>
      %cst_52 = arith.constant 0.000000e+00 : f32
      %52 = vector.broadcast %cst_52 : f32 to vector<1x128xf32>
      %53 = arith.maximumf %51, %52 : vector<1x128xf32>
      %c0_53 = arith.constant 0 : index
      %c0_54 = arith.constant 0 : index
      %c0_55 = arith.constant 0 : index
      %54 = vector.load %arg9[%c0_53, %c0_54, %c0_55] : memref<1x128x128xf32, #tpu.memory_space<vmem>>, vector<1x128x128xf32>
      %55 = vector.shape_cast %54 : vector<1x128x128xf32> to vector<128x128xf32>
      %cst_56 = arith.constant dense<0.000000e+00> : vector<1x128xf32>
      %56 = tpu.matmul %53, %55, %cst_56 {dimension_numbers = #tpu.dot_dimension_numbers<[1], [0], [0], [1], [0, 0, 1, 1], [], []>} : vector<1x128xf32>, vector<128x128xf32>, vector<1x128xf32> -> vector<1x128xf32>
      %c0_57 = arith.constant 0 : index
      %c0_58 = arith.constant 0 : index
      %c0_59 = arith.constant 0 : index
      %57 = vector.load %arg10[%c0_57, %c0_58, %c0_59] : memref<1x1x128xf32, #tpu.memory_space<vmem>>, vector<1x1x128xf32>
      %58 = vector.shape_cast %57 : vector<1x1x128xf32> to vector<1x128xf32>
      %59 = arith.addf %56, %58 : vector<1x128xf32>
      %c0_60 = arith.constant 0 : index
      %c0_61 = arith.constant 0 : index
      %c0_62 = arith.constant 0 : index
      %60 = vector.load %arg11[%c0_60, %c0_61, %c0_62] : memref<1x1x128xf32, #tpu.memory_space<vmem>>, vector<1x1x128xf32>
      %61 = vector.shape_cast %60 : vector<1x1x128xf32> to vector<1x128xf32>
      %62 = vector.shape_cast %59 : vector<1x128xf32> to vector<1x1x128xf32>
      tpu.vector_store %arg11[%c0_60, %c0_61, %c0_62], %62 {strides = array<i32>} : memref<1x1x128xf32, #tpu.memory_space<vmem>>, vector<1x1x128xf32>,
    } else {
    }
    return
  }
  func.func @transform_0(%arg0: i32, %arg1: i32, %arg2: memref<1xi32, #tpu.memory_space<smem>>) -> (i32, i32, i32, i32) {
    %c0_i32 = arith.constant 0 : i32
    %c0_i32_0 = arith.constant 0 : i32
    %c0_i32_1 = arith.constant 0 : i32
    return %arg0, %arg1, %c0_i32, %c0_i32_0 : i32, i32, i32, i32
  }
  func.func @transform_1(%arg0: i32, %arg1: i32, %arg2: memref<1xi32, #tpu.memory_space<smem>>) -> (i32, i32, i32) {
    %c0_i32 = arith.constant 0 : i32
    %c0_i32_0 = arith.constant 0 : i32
    %c0_i32_1 = arith.constant 0 : i32
    return %arg1, %c0_i32, %c0_i32_0 : i32, i32, i32
  }
  func.func @transform_2(%arg0: i32, %arg1: i32, %arg2: memref<1xi32, #tpu.memory_space<smem>>) -> (i32, i32) {
    %c0_i32 = arith.constant 0 : i32
    %c0_i32_0 = arith.constant 0 : i32
    %c0_i32_1 = arith.constant 0 : i32
    return %c0_i32, %c0_i32_0 : i32, i32
  }
  func.func @transform_3(%arg0: i32, %arg1: i32, %arg2: memref<1xi32, #tpu.memory_space<smem>>) -> (i32, i32) {
    %c0_i32 = arith.constant 0 : i32
    %c0_i32_0 = arith.constant 0 : i32
    %c0_i32_1 = arith.constant 0 : i32
    return %c0_i32, %c0_i32_0 : i32, i32
  }
  func.func @transform_4(%arg0: i32, %arg1: i32, %arg2: memref<1xi32, #tpu.memory_space<smem>>) -> (i32, i32) {
    %c0_i32 = arith.constant 0 : i32
    %c0_i32_0 = arith.constant 0 : i32
    %c0_i32_1 = arith.constant 0 : i32
    return %c0_i32, %c0_i32_0 : i32, i32
  }
  func.func @transform_5(%arg0: i32, %arg1: i32, %arg2: memref<1xi32, #tpu.memory_space<smem>>) -> (i32, i32) {
    %c0_i32 = arith.constant 0 : i32
    %c0_i32_0 = arith.constant 0 : i32
    %c0_i32_1 = arith.constant 0 : i32
    return %c0_i32, %c0_i32_0 : i32, i32
  }
  func.func @transform_6(%arg0: i32, %arg1: i32, %arg2: memref<1xi32, #tpu.memory_space<smem>>) -> (i32, i32, i32) {
    %c0 = arith.constant 0 : index
    %0 = memref.load %arg2[%c0] : memref<1xi32, #tpu.memory_space<smem>>
    %c0_i32 = arith.constant 0 : i32
    %c0_i32_0 = arith.constant 0 : i32
    %c0_i32_1 = arith.constant 0 : i32
    return %0, %c0_i32, %c0_i32_0 : i32, i32, i32
  }
  func.func @transform_7(%arg0: i32, %arg1: i32, %arg2: memref<1xi32, #tpu.memory_space<smem>>) -> (i32, i32, i32) {
    %c0 = arith.constant 0 : index
    %0 = memref.load %arg2[%c0] : memref<1xi32, #tpu.memory_space<smem>>
    %c0_i32 = arith.constant 0 : i32
    %c0_i32_0 = arith.constant 0 : i32
    %c0_i32_1 = arith.constant 0 : i32
    return %0, %c0_i32, %c0_i32_0 : i32, i32, i32
  }
  func.func @transform_8(%arg0: i32, %arg1: i32, %arg2: memref<1xi32, #tpu.memory_space<smem>>) -> (i32, i32, i32) {
    %c0_i32 = arith.constant 0 : i32
    %c0_i32_0 = arith.constant 0 : i32
    %c0_i32_1 = arith.constant 0 : i32
    return %arg0, %c0_i32, %c0_i32_0 : i32, i32, i32
  }
}

</mosaic_0001>

<bundles_post_ra>
// kernel: multihead_classifier_forward.1
= control target key start
LH: loop header
LB: loop body
LE: loop exit
PB: predicated region body
PF: predicated region fallthrough
CT: control target
= control target key end

     0   :  { %s5269_s0 = inlined_call_operand.<no memory space> [shape: s32[1], index: 0, kind: input, shape index: {}]   ;;  %s5270_s1 = inlined_call_operand.vmem [shape: bf16[2,1,326,4], index: 1, kind: input, shape index: {}]   ;;  %s5271_s2 = inlined_call_operand.vmem [shape: f32[1,288,1], index: 2, kind: input, shape index: {}]   ;;  %s5272_s3 = inlined_call_operand.vmem [shape: f32[128,128], index: 3, kind: input, shape index: {}]   ;;  %s5273_s4 = inlined_call_operand.vmem [shape: f32[1,128], index: 4, kind: input, shape index: {}]   ;;  %s5274_s5 = inlined_call_operand.vmem [shape: f32[128,128], index: 5, kind: input, shape index: {}]   ;;  %s5275_s6 = inlined_call_operand.vmem [shape: f32[1,128], index: 6, kind: input, shape index: {}]   ;;  %s5276_s7 = inlined_call_operand.vmem [shape: f32[3,128,128], index: 7, kind: input, shape index: {}]   ;;  %s5277_s8 = inlined_call_operand.vmem [shape: f32[3,1,128], index: 8, kind: input, shape index: {}]   ;;  %s5278_s9 = inlined_call_operand.hbm [shape: f32[2,1,128], index: 9, kind: output, shape index: {}]  }
   0x1   :  { %14 = sst [smem:[#allocation6]] %s5269_s0 }
   0x2   :  { %15 = vsyncpa [#allocation8], 0 }
   0x3   :  { %17 = vsyncpa [#allocation8 + $0x1], 0  ;;  %s3968_s11 = smov 0   ;;  %s3970_s12 = smov 0  }
   0x4   :  { %s3972_s13 = smov 0   ;;  %s3974_s14 = smov 0  }
   0x5   :  { %s3976_s15 = smov 0   ;;  %s3978_s16 = smov 0  }
   0x6 LB: > { %s3317_s0 = sadd.s32 4294967295, %s3900_s16   ;;  %s3318_s17 = sadd.s32 4294967294, %s3900_s16   ;;  %s3900_s16 = sphi %s3978_s16, %s23_s16   ;;  %s3896_s15 = sphi %s3976_s15, %s5300_s15   ;;  %s3892_s14 = sphi %s3974_s14, %s5299_s14   ;;  %s3888_s13 = sphi %s3972_s13, %s5298_s13   ;;  %s3884_s12 = sphi %s3970_s12, %s5297_s12   ;;  %s3880_s11 = sphi %s3968_s11, %s5296_s11  }
   0x7   : > { %s35_s18 = sadd.s32 1, %s3896_s15  ;;  %s236_s19 = sadd.s32 1, %s3888_s13 }
   0x8   : > { %p37_p0 = scmp.ge.s32.totalorder %s35_s18, 2  ;;  %p246_p1 = scmp.ne.s32.totalorder %s3888_s13, %s3884_s12 }
   0x9   : > { %p247_p2 = scmp.eq.s32.totalorder %s3317_s0, 1  ;;  %p252_p3 = scmp.ne.s32.totalorder %s3884_s12, %s3880_s11 }
   0xa   : > { %s5302_s18 = smov (%p37_p0, %s35_s18), 0  ;;  %p253_p5 = scmp.eq.s32.totalorder %s3318_s17, 1 }
   0xb   : > { %p4008_p4 = por %p247_p2, %p246_p1  ;;  %s233_s21 = ssub.s32 %s3896_s15, %s5302_s18 }
   0xc   : > { %p3322_p6 = scmp.ge.s32.totalorder %s3900_s16, 1  ;;  %p234_p7 = scmp.eq.s32.totalorder %s233_s21, 0 }
   0xd   : > { %p4015_p8 = por %p253_p5, %p252_p3  ;;  %p321_p9 = scmp.lt.s32.totalorder %s3900_s16, 3 }
   0xe   : > { %s4021_s23 = scalar_select %p234_p7, %s3888_s13, %s236_s19  }
   0xf   : > { %p322_p10 = pnand %p3322_p6, %p321_p9 }
  0x10   : > { %p373_p11 = scmp.lt.s32.totalorder (!%p322_p10), %s3892_s14, 1  ;;  %v3902_v0 = vmov (!%p322_p10), 0.0   ;;  %vm522_vm0 = vcmask (!%p322_p10), 31744   ;;  %s5283_s29 = smov (!%p322_p10), 8   ;;  %v2409_v37 = vld [vmem:[%s5272_s3] sm:$0xff] (!%p322_p10)  ;;  %v2410_v38 = vld [vmem:[%s5272_s3 + $0x8] sm:$0xff] (!%p322_p10) }
  0x11   : > { %325 = sbr.rel (%p322_p10) target bundleno = 1432 (0x598), region = 52  ;;  %404 = vst [vmem:[#allocation3] sm:$0xff] (!%p322_p10), %v3902_v0  ;;  %403 = vst [vmem:[#allocation4] sm:$0x1] (!%p322_p10), %v3902_v0  ;;  %s3904_s30 = smov (!%p322_p10), 4   ;;  %v3672_v39 = vpack.c.bf16 (!%p322_p10), %v2410_v38, %v2409_v37  ;;  %v2411_v40 = vld [vmem:[%s5272_s3 + $0x10] sm:$0xff] (!%p322_p10) }
  0x12   : > { %405 = vst [vmem:[#allocation3 + $0x8] sm:$0xff] (!%p322_p10), %v3902_v0  ;;  %406 = vst [vmem:[#allocation3 + $0x10] sm:$0xff] (!%p322_p10), %v3902_v0  ;;  %s5281_s10 = smov (!%p322_p10), 12   ;;  %s5279_s0 = smov (!%p322_p10), 16   ;;  %v2412_v41 = vld [vmem:[%s5272_s3 + $0x18] sm:$0xff] (!%p322_p10)  ;;  %v2413_v45 = vld [vmem:[%s5272_s3 + $0x20] sm:$0xff] (!%p322_p10) }
  0x13   : > { %407 = vst [vmem:[#allocation3 + $0x18] sm:$0xff] (!%p322_p10), %v3902_v0  ;;  %408 = vst [vmem:[#allocation3 + $0x20] sm:$0xff] (!%p322_p10), %v3902_v0  ;;  %s5287_s17 = smov (!%p322_p10), 20   ;;  %v3676_v44 = vpack.c.bf16 (!%p322_p10), %v2412_v41, %v2411_v40  ;;  %3673 = vmatprep.subr.bf16.mxu0 (!%p322_p10), %v3672_v39  ;;  %v2414_v46 = vld [vmem:[%s5272_s3 + $0x28] sm:$0xff] (!%p322_p10)  ;;  %s5285_s26 = smov (!%p322_p10), 24   ;;  %v2415_v51 = vld [vmem:[%s5272_s3 + $0x30] sm:$0xff] (!%p322_p10) }
  0x14   : > { %409 = vst [vmem:[#allocation3 + $0x28] sm:$0xff] (!%p322_p10), %v3902_v0  ;;  %410 = vst [vmem:[#allocation3 + $0x30] sm:$0xff] (!%p322_p10), %v3902_v0  ;;  %3675 = vmatpush3.bf16.msra.mxu0 (!%p322_p10), %v3672_v39  ;;  %v3680_v50 = vpack.c.bf16 (!%p322_p10), %v2414_v46, %v2413_v45  ;;  %v2416_v52 = vld [vmem:[%s5272_s3 + $0x38] sm:$0xff] (!%p322_p10)  ;;  %s5291_s21 = smov (!%p322_p10), 12   ;;  %v2417_v57 = vld [vmem:[%s5272_s3 + $0x40] sm:$0xff] (!%p322_p10)  ;;  %s3909_s27 = smov (!%p322_p10), 28  }
  0x15   : > { %411 = vst [vmem:[#allocation3 + $0x38] sm:$0xff] (!%p322_p10), %v3902_v0  ;;  %412 = vst [vmem:[#allocation3 + $0x40] sm:$0xff] (!%p322_p10), %v3902_v0  ;;  %3677 = vmatprep.subr.bf16.mxu0 (!%p322_p10), %v3676_v44  ;;  %v3684_v55 = vpack.c.bf16 (!%p322_p10), %v2416_v52, %v2415_v51  ;;  %v2418_v58 = vld [vmem:[%s5272_s3 + $0x48] sm:$0xff] (!%p322_p10)  ;;  %v2419_v62 = vld [vmem:[%s5272_s3 + $0x50] sm:$0xff] (!%p322_p10)  ;;  %s5295_s19 = smov (!%p322_p10), 24   ;;  %vm817_vm1 = vcmask (!%p322_p10), 64544  }
  0x16   : > { %413 = vst [vmem:[#allocation3 + $0x48] sm:$0xff] (!%p322_p10), %v3902_v0  ;;  %414 = vst [vmem:[#allocation3 + $0x50] sm:$0xff] (!%p322_p10), %v3902_v0  ;;  %v3688_v61 = vpack.c.bf16 (!%p322_p10), %v2418_v58, %v2417_v57  ;;  %v2420_v63 = vld [vmem:[%s5272_s3 + $0x58] sm:$0xff] (!%p322_p10)  ;;  %vm1034_vm2 = vcmask (!%p322_p10), 97344   ;;  %vm1251_vm3 = vcmask (!%p322_p10), 130144   ;;  %vm1468_vm4 = vcmask (!%p322_p10), 162944  }
  0x17   : > { %415 = vst [vmem:[#allocation3 + $0x58] sm:$0xff] (!%p322_p10), %v3902_v0  ;;  %416 = vst [vmem:[#allocation3 + $0x60] sm:$0xff] (!%p322_p10), %v3902_v0  ;;  %vm1685_vm5 = vcmask (!%p322_p10), 195744   ;;  %vm1902_vm6 = vcmask (!%p322_p10), 228544   ;;  %vm2119_vm7 = vcmask (!%p322_p10), 261344   ;;  %vm2336_vm8 = vcmask (!%p322_p10), 294144  }
  0x18   : > { %s4025_s24 = scalar_select %p373_p11, %s3892_s14, 1  ;;  %417 = vst [vmem:[#allocation3 + $0x68] sm:$0xff] %v3902_v0  ;;  %418 = vst [vmem:[#allocation3 + $0x70] sm:$0xff] %v3902_v0  ;;  %3679 = vmatpush3.bf16.msra.mxu0 %v3676_v44  ;;  %vm563_vm9 = vcmask 29696   ;;  %vm3913_vm10 = vmmov 0  }
  0x19   : > { %419 = vst [vmem:[#allocation3 + $0x78] sm:$0xff] %v3902_v0  ;;  %420 = vst [vmem:[#allocation3 + $0x80] sm:$0xff] %v3902_v0  ;;  %3681 = vmatprep.subr.bf16.mxu0 %v3680_v50  ;;  %3634 = vmatprep.mubr.msk.f32.mxu1 %vm3913_vm10, %v3902_v0 }
  0x1a   : > { %421 = vst [vmem:[#allocation3 + $0x88] sm:$0xff] %v3902_v0  ;;  %422 = vst [vmem:[#allocation3 + $0x90] sm:$0xff] %v3902_v0  ;;  %s3752_s25 = smul.u32 164, %s4025_s24  ;;  %s3910_s24 = smov 32  }
  0x1b   : > { %423 = vst [vmem:[#allocation3 + $0x98] sm:$0xff] %v3902_v0  ;;  %424 = vst [vmem:[#allocation3 + $0xa0] sm:$0xff] %v3902_v0 }
  0x1c   : > { %425 = vst [vmem:[#allocation3 + $0xa8] sm:$0xff] %v3902_v0  ;;  %426 = vst [vmem:[#allocation3 + $0xb0] sm:$0xff] %v3902_v0  ;;  %s4068_s28 = scalar_lea.vmem %s5270_s1, %s3752_s25  ;;  %3683 = vmatpush3.bf16.msra.mxu0 %v3680_v50 }
  0x1d   : > { %427 = vst [vmem:[#allocation3 + $0xb8] sm:$0xff] %v3902_v0  ;;  %428 = vst [vmem:[#allocation3 + $0xc0] sm:$0xff] %v3902_v0  ;;  %v3332_v1 = vld [vmem:[%s4068_s28] sm:$0xff]   ;;  %v3411_v2 = vld [vmem:[%s4068_s28 + $0x8] sm:$0xff]   ;;  %3685 = vmatprep.subr.bf16.mxu0 %v3684_v55 }
  0x1e   : > { %429 = vst [vmem:[#allocation3 + $0xc8] sm:$0xff] %v3902_v0  ;;  %430 = vst [vmem:[#allocation3 + $0xd0] sm:$0xff] %v3902_v0  ;;  %v3412_v3 = vld [vmem:[%s4068_s28 + $0x10] sm:$0xff]   ;;  %v3333_v4 = vunpack.c.l.bf16 %v3332_v1  ;;  %v3334_v5 = vunpack.c.h.bf16 %v3332_v1  ;;  %v3337_v6 = vunpack.c.l.bf16 %v3411_v2  ;;  %v3338_v7 = vunpack.c.h.bf16 %v3411_v2  ;;  %v3413_v8 = vld [vmem:[%s4068_s28 + $0x18] sm:$0xff]  }
  0x1f   : > { %431 = vst [vmem:[#allocation3 + $0xd8] sm:$0xff] %v3902_v0  ;;  %432 = vst [vmem:[#allocation3 + $0xe0] sm:$0xff] %v3902_v0  ;;  %v3414_v9 = vld [vmem:[%s4068_s28 + $0x20] sm:$0xff]   ;;  %v3415_v10 = vld [vmem:[%s4068_s28 + $0x28] sm:$0xff]   ;;  %v3341_v11 = vunpack.c.l.bf16 %v3412_v3  ;;  %v3342_v12 = vunpack.c.h.bf16 %v3412_v3  ;;  %v3345_v13 = vunpack.c.l.bf16 %v3413_v8  ;;  %v3346_v14 = vunpack.c.h.bf16 %v3413_v8 }
  0x20   : > { %433 = vst [vmem:[#allocation3 + $0xe8] sm:$0xff] %v3902_v0  ;;  %434 = vst [vmem:[#allocation3 + $0xf0] sm:$0xff] %v3902_v0  ;;  %v3416_v15 = vld [vmem:[%s4068_s28 + $0x30] sm:$0xff]   ;;  %v3349_v16 = vunpack.c.l.bf16 %v3414_v9  ;;  %v3350_v17 = vunpack.c.h.bf16 %v3414_v9  ;;  %v3353_v18 = vunpack.c.l.bf16 %v3415_v10  ;;  %v3354_v19 = vunpack.c.h.bf16 %v3415_v10  ;;  %v4128_v47 = vld [vmem:[%s4068_s28 + $0x38] sm:$0xff]   ;;  %3687 = vmatpush3.bf16.msra.mxu0 %v3684_v55 }
  0x21   : > { %435 = vst [vmem:[#allocation3 + $0xf8] sm:$0xff] %v3902_v0  ;;  %436 = vst [vmem:[#allocation3 + $0x100] sm:$0xff] %v3902_v0  ;;  %v3357_v20 = vunpack.c.l.bf16 %v3416_v15  ;;  %v3358_v32 = vunpack.c.h.bf16 %v3416_v15  ;;  %v3361_v48 = vunpack.c.l.bf16 %v4128_v47  ;;  %3689 = vmatprep.subr.bf16.mxu0 %v3688_v61  ;;  %v3692_v3 = vpack.c.bf16 %v2420_v63, %v2419_v62  ;;  %v2423_v10 = vld [vmem:[%s5272_s3 + $0x70] sm:$0xff] }
  0x22   : > { %437 = vst [vmem:[#allocation3 + $0x108] sm:$0xff] %v3902_v0  ;;  %438 = vst [vmem:[#allocation3 + $0x110] sm:$0xff] %v3902_v0 }
  0x23   : > { %439 = vst [vmem:[#allocation3 + $0x118] sm:$0xff] %v3902_v0  ;;  %523 = vst.msk [vmem:[#allocation2] sm:$0xff] %vm522_vm0, %v3333_v4 }
  0x24   : > { %524 = vst.msk [vmem:[#allocation2 + $0x8] sm:$0xff] %vm522_vm0, %v3334_v5  ;;  %525 = vst.msk [vmem:[#allocation2 + $0x10] sm:$0xff] %vm522_vm0, %v3337_v6  ;;  %v2421_v5 = vld [vmem:[%s5272_s3 + $0x60] sm:$0xff]  ;;  %v2422_v6 = vld [vmem:[%s5272_s3 + $0x68] sm:$0xff]  ;;  %3691 = vmatpush3.bf16.msra.mxu0 %v3688_v61 }
  0x25   : > { %526 = vst.msk [vmem:[#allocation2 + $0x18] sm:$0xff] %vm522_vm0, %v3338_v7  ;;  %527 = vst.msk [vmem:[#allocation2 + $0x20] sm:$0xff] %vm522_vm0, %v3341_v11  ;;  %3693 = vmatprep.subr.bf16.mxu0 %v3692_v3  ;;  %v3696_v9 = vpack.c.bf16 %v2422_v6, %v2421_v5  ;;  %v2424_v11 = vld [vmem:[%s5272_s3 + $0x78] sm:$0xff] }
  0x26   : > { %528 = vst.msk [vmem:[#allocation2 + $0x28] sm:$0xff] %vm522_vm0, %v3342_v12  ;;  %529 = vst.msk [vmem:[#allocation2 + $0x30] sm:$0xff] %vm522_vm0, %v3345_v13  ;;  %v3700_v13 = vpack.c.bf16 %v2424_v11, %v2423_v10 }
  0x27   : > { %530 = vst.msk [vmem:[#allocation2 + $0x38] sm:$0xff] %vm522_vm0, %v3346_v14  ;;  %531 = vst.msk [vmem:[#allocation2 + $0x40] sm:$0xff] %vm522_vm0, %v3349_v16  ;;  %v3362_v14 = vunpack.c.h.bf16 %v4128_v47 }
  0x28   : > { %532 = vst.msk [vmem:[#allocation2 + $0x48] sm:$0xff] %vm522_vm0, %v3350_v17  ;;  %533 = vst.msk [vmem:[#allocation2 + $0x50] sm:$0xff] %vm522_vm0, %v3353_v18  ;;  %3695 = vmatpush3.bf16.msra.mxu0 %v3692_v3  ;;  %v3418_v17 = vld [vmem:[%s4068_s28 + $0x40] sm:$0xff]  }
  0x29   : > { %534 = vst.msk [vmem:[#allocation2 + $0x58] sm:$0xff] %vm522_vm0, %v3354_v19  ;;  %535 = vst.msk [vmem:[#allocation2 + $0x60] sm:$0xff] %vm522_vm0, %v3357_v20  ;;  %3697 = vmatprep.subr.bf16.mxu0 %v3696_v9  ;;  %v3365_v18 = vunpack.c.l.bf16 %v3418_v17 }
  0x2a   : > { %v565_v31 = vld [vmem:[#allocation2] sm:$0xff]  ;;  %536 = vst.msk [vmem:[#allocation2 + $0x68] sm:$0xff] %vm522_vm0, %v3358_v32  ;;  %537 = vst.msk [vmem:[#allocation2 + $0x70] sm:$0xff] %vm522_vm0, %v3361_v48 }
  0x2b   : > { %v854_v21 = vld [vmem:[#allocation2 + $0x2] sm:$0xff]  ;;  %v855_v23 = vld [vmem:[#allocation2 + $0xa] sm:$0xff]  ;;  %601 = vst.msk [vmem:[#allocation3] sm:$0xff] %vm522_vm0, %v565_v31  ;;  %538 = vst.msk [vmem:[#allocation2 + $0x78] sm:$0xff] %vm522_vm0, %v3362_v14  ;;  %v3366_v31 = vunpack.c.h.bf16 %v3418_v17 }
  0x2c   : > { %v637_v22 = vld [vmem:[#allocation2 + $0x1] sm:$0xff]  ;;  %926 = vrot.lane.b32.xlu1 %v854_v21, %s5283_s29  ;;  %v638_v24 = vld [vmem:[#allocation2 + $0x9] sm:$0xff]  ;;  %v1071_v26 = vld [vmem:[#allocation2 + $0x12] sm:$0xff]  ;;  %3699 = vmatpush3.bf16.msra.mxu0 %v3696_v9  ;;  %539 = vst.msk [vmem:[#allocation2 + $0x80] sm:$0xff] %vm522_vm0, %v3365_v18 }
  0x2d   : > { %709 = vrot.lane.b32.xlu0 %v637_v22, %s3904_s30  ;;  %v1072_v25 = vld [vmem:[#allocation2 + $0x1a] sm:$0xff]  ;;  %v639_v27 = vld [vmem:[#allocation2 + $0x11] sm:$0xff]  ;;  %v566_v33 = vld [vmem:[#allocation2 + $0x8] sm:$0xff]  ;;  %3701 = vmatprep.subr.bf16.mxu0 %v3700_v13  ;;  %540 = vst.msk [vmem:[#allocation2 + $0x88] sm:$0xff] %vm522_vm0, %v3366_v31 }
  0x2e   : > { %v1288_v28 = vld [vmem:[#allocation2 + $0x13] sm:$0xff]  ;;  %v1289_v30 = vld [vmem:[#allocation2 + $0x1b] sm:$0xff]  ;;  %602 = vst.msk [vmem:[#allocation3 + $0x8] sm:$0xff] %vm522_vm0, %v566_v33  ;;  %v4119_v42 = vld [vmem:[#allocation2 + $0x24] sm:$0xff] }
  0x2f   : > { %v1505_v29 = vld [vmem:[#allocation2 + $0x14] sm:$0xff]  ;;  %v1506_v43 = vld [vmem:[#allocation2 + $0x1c] sm:$0xff]  ;;  %v1939_v53 = vld [vmem:[#allocation2 + $0x25] sm:$0xff] }
  0x30   : > { %928 = vrot.lane.b32.xlu1 %v855_v23, %s5283_s29  ;;  %v567_v34 = vld [vmem:[#allocation2 + $0x10] sm:$0xff]  ;;  %v640_v35 = vld [vmem:[#allocation2 + $0x19] sm:$0xff]  ;;  %v1073_v49 = vld [vmem:[#allocation2 + $0x22] sm:$0xff]  ;;  %3703 = vmatpush3.bf16.msra.mxu0 %v3700_v13 }
  0x31   : > { %711 = vrot.lane.b32.xlu0 %v638_v24, %s3904_s30  ;;  %603 = vst.msk [vmem:[#allocation3 + $0x10] sm:$0xff] %vm522_vm0, %v567_v34  ;;  %v568_v36 = vld [vmem:[#allocation2 + $0x18] sm:$0xff]  ;;  %v1723_v54 = vld [vmem:[#allocation2 + $0x2c] sm:$0xff]  ;;  %v569_v56 = vld [vmem:[#allocation2 + $0x20] sm:$0xff] }
  0x32   : > { %604 = vst.msk [vmem:[#allocation3 + $0x18] sm:$0xff] %vm522_vm0, %v568_v36  ;;  %605 = vst.msk [vmem:[#allocation3 + $0x20] sm:$0xff] %vm522_vm0, %v569_v56  ;;  %v1290_v59 = vld [vmem:[#allocation2 + $0x23] sm:$0xff]  ;;  %v1940_v2 = vld [vmem:[#allocation2 + $0x2d] sm:$0xff] }
  0x33   : > { %v1074_v60 = vld [vmem:[#allocation2 + $0x2a] sm:$0xff]  ;;  %v641_v8 = vld [vmem:[#allocation2 + $0x21] sm:$0xff]  ;;  %v1724_v16 = vld [vmem:[#allocation2 + $0x34] sm:$0xff] }
  0x34   : > { %1145 = vrot.lane.b32.xlu1 %v1072_v25, %s5281_s10  ;;  %v2156_v1 = vld [vmem:[#allocation2 + $0x26] sm:$0xff]  ;;  %v2157_v12 = vld [vmem:[#allocation2 + $0x2e] sm:$0xff]  ;;  %v1725_v21 = vld [vmem:[#allocation2 + $0x3c] sm:$0xff] }
  0x35   : > { %1143 = vrot.lane.b32.xlu0 %v1071_v26, %s5281_s10  ;;  %s5292_s10 = smov 16   ;;  %v570_v4 = vld [vmem:[#allocation2 + $0x28] sm:$0xff]  ;;  %v1075_v19 = vld [vmem:[#allocation2 + $0x32] sm:$0xff]  ;;  %v1076_v24 = vld [vmem:[#allocation2 + $0x3a] sm:$0xff] }
  0x36   : > { %606 = vst.msk [vmem:[#allocation3 + $0x28] sm:$0xff] %vm522_vm0, %v570_v4  ;;  %v1291_v7 = vld [vmem:[#allocation2 + $0x2b] sm:$0xff]  ;;  %v1941_v20 = vld [vmem:[#allocation2 + $0x35] sm:$0xff]  ;;  %v1077_v36 = vld [vmem:[#allocation2 + $0x42] sm:$0xff] }
  0x37   : > { %v642_v15 = vld [vmem:[#allocation2 + $0x29] sm:$0xff]  ;;  %v1292_v23 = vld [vmem:[#allocation2 + $0x33] sm:$0xff]  ;;  %v573_v39 = vld [vmem:[#allocation2 + $0x40] sm:$0xff] }
  0x38   : > { %713 = vrot.lane.b32.xlu1 %v639_v27, %s3904_s30  ;;  %v571_v22 = vld [vmem:[#allocation2 + $0x30] sm:$0xff]  ;;  %v572_v27 = vld [vmem:[#allocation2 + $0x38] sm:$0xff]  ;;  %v1726_v33 = vld [vmem:[#allocation2 + $0x44] sm:$0xff]  ;;  %609 = vst.msk [vmem:[#allocation3 + $0x40] sm:$0xff] %vm522_vm0, %v573_v39 }
  0x39   : > { %1360 = vrot.lane.b32.xlu0 %v1288_v28, %s5279_s0  ;;  %607 = vst.msk [vmem:[#allocation3 + $0x30] sm:$0xff] %vm522_vm0, %v571_v22  ;;  %608 = vst.msk [vmem:[#allocation3 + $0x38] sm:$0xff] %vm522_vm0, %v572_v27  ;;  %v1293_v28 = vld [vmem:[#allocation2 + $0x3b] sm:$0xff]  ;;  %v3419_v34 = vld [vmem:[%s4068_s28 + $0x48] sm:$0xff]  }
  0x3a   : > { %v644_v32 = vld [vmem:[#allocation2 + $0x39] sm:$0xff]  ;;  %v1943_v37 = vld [vmem:[#allocation2 + $0x45] sm:$0xff]  ;;  %v2161_v47 = vld [vmem:[#allocation2 + $0x4e] sm:$0xff]  ;;  %v3370_v48 = vunpack.c.h.bf16 %v3419_v34 }
  0x3b   : > { %v1727_v38 = vld [vmem:[#allocation2 + $0x4c] sm:$0xff]  ;;  %v1294_v40 = vld [vmem:[#allocation2 + $0x43] sm:$0xff]  ;;  %v4228_v52 = vld [vmem:[#allocation2 + $0x54] sm:$0xff] }
  0x3c   : > { %1577 = vrot.lane.b32.xlu1 %v1505_v29, %s5287_s17  ;;  %v643_v29 = vld [vmem:[#allocation2 + $0x31] sm:$0xff]  ;;  %v574_v44 = vld [vmem:[#allocation2 + $0x48] sm:$0xff]  ;;  %542 = vst.msk [vmem:[#allocation2 + $0x98] sm:$0xff] %vm522_vm0, %v3370_v48  ;;  %v1729_v61 = vld [vmem:[#allocation2 + $0x5c] sm:$0xff] }
  0x3d   : > { %1362 = vrot.lane.b32.xlu0 %v1289_v30, %s5279_s0  ;;  %v2159_v30 = vld [vmem:[#allocation2 + $0x3e] sm:$0xff]  ;;  %v1078_v41 = vld [vmem:[#allocation2 + $0x4a] sm:$0xff]  ;;  %610 = vst.msk [vmem:[#allocation3 + $0x48] sm:$0xff] %vm522_vm0, %v574_v44  ;;  %v1079_v57 = vld [vmem:[#allocation2 + $0x52] sm:$0xff] }
  0x3e   : > { %v1295_v45 = vld [vmem:[#allocation2 + $0x4b] sm:$0xff]  ;;  %v645_v46 = vld [vmem:[#allocation2 + $0x41] sm:$0xff]  ;;  %v2162_v6 = vld [vmem:[#allocation2 + $0x56] sm:$0xff] }
  0x3f   : > { %v575_v62 = vld [vmem:[#allocation2 + $0x50] sm:$0xff]  ;;  %v1080_v3 = vld [vmem:[#allocation2 + $0x5a] sm:$0xff]  ;;  %v4273_v22 = vld [vmem:[#allocation2 + $0x64] sm:$0xff] }
  0x40   : > { %930 = vrot.lane.b32.xlu1 %v1071_v26, %s5283_s29  ;;  %v1942_v26 = vld [vmem:[#allocation2 + $0x3d] sm:$0xff]  ;;  %611 = vst.msk [vmem:[#allocation3 + $0x50] sm:$0xff] %vm522_vm0, %v575_v62  ;;  %v1731_v31 = vld [vmem:[#allocation2 + $0x6c] sm:$0xff] }
  0x41   : > { %715 = vrot.lane.b32.xlu0 %v640_v35, %s3904_s30  ;;  %v3369_v35 = vunpack.c.l.bf16 %v3419_v34  ;;  %v1297_v11 = vld [vmem:[#allocation2 + $0x5b] sm:$0xff]  ;;  %v1083_v62 = vld [vmem:[#allocation2 + $0x72] sm:$0xff] }
  0x42   : > { %v1081_v27 = vld [vmem:[#allocation2 + $0x62] sm:$0xff] }
  0x43   : > { %541 = vst.msk [vmem:[#allocation2 + $0x90] sm:$0xff] %vm522_vm0, %v3369_v35  ;;  %v1298_v35 = vld [vmem:[#allocation2 + $0x63] sm:$0xff] }
  0x44   : > { %1794 = vrot.lane.b32.xlu1 %v4119_v42, %s5285_s26 }
  0x45   : > { %1579 = vrot.lane.b32.xlu0 %v1506_v43, %s5287_s17  ;;  %s5293_s17 = smov 20   ;;  %v1944_v43 = vld [vmem:[#allocation2 + $0x4d] sm:$0xff] }
  0x48   : > { %1147 = vrot.lane.b32.xlu1 %v1073_v49, %s5291_s21 }
  0x49   : > { %932 = vrot.lane.b32.xlu0 %v1072_v25, %s5283_s29  ;;  %s5294_s29 = smov 8   ;;  %v2158_v25 = vld [vmem:[#allocation2 + $0x36] sm:$0xff] }
  0x4c   : > { %2011 = vrot.lane.b32.xlu1 %v1939_v53, %s3909_s27  ;;  %v4231_v53 = vld [vmem:[%s4068_s28 + $0x50] sm:$0xff]  }
  0x4d   : > { %1796 = vrot.lane.b32.xlu0 %v1723_v54, %s5285_s26  ;;  %v3373_v56 = vunpack.c.l.bf16 %v4231_v53  ;;  %v3374_v18 = vunpack.c.h.bf16 %v4231_v53 }
  0x4f   : > { %543 = vst.msk [vmem:[#allocation2 + $0xa0] sm:$0xff] %vm522_vm0, %v3373_v56  ;;  %544 = vst.msk [vmem:[#allocation2 + $0xa8] sm:$0xff] %vm522_vm0, %v3374_v18  ;;  %v651_v18 = vld [vmem:[#allocation2 + $0x71] sm:$0xff] }
  0x50   : > { %1364 = vrot.lane.b32.xlu1 %v1290_v59, %s5292_s10 }
  0x51   : > { %1149 = vrot.lane.b32.xlu0 %v1074_v60, %s5291_s21 }
  0x54   : > { %2228 = vrot.lane.b32.xlu1 %v2156_v1, %s3910_s24 }
  0x55   : > { %2013 = vrot.lane.b32.xlu0 %v1940_v2, %s3909_s27  ;;  %v1296_v2 = vld [vmem:[#allocation2 + $0x53] sm:$0xff] }
  0x58   : > { %1366 = vrot.lane.b32.xlu1 %v1291_v7, %s5292_s10  ;;  %v1946_v7 = vld [vmem:[#allocation2 + $0x5d] sm:$0xff] }
  0x59   : > { %717 = vrot.lane.b32.xlu0 %v641_v8, %s3904_s30  ;;  %v576_v8 = vld [vmem:[#allocation2 + $0x58] sm:$0xff] }
  0x5a   : > { %612 = vst.msk [vmem:[#allocation3 + $0x58] sm:$0xff] %vm522_vm0, %v576_v8  ;;  %v1084_v8 = vld [vmem:[#allocation2 + $0x7a] sm:$0xff] }
  0x5c   : > { %2230 = vrot.lane.b32.xlu1 %v2157_v12, %s3910_s24  ;;  %v647_v12 = vld [vmem:[#allocation2 + $0x51] sm:$0xff] }
  0x5d   : > { %1581 = vrot.lane.b32.xlu0 %v4119_v42, %s5293_s17  ;;  %v2160_v42 = vld [vmem:[#allocation2 + $0x46] sm:$0xff] }
  0x60   : > { %934 = vrot.lane.b32.xlu1 %v1073_v49, %s5294_s29  ;;  %v646_v49 = vld [vmem:[#allocation2 + $0x49] sm:$0xff] }
  0x61   : > { %719 = vrot.lane.b32.xlu0 %v642_v15, %s3904_s30  ;;  %v2163_v15 = vld [vmem:[#allocation2 + $0x5e] sm:$0xff] }
  0x64   : > { %1798 = vrot.lane.b32.xlu1 %v1724_v16, %s5295_s19 }
  0x65   : > { %1583 = vrot.lane.b32.xlu0 %v1723_v54, %s5293_s17 }
  0x68   : > { %1151 = vrot.lane.b32.xlu1 %v1075_v19, %s5291_s21 }
  0x69   : > { %936 = vrot.lane.b32.xlu0 %v1074_v60, %s5294_s29  ;;  %v1945_v60 = vld [vmem:[#allocation2 + $0x55] sm:$0xff] }
  0x6c   : > { %2015 = vrot.lane.b32.xlu1 %v1941_v20, %s3909_s27 }
  0x6d   : > { %1800 = vrot.lane.b32.xlu0 %v1725_v21, %s5295_s19 }
  0x70   : > { %1368 = vrot.lane.b32.xlu1 %v1292_v23, %s5292_s10  ;;  %v4276_v23 = vld [vmem:[%s4068_s28 + $0x58] sm:$0xff]  }
  0x71   : > { %1153 = vrot.lane.b32.xlu0 %v1076_v24, %s5291_s21  ;;  %v3378_v53 = vunpack.c.h.bf16 %v4276_v23 }
  0x73   : > { %546 = vst.msk [vmem:[#allocation2 + $0xb8] sm:$0xff] %vm522_vm0, %v3378_v53  ;;  %v653_v53 = vld [vmem:[#allocation2 + $0x81] sm:$0xff] }
  0x74   : > { %2232 = vrot.lane.b32.xlu1 %v2158_v25, %s3910_s24 }
  0x75   : > { %2017 = vrot.lane.b32.xlu0 %v1942_v26, %s3909_s27  ;;  %v3377_v26 = vunpack.c.l.bf16 %v4276_v23 }
  0x77   : > { %545 = vst.msk [vmem:[#allocation2 + $0xb0] sm:$0xff] %vm522_vm0, %v3377_v26  ;;  %v652_v26 = vld [vmem:[#allocation2 + $0x79] sm:$0xff] }
  0x78   : > { %1370 = vrot.lane.b32.xlu1 %v1293_v28, %s5292_s10 }
  0x79   : > { %721 = vrot.lane.b32.xlu0 %v643_v29, %s3904_s30 }
  0x7c   : > { %2234 = vrot.lane.b32.xlu1 %v2159_v30, %s3910_s24  ;;  %v1947_v30 = vld [vmem:[#allocation2 + $0x65] sm:$0xff] }
  0x7d   : > { %1585 = vrot.lane.b32.xlu0 %v1724_v16, %s5293_s17 }
  0x80   : > { %938 = vrot.lane.b32.xlu1 %v1075_v19, %s5294_s29  ;;  %v648_v19 = vld [vmem:[#allocation2 + $0x59] sm:$0xff] }
  0x81   : > { %723 = vrot.lane.b32.xlu0 %v644_v32, %s3904_s30  ;;  %v577_v32 = vld [vmem:[#allocation2 + $0x60] sm:$0xff] }
  0x82   : > { %613 = vst.msk [vmem:[#allocation3 + $0x60] sm:$0xff] %vm522_vm0, %v577_v32 }
  0x84   : > { %1802 = vrot.lane.b32.xlu1 %v1726_v33, %s5295_s19 }
  0x85   : > { %1587 = vrot.lane.b32.xlu0 %v1725_v21, %s5293_s17 }
  0x88   : > { %1155 = vrot.lane.b32.xlu1 %v1077_v36, %s5291_s21 }
  0x89   : > { %940 = vrot.lane.b32.xlu0 %v1076_v24, %s5294_s29 }
  0x8c   : > { %2019 = vrot.lane.b32.xlu1 %v1943_v37, %s3909_s27 }
  0x8d   : > { %1804 = vrot.lane.b32.xlu0 %v1727_v38, %s5295_s19 }
  0x90   : > { %1372 = vrot.lane.b32.xlu1 %v1294_v40, %s5292_s10  ;;  %v2164_v40 = vld [vmem:[#allocation2 + $0x66] sm:$0xff] }
  0x91   : > { %1157 = vrot.lane.b32.xlu0 %v1078_v41, %s5291_s21 }
  0x94   : > { %2236 = vrot.lane.b32.xlu1 %v2160_v42, %s3910_s24  ;;  %v578_v42 = vld [vmem:[#allocation2 + $0x68] sm:$0xff] }
  0x95   : > { %2021 = vrot.lane.b32.xlu0 %v1944_v43, %s3909_s27  ;;  %614 = vst.msk [vmem:[#allocation3 + $0x68] sm:$0xff] %vm522_vm0, %v578_v42  ;;  %v1302_v42 = vld [vmem:[#allocation2 + $0x83] sm:$0xff] }
  0x98   : > { %1374 = vrot.lane.b32.xlu1 %v1295_v45, %s5292_s10  ;;  %v1299_v45 = vld [vmem:[#allocation2 + $0x6b] sm:$0xff] }
  0x99   : > { %725 = vrot.lane.b32.xlu0 %v645_v46, %s3904_s30  ;;  %v649_v46 = vld [vmem:[#allocation2 + $0x61] sm:$0xff] }
  0x9c   : > { %2238 = vrot.lane.b32.xlu1 %v2161_v47, %s3910_s24 }
  0x9d   : > { %1589 = vrot.lane.b32.xlu0 %v1726_v33, %s5293_s17 }
  0x9e   : > { %v927_v50 = vpop.permute.xlu1 %926 }
  0x9f   : > { %v710_v51 = vpop.permute.xlu0 %709 }
  0xa0   : > { %818 = vst.msk [vmem:[#allocation3] sm:$0xff] %vm817_vm1, %v710_v51  ;;  %942 = vrot.lane.b32.xlu1 %v1077_v36, %s5294_s29  ;;  %v1082_v36 = vld [vmem:[#allocation2 + $0x6a] sm:$0xff] }
  0xa1   : > { %727 = vrot.lane.b32.xlu0 %v646_v49, %s3904_s30  ;;  %1035 = vst.msk [vmem:[#allocation3] sm:$0xff] %vm1034_vm2, %v927_v50  ;;  %v2165_v50 = vld [vmem:[#allocation2 + $0x6e] sm:$0xff] }
  0xa2   : > { %v929_v54 = vpop.permute.xlu1 %928 }
  0xa3   : > { %v712_v55 = vpop.permute.xlu0 %711 }
  0xa4   : > { %819 = vst.msk [vmem:[#allocation3 + $0x8] sm:$0xff] %vm817_vm1, %v712_v55  ;;  %1806 = vrot.lane.b32.xlu1 %v4228_v52, %s5295_s19 }
  0xa5   : > { %1591 = vrot.lane.b32.xlu0 %v1727_v38, %s5293_s17  ;;  %1036 = vst.msk [vmem:[#allocation3 + $0x8] sm:$0xff] %vm1034_vm2, %v929_v54  ;;  %v650_v54 = vld [vmem:[#allocation2 + $0x69] sm:$0xff] }
  0xa6   : > { %v1146_v58 = vpop.permute.xlu1 %1145 }
  0xa7   : > { %v1144_v59 = vpop.permute.xlu0 %1143  ;;  %1253 = vst.msk [vmem:[#allocation3 + $0x8] sm:$0xff] %vm1251_vm3, %v1146_v58  ;;  %v4321_v58 = vld [vmem:[%s4068_s28 + $0x60] sm:$0xff]  }
  0xa8   : > { %1252 = vst.msk [vmem:[#allocation3] sm:$0xff] %vm1251_vm3, %v1144_v59  ;;  %1159 = vrot.lane.b32.xlu1 %v1079_v57, %s5291_s21 }
  0xa9   : > { %944 = vrot.lane.b32.xlu0 %v1078_v41, %s5294_s29  ;;  %v1948_v41 = vld [vmem:[#allocation2 + $0x6d] sm:$0xff] }
  0xaa   : > { %v714_v63 = vpop.permute.xlu1 %713 }
  0xab   : > { %v1361_v1 = vpop.permute.xlu0 %1360  ;;  %820 = vst.msk [vmem:[#allocation3 + $0x10] sm:$0xff] %vm817_vm1, %v714_v63 }
  0xac   : > { %1469 = vst.msk [vmem:[#allocation3] sm:$0xff] %vm1468_vm4, %v1361_v1  ;;  %2023 = vrot.lane.b32.xlu1 %v1945_v60, %s3909_s27 }
  0xad   : > { %1808 = vrot.lane.b32.xlu0 %v1729_v61, %s5295_s19 }
  0xae   : > { %v1578_v4 = vpop.permute.xlu1 %1577 }
  0xaf   : > { %v1363_v5 = vpop.permute.xlu0 %1362  ;;  %1686 = vst.msk [vmem:[#allocation3] sm:$0xff] %vm1685_vm5, %v1578_v4  ;;  %v579_v4 = vld [vmem:[#allocation2 + $0x70] sm:$0xff] }
  0xb0   : > { %1470 = vst.msk [vmem:[#allocation3 + $0x8] sm:$0xff] %vm1468_vm4, %v1363_v5  ;;  %1376 = vrot.lane.b32.xlu1 %v1296_v2, %s5292_s10  ;;  %v1949_v2 = vld [vmem:[#allocation2 + $0x75] sm:$0xff] }
  0xb1   : > { %1161 = vrot.lane.b32.xlu0 %v1080_v3, %s5291_s21  ;;  %615 = vst.msk [vmem:[#allocation3 + $0x70] sm:$0xff] %vm522_vm0, %v579_v4  ;;  %v4411_v4 = vld [vmem:[%s4068_s28 + $0x70] sm:$0xff]  }
  0xb2   : > { %v931_v9 = vpop.permute.xlu1 %930 }
  0xb3   : > { %v716_v10 = vpop.permute.xlu0 %715  ;;  %1037 = vst.msk [vmem:[#allocation3 + $0x10] sm:$0xff] %vm1034_vm2, %v931_v9 }
  0xb4   : > { %821 = vst.msk [vmem:[#allocation3 + $0x18] sm:$0xff] %vm817_vm1, %v716_v10  ;;  %2240 = vrot.lane.b32.xlu1 %v2162_v6, %s3910_s24 }
  0xb5   : > { %2025 = vrot.lane.b32.xlu0 %v1946_v7, %s3909_s27  ;;  %v1300_v7 = vld [vmem:[#allocation2 + $0x73] sm:$0xff] }
  0xb6   : > { %v1795_v13 = vpop.permute.xlu1 %1794 }
  0xb7   : > { %v1580_v14 = vpop.permute.xlu0 %1579  ;;  %1903 = vst.msk [vmem:[#allocation3] sm:$0xff] %vm1902_vm6, %v1795_v13  ;;  %v1950_v13 = vld [vmem:[#allocation2 + $0x7d] sm:$0xff] }
  0xb8   : > { %1687 = vst.msk [vmem:[#allocation3 + $0x8] sm:$0xff] %vm1685_vm5, %v1580_v14  ;;  %1378 = vrot.lane.b32.xlu1 %v1297_v11, %s5292_s10  ;;  %v580_v14 = vld [vmem:[#allocation2 + $0x78] sm:$0xff] }
  0xb9   : > { %729 = vrot.lane.b32.xlu0 %v647_v12, %s3904_s30  ;;  %v2166_v12 = vld [vmem:[#allocation2 + $0x76] sm:$0xff]  ;;  %616 = vst.msk [vmem:[#allocation3 + $0x78] sm:$0xff] %vm522_vm0, %v580_v14 }
  0xba   : > { %v1148_v16 = vpop.permute.xlu1 %1147  ;;  %v1304_v14 = vld [vmem:[#allocation2 + $0x93] sm:$0xff] }
  0xbb   : > { %v933_v17 = vpop.permute.xlu0 %932  ;;  %1254 = vst.msk [vmem:[#allocation3 + $0x10] sm:$0xff] %vm1251_vm3, %v1148_v16 }
  0xbc   : > { %1038 = vst.msk [vmem:[#allocation3 + $0x18] sm:$0xff] %vm1034_vm2, %v933_v17  ;;  %2242 = vrot.lane.b32.xlu1 %v2163_v15, %s3910_s24  ;;  %v1301_v17 = vld [vmem:[#allocation2 + $0x7b] sm:$0xff] }
  0xbd   : > { %1593 = vrot.lane.b32.xlu0 %v4228_v52, %s5293_s17 }
  0xbe   : > { %v2012_v20 = vpop.permute.xlu1 %2011 }
  0xbf   : > { %v1797_v21 = vpop.permute.xlu0 %1796  ;;  %2120 = vst.msk [vmem:[#allocation3] sm:$0xff] %vm2119_vm7, %v2012_v20 }
  0xc0   : > { %1904 = vst.msk [vmem:[#allocation3 + $0x8] sm:$0xff] %vm1902_vm6, %v1797_v21  ;;  %946 = vrot.lane.b32.xlu1 %v1079_v57, %s5294_s29  ;;  %v4318_v57 = vld [vmem:[#allocation2 + $0x74] sm:$0xff] }
  0xc1   : > { %731 = vrot.lane.b32.xlu0 %v648_v19, %s3904_s30 }
  0xc2   : > { %v1365_v24 = vpop.permute.xlu1 %1364 }
  0xc3   : > { %v1150_v25 = vpop.permute.xlu0 %1149  ;;  %1471 = vst.msk [vmem:[#allocation3 + $0x10] sm:$0xff] %vm1468_vm4, %v1365_v24 }
  0xc4   : > { %1255 = vst.msk [vmem:[#allocation3 + $0x18] sm:$0xff] %vm1251_vm3, %v1150_v25  ;;  %1810 = vrot.lane.b32.xlu1 %v4273_v22, %s5295_s19  ;;  %v3382_v25 = vunpack.c.h.bf16 %v4321_v58 }
  0xc5   : > { %1595 = vrot.lane.b32.xlu0 %v1729_v61, %s5293_s17  ;;  %v3381_v61 = vunpack.c.l.bf16 %v4321_v58 }
  0xc6   : > { %v2229_v28 = vpop.permute.xlu1 %2228  ;;  %548 = vst.msk [vmem:[#allocation2 + $0xc8] sm:$0xff] %vm522_vm0, %v3382_v25  ;;  %v655_v25 = vld [vmem:[#allocation2 + $0x91] sm:$0xff] }
  0xc7   : > { %v2014_v29 = vpop.permute.xlu0 %2013  ;;  %2337 = vst.msk [vmem:[#allocation3] sm:$0xff] %vm2336_vm8, %v2229_v28 }
  0xc8   : > { %2121 = vst.msk [vmem:[#allocation3 + $0x8] sm:$0xff] %vm2119_vm7, %v2014_v29  ;;  %1163 = vrot.lane.b32.xlu1 %v1081_v27, %s5291_s21  ;;  %v4363_v29 = vld [vmem:[#allocation2 + $0x84] sm:$0xff] }
  0xc9   : > { %948 = vrot.lane.b32.xlu0 %v1080_v3, %s5294_s29  ;;  %547 = vst.msk [vmem:[#allocation2 + $0xc0] sm:$0xff] %vm522_vm0, %v3381_v61  ;;  %v1733_v3 = vld [vmem:[#allocation2 + $0x7c] sm:$0xff]  ;;  %v654_v61 = vld [vmem:[#allocation2 + $0x89] sm:$0xff] }
  0xca   : > { %v1367_v33 = vpop.permute.xlu1 %1366 }
  0xcb   : > { %v718_v34 = vpop.permute.xlu0 %717  ;;  %1472 = vst.msk [vmem:[#allocation3 + $0x18] sm:$0xff] %vm1468_vm4, %v1367_v33 }
  0xcc   : > { %822 = vst.msk [vmem:[#allocation3 + $0x20] sm:$0xff] %vm817_vm1, %v718_v34  ;;  %2027 = vrot.lane.b32.xlu1 %v1947_v30, %s3909_s27  ;;  %v4366_v30 = vld [vmem:[%s4068_s28 + $0x68] sm:$0xff]  }
  0xcd   : > { %1812 = vrot.lane.b32.xlu0 %v1731_v31, %s5295_s19  ;;  %v3385_v33 = vunpack.c.l.bf16 %v4366_v30  ;;  %v1085_v34 = vld [vmem:[#allocation2 + $0x82] sm:$0xff] }
  0xce   : > { %v2231_v37 = vpop.permute.xlu1 %2230  ;;  %v2373_v39 = vld [vmem:[#allocation3] sm:$0xff] }
  0xcf   : > { %v1582_v38 = vpop.permute.xlu0 %1581  ;;  %2338 = vst.msk [vmem:[#allocation3 + $0x8] sm:$0xff] %vm2336_vm8, %v2231_v37  ;;  %3548 = vmatprep.mubr.f32.mxu0 %v2373_v39  ;;  %v1951_v37 = vld [vmem:[#allocation2 + $0x85] sm:$0xff] }
  0xd0   : > { %1688 = vst.msk [vmem:[#allocation3 + $0x10] sm:$0xff] %vm1685_vm5, %v1582_v38  ;;  %1380 = vrot.lane.b32.xlu1 %v1298_v35, %s5292_s10  ;;  %v1735_v38 = vld [vmem:[#allocation2 + $0x8c] sm:$0xff]  ;;  %v581_v39 = vld [vmem:[#allocation2 + $0x80] sm:$0xff] }
  0xd1   : > { %1165 = vrot.lane.b32.xlu0 %v1082_v36, %s5291_s21  ;;  %549 = vst.msk [vmem:[#allocation2 + $0xd0] sm:$0xff] %vm522_vm0, %v3385_v33  ;;  %617 = vst.msk [vmem:[#allocation3 + $0x80] sm:$0xff] %vm522_vm0, %v581_v39  ;;  %v656_v33 = vld [vmem:[#allocation2 + $0x99] sm:$0xff] }
  0xd2   : > { %v935_v43 = vpop.permute.xlu1 %934  ;;  %v4456_v39 = vld [vmem:[%s4068_s28 + $0x78] sm:$0xff]  }
  0xd3   : > { %v720_v44 = vpop.permute.xlu0 %719  ;;  %1039 = vst.msk [vmem:[#allocation3 + $0x20] sm:$0xff] %vm1034_vm2, %v935_v43  ;;  %v1086_v43 = vld [vmem:[#allocation2 + $0x8a] sm:$0xff] }
  0xd4   : > { %823 = vst.msk [vmem:[#allocation3 + $0x28] sm:$0xff] %vm817_vm1, %v720_v44  ;;  %2244 = vrot.lane.b32.xlu1 %v2164_v40, %s3910_s24 }
  0xd5   : > { %2029 = vrot.lane.b32.xlu0 %v1948_v41, %s3909_s27 }
  0xd6   : > { %v1799_v47 = vpop.permute.xlu1 %1798  ;;  %v2374_v49 = vld [vmem:[#allocation3 + $0x8] sm:$0xff] }
  0xd7   : > { %v1584_v48 = vpop.permute.xlu0 %1583  ;;  %1905 = vst.msk [vmem:[#allocation3 + $0x10] sm:$0xff] %vm1902_vm6, %v1799_v47  ;;  %3549 = vmatmul.mubr.f32.vlgmr.msra.gmra.mrb[0].mxu0 %v2374_v49  ;;  %v2168_v47 = vld [vmem:[#allocation2 + $0x86] sm:$0xff] }
  0xd8   : > { %1689 = vst.msk [vmem:[#allocation3 + $0x18] sm:$0xff] %vm1685_vm5, %v1584_v48  ;;  %1382 = vrot.lane.b32.xlu1 %v1299_v45, %s5292_s10  ;;  %v1952_v48 = vld [vmem:[#allocation2 + $0x8d] sm:$0xff] }
  0xd9   : > { %733 = vrot.lane.b32.xlu0 %v649_v46, %s3904_s30  ;;  %v582_v49 = vld [vmem:[#allocation2 + $0x88] sm:$0xff] }
  0xda   : > { %v1152_v51 = vpop.permute.xlu1 %1151  ;;  %618 = vst.msk [vmem:[#allocation3 + $0x88] sm:$0xff] %vm522_vm0, %v582_v49  ;;  %v1306_v49 = vld [vmem:[#allocation2 + $0xa3] sm:$0xff] }
  0xdb   : > { %v937_v52 = vpop.permute.xlu0 %936  ;;  %1256 = vst.msk [vmem:[#allocation3 + $0x20] sm:$0xff] %vm1251_vm3, %v1152_v51 }
  0xdc   : > { %1040 = vst.msk [vmem:[#allocation3 + $0x28] sm:$0xff] %vm1034_vm2, %v937_v52  ;;  %2246 = vrot.lane.b32.xlu1 %v2165_v50, %s3910_s24  ;;  %v1303_v52 = vld [vmem:[#allocation2 + $0x8b] sm:$0xff] }
  0xdd   : > { %1597 = vrot.lane.b32.xlu0 %v4273_v22, %s5293_s17  ;;  %v2167_v22 = vld [vmem:[#allocation2 + $0x7e] sm:$0xff] }
  0xde   : > { %v2016_v55 = vpop.permute.xlu1 %2015 }
  0xdf   : > { %v1801_v56 = vpop.permute.xlu0 %1800  ;;  %2122 = vst.msk [vmem:[#allocation3 + $0x10] sm:$0xff] %vm2119_vm7, %v2016_v55 }
  0xe0   : > { %1906 = vst.msk [vmem:[#allocation3 + $0x18] sm:$0xff] %vm1902_vm6, %v1801_v56  ;;  %950 = vrot.lane.b32.xlu1 %v1081_v27, %s5294_s29 }
  0xe1   : > { %735 = vrot.lane.b32.xlu0 %v650_v54, %s3904_s30 }
  0xe2   : > { %v1369_v59 = vpop.permute.xlu1 %1368 }
  0xe3   : > { %v1154_v60 = vpop.permute.xlu0 %1153  ;;  %1473 = vst.msk [vmem:[#allocation3 + $0x20] sm:$0xff] %vm1468_vm4, %v1369_v59 }
  0xe4   : > { %1257 = vst.msk [vmem:[#allocation3 + $0x28] sm:$0xff] %vm1251_vm3, %v1154_v60  ;;  %1814 = vrot.lane.b32.xlu1 %v4318_v57, %s5295_s19  ;;  %v3386_v60 = vunpack.c.h.bf16 %v4366_v30 }
  0xe5   : > { %1599 = vrot.lane.b32.xlu0 %v1731_v31, %s5293_s17 }
  0xe6   : > { %v2233_v63 = vpop.permute.xlu1 %2232  ;;  %550 = vst.msk [vmem:[#allocation2 + $0xd8] sm:$0xff] %vm522_vm0, %v3386_v60  ;;  %v657_v60 = vld [vmem:[#allocation2 + $0xa1] sm:$0xff] }
  0xe7   : > { %v2018_v1 = vpop.permute.xlu0 %2017  ;;  %2339 = vst.msk [vmem:[#allocation3 + $0x10] sm:$0xff] %vm2336_vm8, %v2233_v63 }
  0xe8   : > { %2123 = vst.msk [vmem:[#allocation3 + $0x18] sm:$0xff] %vm2119_vm7, %v2018_v1  ;;  %1167 = vrot.lane.b32.xlu1 %v1083_v62, %s5291_s21  ;;  %v4408_v1 = vld [vmem:[#allocation2 + $0x94] sm:$0xff] }
  0xe9   : > { %952 = vrot.lane.b32.xlu0 %v1082_v36, %s5294_s29 }
  0xea   : > { %v1371_v5 = vpop.permute.xlu1 %1370 }
  0xeb   : > { %v722_v6 = vpop.permute.xlu0 %721  ;;  %1474 = vst.msk [vmem:[#allocation3 + $0x28] sm:$0xff] %vm1468_vm4, %v1371_v5  ;;  %v3389_v5 = vunpack.c.l.bf16 %v4411_v4 }
  0xec   : > { %824 = vst.msk [vmem:[#allocation3 + $0x30] sm:$0xff] %vm817_vm1, %v722_v6  ;;  %2031 = vrot.lane.b32.xlu1 %v1949_v2, %s3909_s27  ;;  %v1087_v6 = vld [vmem:[#allocation2 + $0x92] sm:$0xff] }
  0xed   : > { %1816 = vrot.lane.b32.xlu0 %v1733_v3, %s5295_s19  ;;  %551 = vst.msk [vmem:[#allocation2 + $0xe0] sm:$0xff] %vm522_vm0, %v3389_v5  ;;  %v658_v5 = vld [vmem:[#allocation2 + $0xa9] sm:$0xff] }
  0xee   : > { %v2235_v9 = vpop.permute.xlu1 %2234  ;;  %v2375_v11 = vld [vmem:[#allocation3 + $0x10] sm:$0xff] }
  0xef   : > { %v1586_v10 = vpop.permute.xlu0 %1585  ;;  %2340 = vst.msk [vmem:[#allocation3 + $0x18] sm:$0xff] %vm2336_vm8, %v2235_v9  ;;  %3551 = vmatprep.mubr.f32.mxu0 %v2375_v11  ;;  %v1953_v9 = vld [vmem:[#allocation2 + $0x95] sm:$0xff] }
  0xf0   : > { %1690 = vst.msk [vmem:[#allocation3 + $0x20] sm:$0xff] %vm1685_vm5, %v1586_v10  ;;  %1384 = vrot.lane.b32.xlu1 %v1300_v7, %s5292_s10  ;;  %v1737_v10 = vld [vmem:[#allocation2 + $0x9c] sm:$0xff]  ;;  %v583_v11 = vld [vmem:[#allocation2 + $0x90] sm:$0xff] }
  0xf1   : > { %1169 = vrot.lane.b32.xlu0 %v1084_v8, %s5291_s21  ;;  %619 = vst.msk [vmem:[#allocation3 + $0x90] sm:$0xff] %vm522_vm0, %v583_v11  ;;  %v4501_v11 = vld [vmem:[%s4068_s28 + $0x80] sm:$0xff]  }
  0xf2   : > { %v939_v15 = vpop.permute.xlu1 %938 }
  0xf3   : > { %v724_v16 = vpop.permute.xlu0 %723  ;;  %1041 = vst.msk [vmem:[#allocation3 + $0x30] sm:$0xff] %vm1034_vm2, %v939_v15  ;;  %v1088_v15 = vld [vmem:[#allocation2 + $0x9a] sm:$0xff] }
  0xf4   : > { %825 = vst.msk [vmem:[#allocation3 + $0x38] sm:$0xff] %vm817_vm1, %v724_v16  ;;  %2248 = vrot.lane.b32.xlu1 %v2166_v12, %s3910_s24 }
  0xf5   : > { %2033 = vrot.lane.b32.xlu0 %v1950_v13, %s3909_s27 }
  0xf6   : > { %v1803_v19 = vpop.permute.xlu1 %1802  ;;  %v2376_v21 = vld [vmem:[#allocation3 + $0x18] sm:$0xff] }
  0xf7   : > { %v1588_v20 = vpop.permute.xlu0 %1587  ;;  %1907 = vst.msk [vmem:[#allocation3 + $0x20] sm:$0xff] %vm1902_vm6, %v1803_v19  ;;  %3552 = vmatmul.mubr.f32.gmra.mrb[2].mxu0 %v2376_v21  ;;  %v2170_v19 = vld [vmem:[#allocation2 + $0x96] sm:$0xff] }
  0xf8   : > { %1691 = vst.msk [vmem:[#allocation3 + $0x28] sm:$0xff] %vm1685_vm5, %v1588_v20  ;;  %1386 = vrot.lane.b32.xlu1 %v1301_v17, %s5292_s10  ;;  %v1954_v20 = vld [vmem:[#allocation2 + $0x9d] sm:$0xff] }
  0xf9   : > { %737 = vrot.lane.b32.xlu0 %v651_v18, %s3904_s30 }
  0xfa   : > { %v1156_v23 = vpop.permute.xlu1 %1155 }
  0xfb   : > { %v941_v24 = vpop.permute.xlu0 %940  ;;  %1258 = vst.msk [vmem:[#allocation3 + $0x30] sm:$0xff] %vm1251_vm3, %v1156_v23  ;;  %v584_v23 = vld [vmem:[#allocation2 + $0x98] sm:$0xff] }
  0xfc   : > { %1042 = vst.msk [vmem:[#allocation3 + $0x38] sm:$0xff] %vm1034_vm2, %v941_v24  ;;  %2250 = vrot.lane.b32.xlu1 %v2167_v22, %s3910_s24  ;;  %v1305_v24 = vld [vmem:[#allocation2 + $0x9b] sm:$0xff] }
  0xfd   : > { %1601 = vrot.lane.b32.xlu0 %v4318_v57, %s5293_s17  ;;  %v2169_v57 = vld [vmem:[#allocation2 + $0x8e] sm:$0xff]  ;;  %620 = vst.msk [vmem:[#allocation3 + $0x98] sm:$0xff] %vm522_vm0, %v584_v23 }
  0xfe   : > { %v2020_v27 = vpop.permute.xlu1 %2019 }
  0xff   : > { %v1805_v28 = vpop.permute.xlu0 %1804  ;;  %2124 = vst.msk [vmem:[#allocation3 + $0x20] sm:$0xff] %vm2119_vm7, %v2020_v27 }
 0x100   : > { %1908 = vst.msk [vmem:[#allocation3 + $0x28] sm:$0xff] %vm1902_vm6, %v1805_v28  ;;  %954 = vrot.lane.b32.xlu1 %v1083_v62, %s5294_s29 }
 0x101   : > { %739 = vrot.lane.b32.xlu0 %v652_v26, %s3904_s30 }
 0x102   : > { %v1373_v31 = vpop.permute.xlu1 %1372 }
 0x103   : > { %v1158_v32 = vpop.permute.xlu0 %1157  ;;  %1475 = vst.msk [vmem:[#allocation3 + $0x30] sm:$0xff] %vm1468_vm4, %v1373_v31 }
 0x104   : > { %1259 = vst.msk [vmem:[#allocation3 + $0x38] sm:$0xff] %vm1251_vm3, %v1158_v32  ;;  %1818 = vrot.lane.b32.xlu1 %v4363_v29, %s5295_s19  ;;  %v3390_v32 = vunpack.c.h.bf16 %v4411_v4  ;;  %v3394_v4 = vunpack.c.h.bf16 %v4456_v39 }
 0x105   : > { %1603 = vrot.lane.b32.xlu0 %v1733_v3, %s5293_s17 }
 0x106   : > { %v2237_v35 = vpop.permute.xlu1 %2236  ;;  %552 = vst.msk [vmem:[#allocation2 + $0xe8] sm:$0xff] %vm522_vm0, %v3390_v32  ;;  %554 = vst.msk [vmem:[#allocation2 + $0xf8] sm:$0xff] %vm522_vm0, %v3394_v4  ;;  %v659_v32 = vld [vmem:[#allocation2 + $0xb1] sm:$0xff]  ;;  %v661_v4 = vld [vmem:[#allocation2 + $0xc1] sm:$0xff] }
 0x107   : > { %v2022_v36 = vpop.permute.xlu0 %2021  ;;  %2341 = vst.msk [vmem:[#allocation3 + $0x20] sm:$0xff] %vm2336_vm8, %v2237_v35 }
 0x108   : > { %2125 = vst.msk [vmem:[#allocation3 + $0x28] sm:$0xff] %vm2119_vm7, %v2022_v36  ;;  %1171 = vrot.lane.b32.xlu1 %v1085_v34, %s5291_s21  ;;  %v4453_v36 = vld [vmem:[#allocation2 + $0xa4] sm:$0xff] }
 0x109   : > { %956 = vrot.lane.b32.xlu0 %v1084_v8, %s5294_s29 }
 0x10a   : > { %v1375_v40 = vpop.permute.xlu1 %1374 }
 0x10b   : > { %v726_v41 = vpop.permute.xlu0 %725  ;;  %1476 = vst.msk [vmem:[#allocation3 + $0x38] sm:$0xff] %vm1468_vm4, %v1375_v40  ;;  %v3393_v40 = vunpack.c.l.bf16 %v4456_v39  ;;  %v3398_v39 = vunpack.c.h.bf16 %v4501_v11 }
 0x10c   : > { %826 = vst.msk [vmem:[#allocation3 + $0x40] sm:$0xff] %vm817_vm1, %v726_v41  ;;  %2035 = vrot.lane.b32.xlu1 %v1951_v37, %s3909_s27  ;;  %v1089_v41 = vld [vmem:[#allocation2 + $0xa2] sm:$0xff] }
 0x10d   : > { %1820 = vrot.lane.b32.xlu0 %v1735_v38, %s5295_s19  ;;  %553 = vst.msk [vmem:[#allocation2 + $0xf0] sm:$0xff] %vm522_vm0, %v3393_v40  ;;  %v660_v40 = vld [vmem:[#allocation2 + $0xb9] sm:$0xff]  ;;  %556 = vst.msk [vmem:[#allocation2 + $0x108] sm:$0xff] %vm522_vm0, %v3398_v39 }
 0x10e   : > { %v2239_v44 = vpop.permute.xlu1 %2238  ;;  %v2377_v46 = vld [vmem:[#allocation3 + $0x20] sm:$0xff]  ;;  %v592_v39 = vld [vmem:[#allocation2 + $0xd8] sm:$0xff] }
 0x10f   : > { %v1590_v45 = vpop.permute.xlu0 %1589  ;;  %2342 = vst.msk [vmem:[#allocation3 + $0x28] sm:$0xff] %vm2336_vm8, %v2239_v44  ;;  %3554 = vmatprep.mubr.f32.mxu0 %v2377_v46  ;;  %v1955_v44 = vld [vmem:[#allocation2 + $0xa5] sm:$0xff] }
 0x110   : > { %1692 = vst.msk [vmem:[#allocation3 + $0x30] sm:$0xff] %vm1685_vm5, %v1590_v45  ;;  %1388 = vrot.lane.b32.xlu1 %v1302_v42, %s5292_s10  ;;  %v1739_v45 = vld [vmem:[#allocation2 + $0xac] sm:$0xff] }
 0x111   : > { %1173 = vrot.lane.b32.xlu0 %v1086_v43, %s5291_s21  ;;  %628 = vst.msk [vmem:[#allocation3 + $0xd8] sm:$0xff] %vm522_vm0, %v592_v39 }
 0x112   : > { %v943_v50 = vpop.permute.xlu1 %942 }
 0x113   : > { %v728_v51 = vpop.permute.xlu0 %727  ;;  %1043 = vst.msk [vmem:[#allocation3 + $0x40] sm:$0xff] %vm1034_vm2, %v943_v50  ;;  %v1090_v50 = vld [vmem:[#allocation2 + $0xaa] sm:$0xff] }
 0x114   : > { %827 = vst.msk [vmem:[#allocation3 + $0x48] sm:$0xff] %vm817_vm1, %v728_v51  ;;  %2252 = vrot.lane.b32.xlu1 %v2168_v47, %s3910_s24 }
 0x115   : > { %2037 = vrot.lane.b32.xlu0 %v1952_v48, %s3909_s27  ;;  %v585_v48 = vld [vmem:[#allocation2 + $0xa0] sm:$0xff] }
 0x116   : > { %v1807_v54 = vpop.permute.xlu1 %1806  ;;  %v2378_v56 = vld [vmem:[#allocation3 + $0x28] sm:$0xff]  ;;  %621 = vst.msk [vmem:[#allocation3 + $0xa0] sm:$0xff] %vm522_vm0, %v585_v48  ;;  %v1093_v48 = vld [vmem:[#allocation2 + $0xc2] sm:$0xff] }
 0x117   : > { %v1592_v55 = vpop.permute.xlu0 %1591  ;;  %1909 = vst.msk [vmem:[#allocation3 + $0x30] sm:$0xff] %vm1902_vm6, %v1807_v54  ;;  %3555 = vmatmul.mubr.f32.gmra.mrb[4].mxu0 %v2378_v56  ;;  %v2172_v54 = vld [vmem:[#allocation2 + $0xa6] sm:$0xff] }
 0x118   : > { %1693 = vst.msk [vmem:[#allocation3 + $0x38] sm:$0xff] %vm1685_vm5, %v1592_v55  ;;  %1390 = vrot.lane.b32.xlu1 %v1303_v52, %s5292_s10  ;;  %v1956_v55 = vld [vmem:[#allocation2 + $0xad] sm:$0xff] }
 0x119   : > { %741 = vrot.lane.b32.xlu0 %v653_v53, %s3904_s30 }
 0x11a   : > { %v1160_v58 = vpop.permute.xlu1 %1159 }
 0x11b   : > { %v945_v59 = vpop.permute.xlu0 %944  ;;  %1260 = vst.msk [vmem:[#allocation3 + $0x40] sm:$0xff] %vm1251_vm3, %v1160_v58  ;;  %v586_v58 = vld [vmem:[#allocation2 + $0xa8] sm:$0xff] }
 0x11c   : > { %1044 = vst.msk [vmem:[#allocation3 + $0x48] sm:$0xff] %vm1034_vm2, %v945_v59  ;;  %2254 = vrot.lane.b32.xlu1 %v2169_v57, %s3910_s24  ;;  %v1307_v59 = vld [vmem:[#allocation2 + $0xab] sm:$0xff] }
 0x11d   : > { %1605 = vrot.lane.b32.xlu0 %v4363_v29, %s5293_s17  ;;  %v2171_v29 = vld [vmem:[#allocation2 + $0x9e] sm:$0xff]  ;;  %622 = vst.msk [vmem:[#allocation3 + $0xa8] sm:$0xff] %vm522_vm0, %v586_v58 }
 0x11e   : > { %v2024_v62 = vpop.permute.xlu1 %2023 }
 0x11f   : > { %v1809_v63 = vpop.permute.xlu0 %1808  ;;  %2126 = vst.msk [vmem:[#allocation3 + $0x30] sm:$0xff] %vm2119_vm7, %v2024_v62 }
 0x120   : > { %1910 = vst.msk [vmem:[#allocation3 + $0x38] sm:$0xff] %vm1902_vm6, %v1809_v63  ;;  %958 = vrot.lane.b32.xlu1 %v1085_v34, %s5294_s29 }
 0x121   : > { %743 = vrot.lane.b32.xlu0 %v654_v61, %s3904_s30 }
 0x122   : > { %v1377_v2 = vpop.permute.xlu1 %1376 }
 0x123   : > { %v1162_v3 = vpop.permute.xlu0 %1161  ;;  %1477 = vst.msk [vmem:[#allocation3 + $0x40] sm:$0xff] %vm1468_vm4, %v1377_v2 }
 0x124   : > { %1261 = vst.msk [vmem:[#allocation3 + $0x48] sm:$0xff] %vm1251_vm3, %v1162_v3  ;;  %1822 = vrot.lane.b32.xlu1 %v4408_v1, %s5295_s19 }
 0x125   : > { %1607 = vrot.lane.b32.xlu0 %v1735_v38, %s5293_s17 }
 0x126   : > { %v2241_v7 = vpop.permute.xlu1 %2240 }
 0x127   : > { %v2026_v8 = vpop.permute.xlu0 %2025  ;;  %2343 = vst.msk [vmem:[#allocation3 + $0x30] sm:$0xff] %vm2336_vm8, %v2241_v7 }
 0x128   : > { %2127 = vst.msk [vmem:[#allocation3 + $0x38] sm:$0xff] %vm2119_vm7, %v2026_v8  ;;  %1175 = vrot.lane.b32.xlu1 %v1087_v6, %s5291_s21  ;;  %v4498_v8 = vld [vmem:[#allocation2 + $0xb4] sm:$0xff] }
 0x129   : > { %960 = vrot.lane.b32.xlu0 %v1086_v43, %s5294_s29 }
 0x12a   : > { %v1379_v12 = vpop.permute.xlu1 %1378 }
 0x12b   : > { %v730_v13 = vpop.permute.xlu0 %729  ;;  %1478 = vst.msk [vmem:[#allocation3 + $0x48] sm:$0xff] %vm1468_vm4, %v1379_v12  ;;  %v3397_v12 = vunpack.c.l.bf16 %v4501_v11 }
 0x12c   : > { %828 = vst.msk [vmem:[#allocation3 + $0x50] sm:$0xff] %vm817_vm1, %v730_v13  ;;  %2039 = vrot.lane.b32.xlu1 %v1953_v9, %s3909_s27  ;;  %v1091_v13 = vld [vmem:[#allocation2 + $0xb2] sm:$0xff] }
 0x12d   : > { %1824 = vrot.lane.b32.xlu0 %v1737_v10, %s5295_s19  ;;  %555 = vst.msk [vmem:[#allocation2 + $0x100] sm:$0xff] %vm522_vm0, %v3397_v12  ;;  %v662_v12 = vld [vmem:[#allocation2 + $0xc9] sm:$0xff] }
 0x12e   : > { %v2243_v16 = vpop.permute.xlu1 %2242  ;;  %v2379_v18 = vld [vmem:[#allocation3 + $0x30] sm:$0xff] }
 0x12f   : > { %v1594_v17 = vpop.permute.xlu0 %1593  ;;  %2344 = vst.msk [vmem:[#allocation3 + $0x38] sm:$0xff] %vm2336_vm8, %v2243_v16  ;;  %3557 = vmatprep.mubr.f32.mxu0 %v2379_v18  ;;  %v1957_v16 = vld [vmem:[#allocation2 + $0xb5] sm:$0xff] }
 0x130   : > { %1694 = vst.msk [vmem:[#allocation3 + $0x40] sm:$0xff] %vm1685_vm5, %v1594_v17  ;;  %1392 = vrot.lane.b32.xlu1 %v1304_v14, %s5292_s10  ;;  %v1741_v17 = vld [vmem:[#allocation2 + $0xbc] sm:$0xff] }
 0x131   : > { %1177 = vrot.lane.b32.xlu0 %v1088_v15, %s5291_s21 }
 0x132   : > { %v947_v21 = vpop.permute.xlu1 %946 }
 0x133   : > { %v732_v22 = vpop.permute.xlu0 %731  ;;  %1045 = vst.msk [vmem:[#allocation3 + $0x50] sm:$0xff] %vm1034_vm2, %v947_v21  ;;  %v1308_v21 = vld [vmem:[#allocation2 + $0xb3] sm:$0xff] }
 0x134   : > { %829 = vst.msk [vmem:[#allocation3 + $0x58] sm:$0xff] %vm817_vm1, %v732_v22  ;;  %2256 = vrot.lane.b32.xlu1 %v2170_v19, %s3910_s24  ;;  %v1092_v22 = vld [vmem:[#allocation2 + $0xba] sm:$0xff] }
 0x135   : > { %2041 = vrot.lane.b32.xlu0 %v1954_v20, %s3909_s27  ;;  %v587_v20 = vld [vmem:[#allocation2 + $0xb0] sm:$0xff] }
 0x136   : > { %v1811_v26 = vpop.permute.xlu1 %1810  ;;  %v2380_v28 = vld [vmem:[#allocation3 + $0x38] sm:$0xff]  ;;  %623 = vst.msk [vmem:[#allocation3 + $0xb0] sm:$0xff] %vm522_vm0, %v587_v20  ;;  %v4599_v20 = vld [vmem:[#allocation2 + $0xd2] sm:$0xff] }
 0x137   : > { %v1596_v27 = vpop.permute.xlu0 %1595  ;;  %1911 = vst.msk [vmem:[#allocation3 + $0x40] sm:$0xff] %vm1902_vm6, %v1811_v26  ;;  %3558 = vmatmul.mubr.f32.gmra.mrb[6].mxu0 %v2380_v28  ;;  %v2174_v26 = vld [vmem:[#allocation2 + $0xb6] sm:$0xff] }
 0x138   : > { %1695 = vst.msk [vmem:[#allocation3 + $0x48] sm:$0xff] %vm1685_vm5, %v1596_v27  ;;  %1394 = vrot.lane.b32.xlu1 %v1305_v24, %s5292_s10  ;;  %v1958_v27 = vld [vmem:[#allocation2 + $0xbd] sm:$0xff] }
 0x139   : > { %745 = vrot.lane.b32.xlu0 %v655_v25, %s3904_s30 }
 0x13a   : > { %v1164_v30 = vpop.permute.xlu1 %1163 }
 0x13b   : > { %v949_v31 = vpop.permute.xlu0 %948  ;;  %1262 = vst.msk [vmem:[#allocation3 + $0x50] sm:$0xff] %vm1251_vm3, %v1164_v30  ;;  %v588_v30 = vld [vmem:[#allocation2 + $0xb8] sm:$0xff] }
 0x13c   : > { %1046 = vst.msk [vmem:[#allocation3 + $0x58] sm:$0xff] %vm1034_vm2, %v949_v31  ;;  %2258 = vrot.lane.b32.xlu1 %v2171_v29, %s3910_s24  ;;  %v1309_v31 = vld [vmem:[#allocation2 + $0xbb] sm:$0xff] }
 0x13d   : > { %1609 = vrot.lane.b32.xlu0 %v4408_v1, %s5293_s17  ;;  %v2173_v1 = vld [vmem:[#allocation2 + $0xae] sm:$0xff]  ;;  %624 = vst.msk [vmem:[#allocation3 + $0xb8] sm:$0xff] %vm522_vm0, %v588_v30 }
 0x13e   : > { %v2028_v34 = vpop.permute.xlu1 %2027  ;;  %v1312_v30 = vld [vmem:[#allocation2 + $0xd3] sm:$0xff] }
 0x13f   : > { %v1813_v35 = vpop.permute.xlu0 %1812  ;;  %2128 = vst.msk [vmem:[#allocation3 + $0x40] sm:$0xff] %vm2119_vm7, %v2028_v34 }
 0x140   : > { %1912 = vst.msk [vmem:[#allocation3 + $0x48] sm:$0xff] %vm1902_vm6, %v1813_v35  ;;  %962 = vrot.lane.b32.xlu1 %v1087_v6, %s5294_s29 }
 0x141   : > { %747 = vrot.lane.b32.xlu0 %v656_v33, %s3904_s30 }
 0x142   : > { %v1381_v37 = vpop.permute.xlu1 %1380 }
 0x143   : > { %v1166_v38 = vpop.permute.xlu0 %1165  ;;  %1479 = vst.msk [vmem:[#allocation3 + $0x50] sm:$0xff] %vm1468_vm4, %v1381_v37 }
 0x144   : > { %1263 = vst.msk [vmem:[#allocation3 + $0x58] sm:$0xff] %vm1251_vm3, %v1166_v38  ;;  %1826 = vrot.lane.b32.xlu1 %v4453_v36, %s5295_s19 }
 0x145   : > { %1611 = vrot.lane.b32.xlu0 %v1737_v10, %s5293_s17 }
 0x146   : > { %v2245_v42 = vpop.permute.xlu1 %2244 }
 0x147   : > { %v2030_v43 = vpop.permute.xlu0 %2029  ;;  %2345 = vst.msk [vmem:[#allocation3 + $0x40] sm:$0xff] %vm2336_vm8, %v2245_v42 }
 0x148   : > { %2129 = vst.msk [vmem:[#allocation3 + $0x48] sm:$0xff] %vm2119_vm7, %v2030_v43  ;;  %1179 = vrot.lane.b32.xlu1 %v1089_v41, %s5291_s21  ;;  %v4543_v43 = vld [vmem:[#allocation2 + $0xc4] sm:$0xff] }
 0x149   : > { %964 = vrot.lane.b32.xlu0 %v1088_v15, %s5294_s29 }
 0x14a   : > { %v1383_v46 = vpop.permute.xlu1 %1382 }
 0x14b   : > { %v734_v47 = vpop.permute.xlu0 %733  ;;  %1480 = vst.msk [vmem:[#allocation3 + $0x58] sm:$0xff] %vm1468_vm4, %v1383_v46  ;;  %v4546_v46 = vld [vmem:[%s4068_s28 + $0x88] sm:$0xff]  }
 0x14c   : > { %830 = vst.msk [vmem:[#allocation3 + $0x60] sm:$0xff] %vm817_vm1, %v734_v47  ;;  %2043 = vrot.lane.b32.xlu1 %v1955_v44, %s3909_s27  ;;  %v3401_v47 = vunpack.c.l.bf16 %v4546_v46  ;;  %v3402_v11 = vunpack.c.h.bf16 %v4546_v46 }
 0x14d   : > { %1828 = vrot.lane.b32.xlu0 %v1739_v45, %s5295_s19 }
 0x14e   : > { %v2247_v51 = vpop.permute.xlu1 %2246  ;;  %v2381_v53 = vld [vmem:[#allocation3 + $0x40] sm:$0xff]  ;;  %557 = vst.msk [vmem:[#allocation2 + $0x110] sm:$0xff] %vm522_vm0, %v3401_v47  ;;  %558 = vst.msk [vmem:[#allocation2 + $0x118] sm:$0xff] %vm522_vm0, %v3402_v11 }
 0x14f   : > { %v1598_v52 = vpop.permute.xlu0 %1597  ;;  %2346 = vst.msk [vmem:[#allocation3 + $0x48] sm:$0xff] %vm2336_vm8, %v2247_v51  ;;  %3560 = vmatprep.mubr.f32.mxu0 %v2381_v53  ;;  %v1959_v51 = vld [vmem:[#allocation2 + $0xc5] sm:$0xff] }
 0x150   : > { %1696 = vst.msk [vmem:[#allocation3 + $0x50] sm:$0xff] %vm1685_vm5, %v1598_v52  ;;  %1396 = vrot.lane.b32.xlu1 %v1306_v49, %s5292_s10  ;;  %v1743_v52 = vld [vmem:[#allocation2 + $0xcc] sm:$0xff] }
 0x151   : > { %1181 = vrot.lane.b32.xlu0 %v1090_v50, %s5291_s21 }
 0x152   : > { %v951_v56 = vpop.permute.xlu1 %950 }
 0x153   : > { %v736_v57 = vpop.permute.xlu0 %735  ;;  %1047 = vst.msk [vmem:[#allocation3 + $0x60] sm:$0xff] %vm1034_vm2, %v951_v56  ;;  %v1310_v56 = vld [vmem:[#allocation2 + $0xc3] sm:$0xff] }
 0x154   : > { %831 = vst.msk [vmem:[#allocation3 + $0x68] sm:$0xff] %vm817_vm1, %v736_v57  ;;  %2260 = vrot.lane.b32.xlu1 %v2172_v54, %s3910_s24  ;;  %v1094_v57 = vld [vmem:[#allocation2 + $0xca] sm:$0xff] }
 0x155   : > { %2045 = vrot.lane.b32.xlu0 %v1956_v55, %s3909_s27  ;;  %v589_v55 = vld [vmem:[#allocation2 + $0xc0] sm:$0xff] }
 0x156   : > { %v1815_v61 = vpop.permute.xlu1 %1814  ;;  %v2382_v63 = vld [vmem:[#allocation3 + $0x48] sm:$0xff]  ;;  %625 = vst.msk [vmem:[#allocation3 + $0xc0] sm:$0xff] %vm522_vm0, %v589_v55  ;;  %v3429_v55 = vld [vmem:[%s4068_s28 + $0x98] sm:$0xff]  }
 0x157   : > { %v1600_v62 = vpop.permute.xlu0 %1599  ;;  %1913 = vst.msk [vmem:[#allocation3 + $0x50] sm:$0xff] %vm1902_vm6, %v1815_v61  ;;  %3561 = vmatmul.mubr.f32.gmra.mrb[8].mxu0 %v2382_v63  ;;  %v2176_v61 = vld [vmem:[#allocation2 + $0xc6] sm:$0xff] }
 0x158   : > { %1697 = vst.msk [vmem:[#allocation3 + $0x58] sm:$0xff] %vm1685_vm5, %v1600_v62  ;;  %1398 = vrot.lane.b32.xlu1 %v1307_v59, %s5292_s10  ;;  %v1960_v62 = vld [vmem:[#allocation2 + $0xcd] sm:$0xff] }
 0x159   : > { %749 = vrot.lane.b32.xlu0 %v657_v60, %s3904_s30 }
 0x15a   : > { %v1168_v2 = vpop.permute.xlu1 %1167 }
 0x15b   : > { %v953_v3 = vpop.permute.xlu0 %952  ;;  %1264 = vst.msk [vmem:[#allocation3 + $0x60] sm:$0xff] %vm1251_vm3, %v1168_v2  ;;  %v590_v2 = vld [vmem:[#allocation2 + $0xc8] sm:$0xff] }
 0x15c   : > { %1048 = vst.msk [vmem:[#allocation3 + $0x68] sm:$0xff] %vm1034_vm2, %v953_v3  ;;  %2262 = vrot.lane.b32.xlu1 %v2173_v1, %s3910_s24  ;;  %v1311_v3 = vld [vmem:[#allocation2 + $0xcb] sm:$0xff] }
 0x15d   : > { %1613 = vrot.lane.b32.xlu0 %v4453_v36, %s5293_s17  ;;  %v2175_v36 = vld [vmem:[#allocation2 + $0xbe] sm:$0xff]  ;;  %626 = vst.msk [vmem:[#allocation3 + $0xc8] sm:$0xff] %vm522_vm0, %v590_v2 }
 0x15e   : > { %v2032_v6 = vpop.permute.xlu1 %2031 }
 0x15f   : > { %v1817_v7 = vpop.permute.xlu0 %1816  ;;  %2130 = vst.msk [vmem:[#allocation3 + $0x50] sm:$0xff] %vm2119_vm7, %v2032_v6 }
 0x160   : > { %1914 = vst.msk [vmem:[#allocation3 + $0x58] sm:$0xff] %vm1902_vm6, %v1817_v7  ;;  %966 = vrot.lane.b32.xlu1 %v1089_v41, %s5294_s29 }
 0x161   : > { %751 = vrot.lane.b32.xlu0 %v658_v5, %s3904_s30 }
 0x162   : > { %v1385_v9 = vpop.permute.xlu1 %1384 }
 0x163   : > { %v1170_v10 = vpop.permute.xlu0 %1169  ;;  %1481 = vst.msk [vmem:[#allocation3 + $0x60] sm:$0xff] %vm1468_vm4, %v1385_v9 }
 0x164   : > { %1265 = vst.msk [vmem:[#allocation3 + $0x68] sm:$0xff] %vm1251_vm3, %v1170_v10  ;;  %1830 = vrot.lane.b32.xlu1 %v4498_v8, %s5295_s19 }
 0x165   : > { %1615 = vrot.lane.b32.xlu0 %v1739_v45, %s5293_s17 }
 0x166   : > { %v2249_v14 = vpop.permute.xlu1 %2248 }
 0x167   : > { %v2034_v15 = vpop.permute.xlu0 %2033  ;;  %2347 = vst.msk [vmem:[#allocation3 + $0x50] sm:$0xff] %vm2336_vm8, %v2249_v14 }
 0x168   : > { %2131 = vst.msk [vmem:[#allocation3 + $0x58] sm:$0xff] %vm2119_vm7, %v2034_v15  ;;  %1183 = vrot.lane.b32.xlu1 %v1091_v13, %s5291_s21  ;;  %v4588_v15 = vld [vmem:[#allocation2 + $0xd4] sm:$0xff] }
 0x169   : > { %968 = vrot.lane.b32.xlu0 %v1090_v50, %s5294_s29 }
 0x16a   : > { %v1387_v18 = vpop.permute.xlu1 %1386 }
 0x16b   : > { %v738_v19 = vpop.permute.xlu0 %737  ;;  %1482 = vst.msk [vmem:[#allocation3 + $0x68] sm:$0xff] %vm1468_vm4, %v1387_v18  ;;  %v4591_v18 = vld [vmem:[%s4068_s28 + $0x90] sm:$0xff]  }
 0x16c   : > { %832 = vst.msk [vmem:[#allocation3 + $0x70] sm:$0xff] %vm817_vm1, %v738_v19  ;;  %2047 = vrot.lane.b32.xlu1 %v1957_v16, %s3909_s27  ;;  %v3405_v19 = vunpack.c.l.bf16 %v4591_v18 }
 0x16d   : > { %1832 = vrot.lane.b32.xlu0 %v1741_v17, %s5295_s19 }
 0x16e   : > { %v2251_v23 = vpop.permute.xlu1 %2250  ;;  %v2383_v25 = vld [vmem:[#allocation3 + $0x50] sm:$0xff]  ;;  %559 = vst.msk [vmem:[#allocation2 + $0x120] sm:$0xff] %vm522_vm0, %v3405_v19  ;;  %v480_v19 = vld [vmem:[%s4068_s28 + $0xa0] sm:$0x7] }
 0x16f   : > { %v1602_v24 = vpop.permute.xlu0 %1601  ;;  %2348 = vst.msk [vmem:[#allocation3 + $0x58] sm:$0xff] %vm2336_vm8, %v2251_v23  ;;  %3563 = vmatprep.mubr.f32.mxu0 %v2383_v25  ;;  %v1961_v23 = vld [vmem:[#allocation2 + $0xd5] sm:$0xff] }
 0x170   : > { %1698 = vst.msk [vmem:[#allocation3 + $0x60] sm:$0xff] %vm1685_vm5, %v1602_v24  ;;  %1400 = vrot.lane.b32.xlu1 %v1308_v21, %s5292_s10  ;;  %v4607_v24 = vld [vmem:[#allocation2 + $0xdc] sm:$0xff] }
 0x171   : > { %1185 = vrot.lane.b32.xlu0 %v1092_v22, %s5291_s21 }
 0x172   : > { %v955_v28 = vpop.permute.xlu1 %954 }
 0x173   : > { %v740_v29 = vpop.permute.xlu0 %739  ;;  %1049 = vst.msk [vmem:[#allocation3 + $0x70] sm:$0xff] %vm1034_vm2, %v955_v28 }
 0x174   : > { %833 = vst.msk [vmem:[#allocation3 + $0x78] sm:$0xff] %vm817_vm1, %v740_v29  ;;  %2264 = vrot.lane.b32.xlu1 %v2174_v26, %s3910_s24 }
 0x175   : > { %2049 = vrot.lane.b32.xlu0 %v1958_v27, %s3909_s27  ;;  %v591_v27 = vld [vmem:[#allocation2 + $0xd0] sm:$0xff] }
 0x176   : > { %v1819_v33 = vpop.permute.xlu1 %1818  ;;  %v2384_v35 = vld [vmem:[#allocation3 + $0x58] sm:$0xff]  ;;  %627 = vst.msk [vmem:[#allocation3 + $0xd0] sm:$0xff] %vm522_vm0, %v591_v27 }
 0x177   : > { %v1604_v34 = vpop.permute.xlu0 %1603  ;;  %1915 = vst.msk [vmem:[#allocation3 + $0x60] sm:$0xff] %vm1902_vm6, %v1819_v33  ;;  %3564 = vmatmul.mubr.f32.gmra.mrb[10].mxu0 %v2384_v35  ;;  %v2178_v35 = vld [vmem:[#allocation2 + $0xd6] sm:$0xff] }
 0x178   : > { %1699 = vst.msk [vmem:[#allocation3 + $0x68] sm:$0xff] %vm1685_vm5, %v1604_v34  ;;  %1402 = vrot.lane.b32.xlu1 %v1309_v31, %s5292_s10  ;;  %v1096_v31 = vld [vmem:[#allocation2 + $0xda] sm:$0xff] }
 0x179   : > { %753 = vrot.lane.b32.xlu0 %v659_v32, %s3904_s30 }
 0x17a   : > { %v1172_v37 = vpop.permute.xlu1 %1171 }
 0x17b   : > { %v957_v38 = vpop.permute.xlu0 %956  ;;  %1266 = vst.msk [vmem:[#allocation3 + $0x70] sm:$0xff] %vm1251_vm3, %v1172_v37 }
 0x17c   : > { %1050 = vst.msk [vmem:[#allocation3 + $0x78] sm:$0xff] %vm1034_vm2, %v957_v38  ;;  %2266 = vrot.lane.b32.xlu1 %v2175_v36, %s3910_s24  ;;  %v1962_v36 = vld [vmem:[#allocation2 + $0xdd] sm:$0xff] }
 0x17d   : > { %1617 = vrot.lane.b32.xlu0 %v4498_v8, %s5293_s17  ;;  %v2177_v8 = vld [vmem:[#allocation2 + $0xce] sm:$0xff] }
 0x17e   : > { %v2036_v41 = vpop.permute.xlu1 %2035 }
 0x17f   : > { %v1821_v42 = vpop.permute.xlu0 %1820  ;;  %2132 = vst.msk [vmem:[#allocation3 + $0x60] sm:$0xff] %vm2119_vm7, %v2036_v41  ;;  %v663_v41 = vld [vmem:[#allocation2 + $0xd1] sm:$0xff] }
 0x180   : > { %1916 = vst.msk [vmem:[#allocation3 + $0x68] sm:$0xff] %vm1902_vm6, %v1821_v42  ;;  %970 = vrot.lane.b32.xlu1 %v1091_v13, %s5294_s29 }
 0x181   : > { %755 = vrot.lane.b32.xlu0 %v660_v40, %s3904_s30  ;;  %v1313_v40 = vld [vmem:[#allocation2 + $0xdb] sm:$0xff] }
 0x182   : > { %v1389_v44 = vpop.permute.xlu1 %1388 }
 0x183   : > { %v1174_v45 = vpop.permute.xlu0 %1173  ;;  %1483 = vst.msk [vmem:[#allocation3 + $0x70] sm:$0xff] %vm1468_vm4, %v1389_v44 }
 0x184   : > { %1267 = vst.msk [vmem:[#allocation3 + $0x78] sm:$0xff] %vm1251_vm3, %v1174_v45  ;;  %1834 = vrot.lane.b32.xlu1 %v4543_v43, %s5295_s19  ;;  %v2179_v45 = vld [vmem:[#allocation2 + $0xde] sm:$0xff] }
 0x185   : > { %1619 = vrot.lane.b32.xlu0 %v1741_v17, %s5293_s17 }
 0x186   : > { %v2253_v49 = vpop.permute.xlu1 %2252 }
 0x187   : > { %v2038_v50 = vpop.permute.xlu0 %2037  ;;  %2349 = vst.msk [vmem:[#allocation3 + $0x60] sm:$0xff] %vm2336_vm8, %v2253_v49  ;;  %v664_v49 = vld [vmem:[#allocation2 + $0xd9] sm:$0xff] }
 0x188   : > { %2133 = vst.msk [vmem:[#allocation3 + $0x68] sm:$0xff] %vm2119_vm7, %v2038_v50  ;;  %1187 = vrot.lane.b32.xlu1 %v1093_v48, %s5291_s21 }
 0x189   : > { %972 = vrot.lane.b32.xlu0 %v1092_v22, %s5294_s29 }
 0x18a   : > { %v1391_v53 = vpop.permute.xlu1 %1390 }
 0x18b   : > { %v742_v54 = vpop.permute.xlu0 %741  ;;  %1484 = vst.msk [vmem:[#allocation3 + $0x78] sm:$0xff] %vm1468_vm4, %v1391_v53 }
 0x18c   : > { %834 = vst.msk [vmem:[#allocation3 + $0x80] sm:$0xff] %vm817_vm1, %v742_v54  ;;  %2051 = vrot.lane.b32.xlu1 %v1959_v51, %s3909_s27 }
 0x18d   : > { %1836 = vrot.lane.b32.xlu0 %v1743_v52, %s5295_s19 }
 0x18e   : > { %v2255_v58 = vpop.permute.xlu1 %2254  ;;  %v2385_v60 = vld [vmem:[#allocation3 + $0x60] sm:$0xff] }
 0x18f   : > { %v1606_v59 = vpop.permute.xlu0 %1605  ;;  %2350 = vst.msk [vmem:[#allocation3 + $0x68] sm:$0xff] %vm2336_vm8, %v2255_v58  ;;  %3566 = vmatprep.mubr.f32.mxu0 %v2385_v60  ;;  %v1963_v60 = vld [vmem:[#allocation2 + $0xe5] sm:$0xff] }
 0x190   : > { %1700 = vst.msk [vmem:[#allocation3 + $0x70] sm:$0xff] %vm1685_vm5, %v1606_v59  ;;  %1404 = vrot.lane.b32.xlu1 %v1310_v56, %s5292_s10  ;;  %v3409_v56 = vunpack.c.l.bf16 %v3429_v55 }
 0x191   : > { %1189 = vrot.lane.b32.xlu0 %v1094_v57, %s5291_s21 }
 0x192   : > { %v959_v63 = vpop.permute.xlu1 %958  ;;  %561 = vst.msk [vmem:[#allocation2 + $0x130] sm:$0xff] %vm522_vm0, %v3409_v56 }
 0x193   : > { %v744_v1 = vpop.permute.xlu0 %743  ;;  %1051 = vst.msk [vmem:[#allocation3 + $0x80] sm:$0xff] %vm1034_vm2, %v959_v63 }
 0x194   : > { %835 = vst.msk [vmem:[#allocation3 + $0x88] sm:$0xff] %vm817_vm1, %v744_v1  ;;  %2268 = vrot.lane.b32.xlu1 %v2176_v61, %s3910_s24  ;;  %v4661_v61 = vld [vmem:[#allocation2 + $0xec] sm:$0xff]  ;;  %v593_v1 = vld [vmem:[#allocation2 + $0xe0] sm:$0xff] }
 0x195   : > { %2053 = vrot.lane.b32.xlu0 %v1960_v62, %s3909_s27  ;;  %629 = vst.msk [vmem:[#allocation3 + $0xe0] sm:$0xff] %vm522_vm0, %v593_v1 }
 0x196   : > { %v1823_v5 = vpop.permute.xlu1 %1822  ;;  %v2386_v7 = vld [vmem:[#allocation3 + $0x68] sm:$0xff] }
 0x197   : > { %v1608_v6 = vpop.permute.xlu0 %1607  ;;  %1917 = vst.msk [vmem:[#allocation3 + $0x70] sm:$0xff] %vm1902_vm6, %v1823_v5  ;;  %3567 = vmatmul.mubr.f32.gmra.mrb[12].mxu0 %v2386_v7  ;;  %v1098_v5 = vld [vmem:[#allocation2 + $0xea] sm:$0xff] }
 0x198   : > { %1701 = vst.msk [vmem:[#allocation3 + $0x78] sm:$0xff] %vm1685_vm5, %v1608_v6  ;;  %1406 = vrot.lane.b32.xlu1 %v1311_v3, %s5292_s10 }
 0x199   : > { %757 = vrot.lane.b32.xlu0 %v661_v4, %s3904_s30  ;;  %v1314_v4 = vld [vmem:[#allocation2 + $0xe3] sm:$0xff] }
 0x19a   : > { %v1176_v9 = vpop.permute.xlu1 %1175 }
 0x19b   : > { %v961_v10 = vpop.permute.xlu0 %960  ;;  %1268 = vst.msk [vmem:[#allocation3 + $0x80] sm:$0xff] %vm1251_vm3, %v1176_v9  ;;  %v2180_v9 = vld [vmem:[#allocation2 + $0xe6] sm:$0xff] }
 0x19c   : > { %1052 = vst.msk [vmem:[#allocation3 + $0x88] sm:$0xff] %vm1034_vm2, %v961_v10  ;;  %2270 = vrot.lane.b32.xlu1 %v2177_v8, %s3910_s24  ;;  %v1964_v10 = vld [vmem:[#allocation2 + $0xed] sm:$0xff] }
 0x19d   : > { %1621 = vrot.lane.b32.xlu0 %v4543_v43, %s5293_s17 }
 0x19e   : > { %v2040_v13 = vpop.permute.xlu1 %2039 }
 0x19f   : > { %v1825_v14 = vpop.permute.xlu0 %1824  ;;  %2134 = vst.msk [vmem:[#allocation3 + $0x70] sm:$0xff] %vm2119_vm7, %v2040_v13  ;;  %v594_v13 = vld [vmem:[#allocation2 + $0xe8] sm:$0xff] }
 0x1a0   : > { %1918 = vst.msk [vmem:[#allocation3 + $0x78] sm:$0xff] %vm1902_vm6, %v1825_v14  ;;  %974 = vrot.lane.b32.xlu1 %v1093_v48, %s5294_s29  ;;  %v3406_v48 = vunpack.c.h.bf16 %v4591_v18  ;;  %v1315_v14 = vld [vmem:[#allocation2 + $0xeb] sm:$0xff] }
 0x1a1   : > { %759 = vrot.lane.b32.xlu0 %v662_v12, %s3904_s30  ;;  %630 = vst.msk [vmem:[#allocation3 + $0xe8] sm:$0xff] %vm522_vm0, %v594_v13 }
 0x1a2   : > { %v1393_v16 = vpop.permute.xlu1 %1392  ;;  %560 = vst.msk [vmem:[#allocation2 + $0x128] sm:$0xff] %vm522_vm0, %v3406_v48 }
 0x1a3   : > { %v1178_v17 = vpop.permute.xlu0 %1177  ;;  %1485 = vst.msk [vmem:[#allocation3 + $0x80] sm:$0xff] %vm1468_vm4, %v1393_v16 }
 0x1a4   : > { %1269 = vst.msk [vmem:[#allocation3 + $0x88] sm:$0xff] %vm1251_vm3, %v1178_v17  ;;  %1838 = vrot.lane.b32.xlu1 %v4588_v15, %s5295_s19 }
 0x1a5   : > { %1623 = vrot.lane.b32.xlu0 %v1743_v52, %s5293_s17  ;;  %v4644_v52 = vld [vmem:[#allocation2 + $0xe4] sm:$0xff] }
 0x1a6   : > { %v2257_v21 = vpop.permute.xlu1 %2256 }
 0x1a7   : > { %v2042_v22 = vpop.permute.xlu0 %2041  ;;  %2351 = vst.msk [vmem:[#allocation3 + $0x70] sm:$0xff] %vm2336_vm8, %v2257_v21  ;;  %v521_v21 = vunpack.c.l.bf16 %v480_v19 }
 0x1a8   : > { %2135 = vst.msk [vmem:[#allocation3 + $0x78] sm:$0xff] %vm2119_vm7, %v2042_v22  ;;  %1191 = vrot.lane.b32.xlu1 %v4599_v20, %s5291_s21  ;;  %v2181_v22 = vld [vmem:[#allocation2 + $0xee] sm:$0xff] }
 0x1a9   : > { %976 = vrot.lane.b32.xlu0 %v1094_v57, %s5294_s29  ;;  %v4653_v57 = vld [vmem:[#allocation2 + $0xe2] sm:$0xff]  ;;  %564 = vst.msk [vmem:[#allocation2 + $0x140] sm:$0x3f] %vm563_vm9, %v521_v21 }
 0x1aa   : > { %v1395_v25 = vpop.permute.xlu1 %1394  ;;  %v4611_v28 = vpop.f32.mrb[0].mxu0 }
 0x1ab   : > { %v746_v26 = vpop.permute.xlu0 %745  ;;  %1486 = vst.msk [vmem:[#allocation3 + $0x88] sm:$0xff] %vm1468_vm4, %v1395_v25  ;;  %v4614_v29 = vpop.f32.mrb[1].mxu0  ;;  %v666_v25 = vld [vmem:[#allocation2 + $0xe9] sm:$0xff] }
 0x1ac   : > { %836 = vst.msk [vmem:[#allocation3 + $0x90] sm:$0xff] %vm817_vm1, %v746_v26  ;;  %2055 = vrot.lane.b32.xlu1 %v1961_v23, %s3909_s27 }
 0x1ad   : > { %1840 = vrot.lane.b32.xlu0 %v4607_v24, %s5295_s19 }
 0x1ae   : > { %v2259_v32 = vpop.permute.xlu1 %2258  ;;  %v2387_v34 = vld [vmem:[#allocation3 + $0x70] sm:$0xff] }
 0x1af   : > { %v1610_v33 = vpop.permute.xlu0 %1609  ;;  %2352 = vst.msk [vmem:[#allocation3 + $0x78] sm:$0xff] %vm2336_vm8, %v2259_v32  ;;  %3569 = vmatprep.mubr.f32.mxu0 %v2387_v34 }
 0x1b0   : > { %1702 = vst.msk [vmem:[#allocation3 + $0x80] sm:$0xff] %vm1685_vm5, %v1610_v33  ;;  %1408 = vrot.lane.b32.xlu1 %v1312_v30, %s5292_s10  ;;  %v4698_v30 = vld [vmem:[#allocation2 + $0xf4] sm:$0xff] }
 0x1b1   : > { %1193 = vrot.lane.b32.xlu0 %v1096_v31, %s5291_s21  ;;  %v4706_v33 = vld [vmem:[#allocation2 + $0xf2] sm:$0xff] }
 0x1b2   : > { %v963_v37 = vpop.permute.xlu1 %962 }
 0x1b3   : > { %v748_v38 = vpop.permute.xlu0 %747  ;;  %1053 = vst.msk [vmem:[#allocation3 + $0x90] sm:$0xff] %vm1034_vm2, %v963_v37  ;;  %v4713_v37 = vld [vmem:[#allocation2 + $0xfc] sm:$0xff] }
 0x1b4   : > { %837 = vst.msk [vmem:[#allocation3 + $0x98] sm:$0xff] %vm817_vm1, %v748_v38  ;;  %2272 = vrot.lane.b32.xlu1 %v2178_v35, %s3910_s24 }
 0x1b5   : > { %2057 = vrot.lane.b32.xlu0 %v1962_v36, %s3909_s27  ;;  %v1965_v36 = vld [vmem:[#allocation2 + $0xf5] sm:$0xff] }
 0x1b6   : > { %v1827_v42 = vpop.permute.xlu1 %1826  ;;  %v2388_v44 = vld [vmem:[#allocation3 + $0x78] sm:$0xff] }
 0x1b7   : > { %v1612_v43 = vpop.permute.xlu0 %1611  ;;  %1919 = vst.msk [vmem:[#allocation3 + $0x80] sm:$0xff] %vm1902_vm6, %v1827_v42  ;;  %3570 = vmatmul.mubr.f32.gmra.mrb[14].mxu0 %v2388_v44  ;;  %v1100_v44 = vld [vmem:[#allocation2 + $0xfa] sm:$0xff] }
 0x1b8   : > { %1703 = vst.msk [vmem:[#allocation3 + $0x88] sm:$0xff] %vm1685_vm5, %v1612_v43  ;;  %1410 = vrot.lane.b32.xlu1 %v1313_v40, %s5292_s10  ;;  %v595_v40 = vld [vmem:[#allocation2 + $0xf0] sm:$0xff] }
 0x1b9   : > { %761 = vrot.lane.b32.xlu0 %v663_v41, %s3904_s30  ;;  %631 = vst.msk [vmem:[#allocation3 + $0xf0] sm:$0xff] %vm522_vm0, %v595_v40  ;;  %v1316_v43 = vld [vmem:[#allocation2 + $0xf3] sm:$0xff] }
 0x1ba   : > { %v1180_v46 = vpop.permute.xlu1 %1179  ;;  %v1752_v40 = vld [vmem:[#allocation2 + $0x114] sm:$0xff] }
 0x1bb   : > { %v965_v47 = vpop.permute.xlu0 %964  ;;  %1270 = vst.msk [vmem:[#allocation3 + $0x90] sm:$0xff] %vm1251_vm3, %v1180_v46 }
 0x1bc   : > { %1054 = vst.msk [vmem:[#allocation3 + $0x98] sm:$0xff] %vm1034_vm2, %v965_v47  ;;  %2274 = vrot.lane.b32.xlu1 %v2179_v45, %s3910_s24  ;;  %v3911_v45 = vmov 0  }
 0x1bd   : > { %1625 = vrot.lane.b32.xlu0 %v4588_v15, %s5293_s17  ;;  %v665_v15 = vld [vmem:[#allocation2 + $0xe1] sm:$0xff]  ;;  %3821 = vset.pattern.permute.xlu1 %v3911_v45 }
 0x1be   : > { %v2044_v50 = vpop.permute.xlu1 %2043  ;;  %3820 = vset.pattern.permute.xlu0 %v3911_v45  ;;  %v1103_v45 = vld [vmem:[#allocation2 + $0x112] sm:$0xff] }
 0x1bf   : > { %v1829_v51 = vpop.permute.xlu0 %1828  ;;  %2136 = vst.msk [vmem:[#allocation3 + $0x80] sm:$0xff] %vm2119_vm7, %v2044_v50  ;;  %v1966_v50 = vld [vmem:[#allocation2 + $0xfd] sm:$0xff] }
 0x1c0   : > { %1920 = vst.msk [vmem:[#allocation3 + $0x88] sm:$0xff] %vm1902_vm6, %v1829_v51  ;;  %978 = vrot.lane.b32.xlu1 %v4599_v20, %s5294_s29  ;;  %v3410_v20 = vunpack.c.h.bf16 %v3429_v55  ;;  %v667_v55 = vld [vmem:[#allocation2 + $0xf1] sm:$0xff] }
 0x1c1   : > { %763 = vrot.lane.b32.xlu0 %v664_v49, %s3904_s30  ;;  %v2182_v49 = vld [vmem:[#allocation2 + $0xf6] sm:$0xff] }
 0x1c2   : > { %v1397_v53 = vpop.permute.xlu1 %1396  ;;  %562 = vst.msk [vmem:[#allocation2 + $0x138] sm:$0xff] %vm522_vm0, %v3410_v20 }
 0x1c3   : > { %v1182_v54 = vpop.permute.xlu0 %1181  ;;  %1487 = vst.msk [vmem:[#allocation3 + $0x90] sm:$0xff] %vm1468_vm4, %v1397_v53  ;;  %v596_v53 = vld [vmem:[#allocation2 + $0xf8] sm:$0xff] }
 0x1c4   : > { %1271 = vst.msk [vmem:[#allocation3 + $0x98] sm:$0xff] %vm1251_vm3, %v1182_v54  ;;  %1842 = vrot.lane.b32.xlu1 %v4644_v52, %s5295_s19  ;;  %v1317_v54 = vld [vmem:[#allocation2 + $0xfb] sm:$0xff] }
 0x1c5   : > { %1627 = vrot.lane.b32.xlu0 %v4607_v24, %s5293_s17  ;;  %632 = vst.msk [vmem:[#allocation3 + $0xf8] sm:$0xff] %vm522_vm0, %v596_v53 }
 0x1c6   : > { %v2261_v58 = vpop.permute.xlu1 %2260 }
 0x1c7   : > { %v2046_v59 = vpop.permute.xlu0 %2045  ;;  %2353 = vst.msk [vmem:[#allocation3 + $0x80] sm:$0xff] %vm2336_vm8, %v2261_v58 }
 0x1c8   : > { %2137 = vst.msk [vmem:[#allocation3 + $0x88] sm:$0xff] %vm2119_vm7, %v2046_v59  ;;  %1195 = vrot.lane.b32.xlu1 %v4653_v57, %s5291_s21  ;;  %v2183_v59 = vld [vmem:[#allocation2 + $0xfe] sm:$0xff] }
 0x1c9   : > { %980 = vrot.lane.b32.xlu0 %v1096_v31, %s5294_s29 }
 0x1ca   : > { %v1399_v62 = vpop.permute.xlu1 %1398  ;;  %v4665_v2 = vpop.f32.mrb[2].mxu0 }
 0x1cb   : > { %v750_v63 = vpop.permute.xlu0 %749  ;;  %1488 = vst.msk [vmem:[#allocation3 + $0x98] sm:$0xff] %vm1468_vm4, %v1399_v62  ;;  %v4668_v3 = vpop.f32.mrb[3].mxu0  ;;  %v668_v62 = vld [vmem:[#allocation2 + $0xf9] sm:$0xff] }
 0x1cc   : > { %838 = vst.msk [vmem:[#allocation3 + $0xa0] sm:$0xff] %vm817_vm1, %v750_v63  ;;  %2059 = vrot.lane.b32.xlu1 %v1963_v60, %s3909_s27 }
 0x1cd   : > { %1844 = vrot.lane.b32.xlu0 %v4661_v61, %s5295_s19 }
 0x1ce   : > { %v2263_v6 = vpop.permute.xlu1 %2262  ;;  %v2389_v8 = vld [vmem:[#allocation3 + $0x80] sm:$0xff] }
 0x1cf   : > { %v1614_v7 = vpop.permute.xlu0 %1613  ;;  %2354 = vst.msk [vmem:[#allocation3 + $0x88] sm:$0xff] %vm2336_vm8, %v2263_v6  ;;  %3572 = vmatprep.mubr.f32.mxu0 %v2389_v8 }
 0x1d0   : > { %1704 = vst.msk [vmem:[#allocation3 + $0x90] sm:$0xff] %vm1685_vm5, %v1614_v7  ;;  %1412 = vrot.lane.b32.xlu1 %v1314_v4, %s5292_s10  ;;  %v1750_v4 = vld [vmem:[#allocation2 + $0x104] sm:$0xff] }
 0x1d1   : > { %1197 = vrot.lane.b32.xlu0 %v1098_v5, %s5291_s21  ;;  %v1101_v7 = vld [vmem:[#allocation2 + $0x102] sm:$0xff] }
 0x1d2   : > { %v967_v11 = vpop.permute.xlu1 %966 }
 0x1d3   : > { %v752_v12 = vpop.permute.xlu0 %751  ;;  %1055 = vst.msk [vmem:[#allocation3 + $0xa0] sm:$0xff] %vm1034_vm2, %v967_v11  ;;  %v1751_v11 = vld [vmem:[#allocation2 + $0x10c] sm:$0xff] }
 0x1d4   : > { %839 = vst.msk [vmem:[#allocation3 + $0xa8] sm:$0xff] %vm817_vm1, %v752_v12  ;;  %2276 = vrot.lane.b32.xlu1 %v2180_v9, %s3910_s24 }
 0x1d5   : > { %2061 = vrot.lane.b32.xlu0 %v1964_v10, %s3909_s27  ;;  %v1967_v10 = vld [vmem:[#allocation2 + $0x105] sm:$0xff] }
 0x1d6   : > { %v1831_v16 = vpop.permute.xlu1 %1830  ;;  %v2390_v18 = vld [vmem:[#allocation3 + $0x88] sm:$0xff] }
 0x1d7   : > { %v1616_v17 = vpop.permute.xlu0 %1615  ;;  %1921 = vst.msk [vmem:[#allocation3 + $0x90] sm:$0xff] %vm1902_vm6, %v1831_v16  ;;  %3573 = vmatmul.mubr.f32.gmra.mrb[16].mxu0 %v2390_v18  ;;  %v1102_v18 = vld [vmem:[#allocation2 + $0x10a] sm:$0xff] }
 0x1d8   : > { %1705 = vst.msk [vmem:[#allocation3 + $0x98] sm:$0xff] %vm1685_vm5, %v1616_v17  ;;  %1414 = vrot.lane.b32.xlu1 %v1315_v14, %s5292_s10  ;;  %v597_v14 = vld [vmem:[#allocation2 + $0x100] sm:$0xff] }
 0x1d9   : > { %765 = vrot.lane.b32.xlu0 %v665_v15, %s3904_s30  ;;  %633 = vst.msk [vmem:[#allocation3 + $0x100] sm:$0xff] %vm522_vm0, %v597_v14  ;;  %v1318_v17 = vld [vmem:[#allocation2 + $0x103] sm:$0xff] }
 0x1da   : > { %v1184_v23 = vpop.permute.xlu1 %1183 }
 0x1db   : > { %v969_v24 = vpop.permute.xlu0 %968  ;;  %1272 = vst.msk [vmem:[#allocation3 + $0xa0] sm:$0xff] %vm1251_vm3, %v1184_v23  ;;  %v1968_v23 = vld [vmem:[#allocation2 + $0x10d] sm:$0xff] }
 0x1dc   : > { %1056 = vst.msk [vmem:[#allocation3 + $0xa8] sm:$0xff] %vm1034_vm2, %v969_v24  ;;  %2278 = vrot.lane.b32.xlu1 %v2181_v22, %s3910_s24  ;;  %v2184_v22 = vld [vmem:[#allocation2 + $0x106] sm:$0xff] }
 0x1dd   : > { %1629 = vrot.lane.b32.xlu0 %v4644_v52, %s5293_s17 }
 0x1de   : > { %v2048_v26 = vpop.permute.xlu1 %2047 }
 0x1df   : > { %v1833_v27 = vpop.permute.xlu0 %1832  ;;  %2138 = vst.msk [vmem:[#allocation3 + $0x90] sm:$0xff] %vm2119_vm7, %v2048_v26  ;;  %v598_v26 = vld [vmem:[#allocation2 + $0x108] sm:$0xff] }
 0x1e0   : > { %1922 = vst.msk [vmem:[#allocation3 + $0x98] sm:$0xff] %vm1902_vm6, %v1833_v27  ;;  %982 = vrot.lane.b32.xlu1 %v4653_v57, %s5294_s29  ;;  %v1319_v27 = vld [vmem:[#allocation2 + $0x10b] sm:$0xff] }
 0x1e1   : > { %767 = vrot.lane.b32.xlu0 %v666_v25, %s3904_s30  ;;  %634 = vst.msk [vmem:[#allocation3 + $0x108] sm:$0xff] %vm522_vm0, %v598_v26 }
 0x1e2   : > { %v1401_v31 = vpop.permute.xlu1 %1400 }
 0x1e3   : > { %v1186_v32 = vpop.permute.xlu0 %1185  ;;  %1489 = vst.msk [vmem:[#allocation3 + $0xa0] sm:$0xff] %vm1468_vm4, %v1401_v31 }
 0x1e4   : > { %1273 = vst.msk [vmem:[#allocation3 + $0xa8] sm:$0xff] %vm1251_vm3, %v1186_v32  ;;  %1846 = vrot.lane.b32.xlu1 %v4698_v30, %s5295_s19 }
 0x1e5   : > { %1631 = vrot.lane.b32.xlu0 %v4661_v61, %s5293_s17 }
 0x1e6   : > { %v2265_v34 = vpop.permute.xlu1 %2264 }
 0x1e7   : > { %v2050_v35 = vpop.permute.xlu0 %2049  ;;  %2355 = vst.msk [vmem:[#allocation3 + $0x90] sm:$0xff] %vm2336_vm8, %v2265_v34  ;;  %v2185_v34 = vld [vmem:[#allocation2 + $0x10e] sm:$0xff] }
 0x1e8   : > { %2139 = vst.msk [vmem:[#allocation3 + $0x98] sm:$0xff] %vm2119_vm7, %v2050_v35  ;;  %1199 = vrot.lane.b32.xlu1 %v4706_v33, %s5291_s21 }
 0x1e9   : > { %984 = vrot.lane.b32.xlu0 %v1098_v5, %s5294_s29 }
 0x1ea   : > { %v1403_v38 = vpop.permute.xlu1 %1402  ;;  %v4717_v41 = vpop.f32.mrb[4].mxu0 }
 0x1eb   : > { %v754_v39 = vpop.permute.xlu0 %753  ;;  %1490 = vst.msk [vmem:[#allocation3 + $0xa8] sm:$0xff] %vm1468_vm4, %v1403_v38  ;;  %v4720_v42 = vpop.f32.mrb[5].mxu0 }
 0x1ec   : > { %840 = vst.msk [vmem:[#allocation3 + $0xb0] sm:$0xff] %vm817_vm1, %v754_v39  ;;  %2063 = vrot.lane.b32.xlu1 %v1965_v36, %s3909_s27 }
 0x1ed   : > { %1848 = vrot.lane.b32.xlu0 %v4713_v37, %s5295_s19 }
 0x1ee   : > { %v2267_v46 = vpop.permute.xlu1 %2266  ;;  %v2391_v48 = vld [vmem:[#allocation3 + $0x90] sm:$0xff] }
 0x1ef   : > { %v1618_v47 = vpop.permute.xlu0 %1617  ;;  %2356 = vst.msk [vmem:[#allocation3 + $0x98] sm:$0xff] %vm2336_vm8, %v2267_v46  ;;  %3575 = vmatprep.mubr.f32.mxu0 %v2391_v48  ;;  %v1969_v48 = vld [vmem:[#allocation2 + $0x115] sm:$0xff] }
 0x1f0   : > { %1706 = vst.msk [vmem:[#allocation3 + $0xa0] sm:$0xff] %vm1685_vm5, %v1618_v47  ;;  %1416 = vrot.lane.b32.xlu1 %v1316_v43, %s5292_s10 }
 0x1f1   : > { %1201 = vrot.lane.b32.xlu0 %v1100_v44, %s5291_s21 }
 0x1f2   : > { %v971_v51 = vpop.permute.xlu1 %970 }
 0x1f3   : > { %v756_v52 = vpop.permute.xlu0 %755  ;;  %1057 = vst.msk [vmem:[#allocation3 + $0xb0] sm:$0xff] %vm1034_vm2, %v971_v51 }
 0x1f4   : > { %841 = vst.msk [vmem:[#allocation3 + $0xb8] sm:$0xff] %vm817_vm1, %v756_v52  ;;  %2280 = vrot.lane.b32.xlu1 %v2182_v49, %s3910_s24  ;;  %v1753_v49 = vld [vmem:[#allocation2 + $0x11c] sm:$0xff]  ;;  %v599_v52 = vld [vmem:[#allocation2 + $0x110] sm:$0xff] }
 0x1f5   : > { %2065 = vrot.lane.b32.xlu0 %v1966_v50, %s3909_s27  ;;  %635 = vst.msk [vmem:[#allocation3 + $0x110] sm:$0xff] %vm522_vm0, %v599_v52 }
 0x1f6   : > { %v1835_v56 = vpop.permute.xlu1 %1834  ;;  %v2392_v58 = vld [vmem:[#allocation3 + $0x98] sm:$0xff] }
 0x1f7   : > { %v1620_v57 = vpop.permute.xlu0 %1619  ;;  %1923 = vst.msk [vmem:[#allocation3 + $0xa0] sm:$0xff] %vm1902_vm6, %v1835_v56  ;;  %3576 = vmatmul.mubr.f32.gmra.mrb[18].mxu0 %v2392_v58  ;;  %v1104_v56 = vld [vmem:[#allocation2 + $0x11a] sm:$0xff] }
 0x1f8   : > { %1707 = vst.msk [vmem:[#allocation3 + $0xa8] sm:$0xff] %vm1685_vm5, %v1620_v57  ;;  %1418 = vrot.lane.b32.xlu1 %v1317_v54, %s5292_s10 }
 0x1f9   : > { %769 = vrot.lane.b32.xlu0 %v667_v55, %s3904_s30  ;;  %v1320_v55 = vld [vmem:[#allocation2 + $0x113] sm:$0xff] }
 0x1fa   : > { %v1188_v60 = vpop.permute.xlu1 %1187 }
 0x1fb   : > { %v973_v61 = vpop.permute.xlu0 %972  ;;  %1274 = vst.msk [vmem:[#allocation3 + $0xb0] sm:$0xff] %vm1251_vm3, %v1188_v60  ;;  %v600_v60 = vld [vmem:[#allocation2 + $0x118] sm:$0xff] }
 0x1fc   : > { %1058 = vst.msk [vmem:[#allocation3 + $0xb8] sm:$0xff] %vm1034_vm2, %v973_v61  ;;  %2282 = vrot.lane.b32.xlu1 %v2183_v59, %s3910_s24  ;;  %v2186_v61 = vld [vmem:[#allocation2 + $0x116] sm:$0xff] }
 0x1fd   : > { %1633 = vrot.lane.b32.xlu0 %v4698_v30, %s5293_s17  ;;  %v669_v30 = vld [vmem:[#allocation2 + $0x101] sm:$0xff]  ;;  %636 = vst.msk [vmem:[#allocation3 + $0x118] sm:$0xff] %vm522_vm0, %v600_v60  ;;  %v2190_v60 = vld [vmem:[#allocation2 + $0x136] sm:$0xff] }
 0x1fe   : > { %v2052_v63 = vpop.permute.xlu1 %2051 }
 0x1ff   : > { %v1837_v1 = vpop.permute.xlu0 %1836  ;;  %2140 = vst.msk [vmem:[#allocation3 + $0xa0] sm:$0xff] %vm2119_vm7, %v2052_v63 }
 0x200   : > { %1924 = vst.msk [vmem:[#allocation3 + $0xa8] sm:$0xff] %vm1902_vm6, %v1837_v1  ;;  %986 = vrot.lane.b32.xlu1 %v4706_v33, %s5294_s29 }
 0x201   : > { %771 = vrot.lane.b32.xlu0 %v668_v62, %s3904_s30  ;;  %v1970_v62 = vld [vmem:[#allocation2 + $0x11d] sm:$0xff] }
 0x202   : > { %v1405_v5 = vpop.permute.xlu1 %1404 }
 0x203   : > { %v1190_v6 = vpop.permute.xlu0 %1189  ;;  %1491 = vst.msk [vmem:[#allocation3 + $0xb0] sm:$0xff] %vm1468_vm4, %v1405_v5  ;;  %v671_v5 = vld [vmem:[#allocation2 + $0x111] sm:$0xff] }
 0x204   : > { %1275 = vst.msk [vmem:[#allocation3 + $0xb8] sm:$0xff] %vm1251_vm3, %v1190_v6  ;;  %1850 = vrot.lane.b32.xlu1 %v1750_v4, %s5295_s19 }
 0x205   : > { %1635 = vrot.lane.b32.xlu0 %v4713_v37, %s5293_s17  ;;  %v670_v37 = vld [vmem:[#allocation2 + $0x109] sm:$0xff] }
 0x206   : > { %v2269_v8 = vpop.permute.xlu1 %2268 }
 0x207   : > { %v2054_v9 = vpop.permute.xlu0 %2053  ;;  %2357 = vst.msk [vmem:[#allocation3 + $0xa0] sm:$0xff] %vm2336_vm8, %v2269_v8 }
 0x208   : > { %2141 = vst.msk [vmem:[#allocation3 + $0xa8] sm:$0xff] %vm2119_vm7, %v2054_v9  ;;  %1203 = vrot.lane.b32.xlu1 %v1101_v7, %s5291_s21  ;;  %v2187_v9 = vld [vmem:[#allocation2 + $0x11e] sm:$0xff] }
 0x209   : > { %988 = vrot.lane.b32.xlu0 %v1100_v44, %s5294_s29 }
 0x20a   : > { %v1407_v12 = vpop.permute.xlu1 %1406  ;;  %v4759_v15 = vpop.f32.mrb[6].mxu0 }
 0x20b   : > { %v758_v13 = vpop.permute.xlu0 %757  ;;  %1492 = vst.msk [vmem:[#allocation3 + $0xb8] sm:$0xff] %vm1468_vm4, %v1407_v12  ;;  %v4762_v16 = vpop.f32.mrb[7].mxu0  ;;  %v672_v12 = vld [vmem:[#allocation2 + $0x119] sm:$0xff] }
 0x20c   : > { %842 = vst.msk [vmem:[#allocation3 + $0xc0] sm:$0xff] %vm817_vm1, %v758_v13  ;;  %2067 = vrot.lane.b32.xlu1 %v1967_v10, %s3909_s27 }
 0x20d   : > { %1852 = vrot.lane.b32.xlu0 %v1751_v11, %s5295_s19 }
 0x20e   : > { %v2271_v19 = vpop.permute.xlu1 %2270  ;;  %v2393_v21 = vld [vmem:[#allocation3 + $0xa0] sm:$0xff] }
 0x20f   : > { %v1622_v20 = vpop.permute.xlu0 %1621  ;;  %2358 = vst.msk [vmem:[#allocation3 + $0xa8] sm:$0xff] %vm2336_vm8, %v2271_v19  ;;  %3578 = vmatprep.mubr.f32.mxu0 %v2393_v21 }
 0x210   : > { %1708 = vst.msk [vmem:[#allocation3 + $0xb0] sm:$0xff] %vm1685_vm5, %v1622_v20  ;;  %1420 = vrot.lane.b32.xlu1 %v1318_v17, %s5292_s10  ;;  %v1754_v17 = vld [vmem:[#allocation2 + $0x124] sm:$0xff] }
 0x211   : > { %1205 = vrot.lane.b32.xlu0 %v1102_v18, %s5291_s21  ;;  %v1105_v20 = vld [vmem:[#allocation2 + $0x122] sm:$0xff] }
 0x212   : > { %v975_v24 = vpop.permute.xlu1 %974 }
 0x213   : > { %v760_v25 = vpop.permute.xlu0 %759  ;;  %1059 = vst.msk [vmem:[#allocation3 + $0xc0] sm:$0xff] %vm1034_vm2, %v975_v24  ;;  %v1755_v24 = vld [vmem:[#allocation2 + $0x12c] sm:$0xff] }
 0x214   : > { %843 = vst.msk [vmem:[#allocation3 + $0xc8] sm:$0xff] %vm817_vm1, %v760_v25  ;;  %2284 = vrot.lane.b32.xlu1 %v2184_v22, %s3910_s24 }
 0x215   : > { %2069 = vrot.lane.b32.xlu0 %v1968_v23, %s3909_s27  ;;  %v1971_v23 = vld [vmem:[#allocation2 + $0x125] sm:$0xff] }
 0x216   : > { %v1839_v31 = vpop.permute.xlu1 %1838  ;;  %v2394_v33 = vld [vmem:[#allocation3 + $0xa8] sm:$0xff] }
 0x217   : > { %v1624_v32 = vpop.permute.xlu0 %1623  ;;  %1925 = vst.msk [vmem:[#allocation3 + $0xb0] sm:$0xff] %vm1902_vm6, %v1839_v31  ;;  %3579 = vmatmul.mubr.f32.gmra.mrb[20].mxu0 %v2394_v33  ;;  %v1322_v31 = vld [vmem:[#allocation2 + $0x123] sm:$0xff] }
 0x218   : > { %1709 = vst.msk [vmem:[#allocation3 + $0xb8] sm:$0xff] %vm1685_vm5, %v1624_v32  ;;  %1422 = vrot.lane.b32.xlu1 %v1319_v27, %s5292_s10  ;;  %v1106_v32 = vld [vmem:[#allocation2 + $0x12a] sm:$0xff] }
 0x219   : > { %773 = vrot.lane.b32.xlu0 %v669_v30, %s3904_s30 }
 0x21a   : > { %v1192_v35 = vpop.permute.xlu1 %1191 }
 0x21b   : > { %v977_v36 = vpop.permute.xlu0 %976  ;;  %1276 = vst.msk [vmem:[#allocation3 + $0xc0] sm:$0xff] %vm1251_vm3, %v1192_v35 }
 0x21c   : > { %1060 = vst.msk [vmem:[#allocation3 + $0xc8] sm:$0xff] %vm1034_vm2, %v977_v36  ;;  %2286 = vrot.lane.b32.xlu1 %v2185_v34, %s3910_s24  ;;  %v2188_v36 = vld [vmem:[#allocation2 + $0x126] sm:$0xff] }
 0x21d   : > { %1637 = vrot.lane.b32.xlu0 %v1750_v4, %s5293_s17  ;;  %v1321_v4 = vld [vmem:[#allocation2 + $0x11b] sm:$0xff] }
 0x21e   : > { %v2056_v38 = vpop.permute.xlu1 %2055 }
 0x21f   : > { %v1841_v39 = vpop.permute.xlu0 %1840  ;;  %2142 = vst.msk [vmem:[#allocation3 + $0xb0] sm:$0xff] %vm2119_vm7, %v2056_v38 }
 0x220   : > { %1926 = vst.msk [vmem:[#allocation3 + $0xb8] sm:$0xff] %vm1902_vm6, %v1841_v39  ;;  %990 = vrot.lane.b32.xlu1 %v1101_v7, %s5294_s29 }
 0x221   : > { %775 = vrot.lane.b32.xlu0 %v670_v37, %s3904_s30  ;;  %v1972_v37 = vld [vmem:[#allocation2 + $0x12d] sm:$0xff] }
 0x222   : > { %v1409_v43 = vpop.permute.xlu1 %1408 }
 0x223   : > { %v1194_v44 = vpop.permute.xlu0 %1193  ;;  %1493 = vst.msk [vmem:[#allocation3 + $0xc0] sm:$0xff] %vm1468_vm4, %v1409_v43 }
 0x224   : > { %1277 = vst.msk [vmem:[#allocation3 + $0xc8] sm:$0xff] %vm1251_vm3, %v1194_v44  ;;  %1854 = vrot.lane.b32.xlu1 %v1752_v40, %s5295_s19 }
 0x225   : > { %1639 = vrot.lane.b32.xlu0 %v1751_v11, %s5293_s17 }
 0x226   : > { %v2273_v46 = vpop.permute.xlu1 %2272 }
 0x227   : > { %v2058_v47 = vpop.permute.xlu0 %2057  ;;  %2359 = vst.msk [vmem:[#allocation3 + $0xb0] sm:$0xff] %vm2336_vm8, %v2273_v46  ;;  %v2189_v46 = vld [vmem:[#allocation2 + $0x12e] sm:$0xff] }
 0x228   : > { %2143 = vst.msk [vmem:[#allocation3 + $0xb8] sm:$0xff] %vm2119_vm7, %v2058_v47  ;;  %1207 = vrot.lane.b32.xlu1 %v1103_v45, %s5291_s21 }
 0x229   : > { %992 = vrot.lane.b32.xlu0 %v1102_v18, %s5294_s29 }
 0x22a   : > { %v1411_v50 = vpop.permute.xlu1 %1410  ;;  %v4797_v53 = vpop.f32.mrb[8].mxu0 }
 0x22b   : > { %v762_v51 = vpop.permute.xlu0 %761  ;;  %1494 = vst.msk [vmem:[#allocation3 + $0xc8] sm:$0xff] %vm1468_vm4, %v1411_v50  ;;  %v4800_v54 = vpop.f32.mrb[9].mxu0  ;;  %v1756_v50 = vld [vmem:[#allocation2 + $0x134] sm:$0xff] }
 0x22c   : > { %844 = vst.msk [vmem:[#allocation3 + $0xd0] sm:$0xff] %vm817_vm1, %v762_v51  ;;  %2071 = vrot.lane.b32.xlu1 %v1969_v48, %s3909_s27 }
 0x22d   : > { %1856 = vrot.lane.b32.xlu0 %v1753_v49, %s5295_s19 }
 0x22e   : > { %v2275_v57 = vpop.permute.xlu1 %2274  ;;  %v2395_v59 = vld [vmem:[#allocation3 + $0xb0] sm:$0xff] }
 0x22f   : > { %v1626_v58 = vpop.permute.xlu0 %1625  ;;  %2360 = vst.msk [vmem:[#allocation3 + $0xb8] sm:$0xff] %vm2336_vm8, %v2275_v57  ;;  %3581 = vmatprep.mubr.f32.mxu0 %v2395_v59  ;;  %v2191_v59 = vld [vmem:[#allocation2 + $0x13e] sm:$0xff] }
 0x230   : > { %1710 = vst.msk [vmem:[#allocation3 + $0xc0] sm:$0xff] %vm1685_vm5, %v1626_v58  ;;  %1424 = vrot.lane.b32.xlu1 %v1320_v55, %s5292_s10  ;;  %v1974_v55 = vld [vmem:[#allocation2 + $0x13d] sm:$0xff] }
 0x231   : > { %1209 = vrot.lane.b32.xlu0 %v1104_v56, %s5291_s21 }
 0x232   : > { %v979_v63 = vpop.permute.xlu1 %978 }
 0x233   : > { %v764_v1 = vpop.permute.xlu0 %763  ;;  %1061 = vst.msk [vmem:[#allocation3 + $0xd0] sm:$0xff] %vm1034_vm2, %v979_v63  ;;  %v2715_v63 = vld [vmem:[%s5271_s2 + $0x8] sm:$0xff] }
 0x234   : > { %845 = vst.msk [vmem:[#allocation3 + $0xd8] sm:$0xff] %vm817_vm1, %v764_v1  ;;  %2288 = vrot.lane.b32.xlu1 %v2186_v61, %s3910_s24  ;;  %v2714_v1 = vld [vmem:[%s5271_s2] sm:$0xff] }
 0x235   : > { %2073 = vrot.lane.b32.xlu0 %v1970_v62, %s3909_s27 }
 0x236   : > { %v1843_v6 = vpop.permute.xlu1 %1842  ;;  %v2396_v8 = vld [vmem:[#allocation3 + $0xb8] sm:$0xff] }
 0x237   : > { %v1628_v7 = vpop.permute.xlu0 %1627  ;;  %1927 = vst.msk [vmem:[#allocation3 + $0xc0] sm:$0xff] %vm1902_vm6, %v1843_v6  ;;  %3582 = vmatmul.mubr.f32.gmra.mrb[22].mxu0 %v2396_v8  ;;  %v2716_v8 = vld [vmem:[%s5271_s2 + $0x10] sm:$0xff] }
 0x238   : > { %1711 = vst.msk [vmem:[#allocation3 + $0xc8] sm:$0xff] %vm1685_vm5, %v1628_v7  ;;  %1426 = vrot.lane.b32.xlu1 %v1321_v4, %s5292_s10 }
 0x239   : > { %777 = vrot.lane.b32.xlu0 %v671_v5, %s3904_s30 }
 0x23a   : > { %v1196_v10 = vpop.permute.xlu1 %1195 }
 0x23b   : > { %v981_v11 = vpop.permute.xlu0 %980  ;;  %1278 = vst.msk [vmem:[#allocation3 + $0xd0] sm:$0xff] %vm1251_vm3, %v1196_v10 }
 0x23c   : > { %1062 = vst.msk [vmem:[#allocation3 + $0xd8] sm:$0xff] %vm1034_vm2, %v981_v11  ;;  %2290 = vrot.lane.b32.xlu1 %v2187_v9, %s3910_s24  ;;  %v2717_v9 = vld [vmem:[%s5271_s2 + $0x18] sm:$0xff] }
 0x23d   : > { %1641 = vrot.lane.b32.xlu0 %v1752_v40, %s5293_s17  ;;  %v1323_v40 = vld [vmem:[#allocation2 + $0x12b] sm:$0xff] }
 0x23e   : > { %v2060_v13 = vpop.permute.xlu1 %2059 }
 0x23f   : > { %v1845_v14 = vpop.permute.xlu0 %1844  ;;  %2144 = vst.msk [vmem:[#allocation3 + $0xc0] sm:$0xff] %vm2119_vm7, %v2060_v13  ;;  %v2718_v13 = vld [vmem:[%s5271_s2 + $0x20] sm:$0xff] }
 0x240   : > { %1928 = vst.msk [vmem:[#allocation3 + $0xc8] sm:$0xff] %vm1902_vm6, %v1845_v14  ;;  %994 = vrot.lane.b32.xlu1 %v1103_v45, %s5294_s29  ;;  %v2719_v14 = vld [vmem:[%s5271_s2 + $0x28] sm:$0xff] }
 0x241   : > { %779 = vrot.lane.b32.xlu0 %v672_v12, %s3904_s30 }
 0x242   : > { %v1413_v18 = vpop.permute.xlu1 %1412 }
 0x243   : > { %v1198_v19 = vpop.permute.xlu0 %1197  ;;  %1495 = vst.msk [vmem:[#allocation3 + $0xd0] sm:$0xff] %vm1468_vm4, %v1413_v18 }
 0x244   : > { %1279 = vst.msk [vmem:[#allocation3 + $0xd8] sm:$0xff] %vm1251_vm3, %v1198_v19  ;;  %1858 = vrot.lane.b32.xlu1 %v1754_v17, %s5295_s19  ;;  %v2720_v19 = vld [vmem:[%s5271_s2 + $0x30] sm:$0xff] }
 0x245   : > { %1643 = vrot.lane.b32.xlu0 %v1753_v49, %s5293_s17  ;;  %v1757_v49 = vld [vmem:[#allocation2 + $0x13c] sm:$0xff] }
 0x246   : > { %v2277_v21 = vpop.permute.xlu1 %2276 }
 0x247   : > { %v2062_v22 = vpop.permute.xlu0 %2061  ;;  %2361 = vst.msk [vmem:[#allocation3 + $0xc0] sm:$0xff] %vm2336_vm8, %v2277_v21 }
 0x248   : > { %2145 = vst.msk [vmem:[#allocation3 + $0xc8] sm:$0xff] %vm2119_vm7, %v2062_v22  ;;  %1211 = vrot.lane.b32.xlu1 %v1105_v20, %s5291_s21  ;;  %v2721_v20 = vld [vmem:[%s5271_s2 + $0x38] sm:$0xff] }
 0x249   : > { %996 = vrot.lane.b32.xlu0 %v1104_v56, %s5294_s29  ;;  %v1973_v56 = vld [vmem:[#allocation2 + $0x135] sm:$0xff]  ;;  %s387_s29 = sld [smem:[#allocation6]] }
 0x24a   : > { %v1415_v25 = vpop.permute.xlu1 %1414  ;;  %v4835_v27 = vpop.f32.mrb[10].mxu0 }
 0x24b   : > { %v766_v26 = vpop.permute.xlu0 %765  ;;  %1496 = vst.msk [vmem:[#allocation3 + $0xd8] sm:$0xff] %vm1468_vm4, %v1415_v25  ;;  %v4837_v30 = vpop.f32.mrb[11].mxu0  ;;  %v2723_v25 = vld [vmem:[%s5271_s2 + $0x48] sm:$0xff] }
 0x24c   : > { %846 = vst.msk [vmem:[#allocation3 + $0xe0] sm:$0xff] %vm817_vm1, %v766_v26  ;;  %2075 = vrot.lane.b32.xlu1 %v1971_v23, %s3909_s27 }
 0x24d   : > { %1860 = vrot.lane.b32.xlu0 %v1755_v24, %s5295_s19 }
 0x24e   : > { %v2279_v33 = vpop.permute.xlu1 %2278  ;;  %v2397_v35 = vld [vmem:[#allocation3 + $0xc0] sm:$0xff] }
 0x24f   : > { %v1630_v34 = vpop.permute.xlu0 %1629  ;;  %2362 = vst.msk [vmem:[#allocation3 + $0xc8] sm:$0xff] %vm2336_vm8, %v2279_v33  ;;  %3584 = vmatprep.mubr.f32.mxu0 %v2397_v35  ;;  %v2725_v33 = vld [vmem:[%s5271_s2 + $0x58] sm:$0xff]  ;;  %p388_p12 = scmp.lt.s32.totalorder %s387_s29, 2 }
 0x250   : > { %1712 = vst.msk [vmem:[#allocation3 + $0xd0] sm:$0xff] %vm1685_vm5, %v1630_v34  ;;  %1428 = vrot.lane.b32.xlu1 %v1322_v31, %s5292_s10 }
 0x251   : > { %1213 = vrot.lane.b32.xlu0 %v1106_v32, %s5291_s21  ;;  %v2724_v32 = vld [vmem:[%s5271_s2 + $0x50] sm:$0xff]  ;;  %s5304_s29 = smov (!%p388_p12, %s387_s29), 2 }
 0x252   : > { %v983_v38 = vpop.permute.xlu1 %982  ;;  %s397_s0 = scalar_lea.vmem %s5277_s8, %s5304_s29 }
 0x253   : > { %v768_v39 = vpop.permute.xlu0 %767  ;;  %1063 = vst.msk [vmem:[#allocation3 + $0xe0] sm:$0xff] %vm1034_vm2, %v983_v38 }
 0x254   : > { %847 = vst.msk [vmem:[#allocation3 + $0xe8] sm:$0xff] %vm817_vm1, %v768_v39  ;;  %2292 = vrot.lane.b32.xlu1 %v2188_v36, %s3910_s24  ;;  %v2726_v36 = vld [vmem:[%s5271_s2 + $0x60] sm:$0xff] }
 0x255   : > { %2077 = vrot.lane.b32.xlu0 %v1972_v37, %s3909_s27  ;;  %v2727_v37 = vld [vmem:[%s5271_s2 + $0x68] sm:$0xff] }
 0x256   : > { %v1847_v43 = vpop.permute.xlu1 %1846  ;;  %v2398_v45 = vld [vmem:[#allocation3 + $0xc8] sm:$0xff] }
 0x257   : > { %v1632_v44 = vpop.permute.xlu0 %1631  ;;  %1929 = vst.msk [vmem:[#allocation3 + $0xd0] sm:$0xff] %vm1902_vm6, %v1847_v43  ;;  %3585 = vmatmul.mubr.f32.gmra.mrb[24].mxu0 %v2398_v45  ;;  %v2729_v43 = vld [vmem:[%s5271_s2 + $0x78] sm:$0xff] }
 0x258   : > { %1713 = vst.msk [vmem:[#allocation3 + $0xd8] sm:$0xff] %vm1685_vm5, %v1632_v44  ;;  %1645 = vrot.lane.b32.xlu1 %v1754_v17, %s5293_s17 }
 0x259   : > { %1430 = vrot.lane.b32.xlu0 %v1323_v40, %s5292_s10  ;;  %v2728_v40 = vld [vmem:[%s5271_s2 + $0x70] sm:$0xff] }
 0x25a   : > { %v1200_v47 = vpop.permute.xlu1 %1199 }
 0x25b   : > { %v985_v48 = vpop.permute.xlu0 %984  ;;  %1280 = vst.msk [vmem:[#allocation3 + $0xe0] sm:$0xff] %vm1251_vm3, %v1200_v47  ;;  %v2731_v47 = vld [vmem:[%s5271_s2 + $0x88] sm:$0xff] }
 0x25c   : > { %1064 = vst.msk [vmem:[#allocation3 + $0xe8] sm:$0xff] %vm1034_vm2, %v985_v48  ;;  %1647 = vrot.lane.b32.xlu1 %v1755_v24, %s5293_s17  ;;  %v2722_v24 = vld [vmem:[%s5271_s2 + $0x40] sm:$0xff]  ;;  %s3327_s17 = sshll.u32 %s3892_s14, 4  ;;  %s3914_s14 = smov [#allocation7]  }
 0x25d   : > { %2294 = vrot.lane.b32.xlu0 %v2189_v46, %s3910_s24  ;;  %v2730_v46 = vld [vmem:[%s5271_s2 + $0x80] sm:$0xff]  ;;  %s5222_s10 = scalar_lea.hbm %s5278_s9, %s3327_s17  ;;  %s3826_s25 = sshll.u32 %s3914_s14, 4  ;;  %s3827_s25 = int_to_ptr.vmem [resolvable:$false] %s3826_s25 }
 0x25e   : > { %v2064_v51 = vpop.permute.xlu1 %2063  ;;  %s3828_s26 = scalar_lea.vmem %s3827_s25, 32 }
 0x25f   : > { %v1849_v52 = vpop.permute.xlu0 %1848  ;;  %2146 = vst.msk [vmem:[#allocation3 + $0xd0] sm:$0xff] %vm2119_vm7, %v2064_v51 }
 0x260   : > { %1930 = vst.msk [vmem:[#allocation3 + $0xd8] sm:$0xff] %vm1902_vm6, %v1849_v52  ;;  %1864 = vrot.lane.b32.xlu1 %v1757_v49, %s5295_s19  ;;  %v2732_v52 = vld [vmem:[%s5271_s2 + $0x90] sm:$0xff] }
 0x261   : > { %1862 = vrot.lane.b32.xlu0 %v1756_v50, %s5295_s19  ;;  %s3330_s19 = sshll.u32 %s5304_s29, 7 }
 0x262   : > { %v1417_v57 = vpop.permute.xlu1 %1416  ;;  %s5183_s21 = scalar_lea.vmem %s5276_s7, %s3330_s19 }
 0x263   : > { %v1202_v58 = vpop.permute.xlu0 %1201  ;;  %1497 = vst.msk [vmem:[#allocation3 + $0xe0] sm:$0xff] %vm1468_vm4, %v1417_v57 }
 0x264   : > { %1281 = vst.msk [vmem:[#allocation3 + $0xe8] sm:$0xff] %vm1251_vm3, %v1202_v58  ;;  %2081 = vrot.lane.b32.xlu1 %v1974_v55, %s3909_s27  ;;  %v2733_v55 = vld [vmem:[%s5271_s2 + $0x98] sm:$0xff] }
 0x265   : > { %2079 = vrot.lane.b32.xlu0 %v1973_v56, %s3909_s27 }
 0x266   : > { %v2281_v61 = vpop.permute.xlu1 %2280 }
 0x267   : > { %v2066_v62 = vpop.permute.xlu0 %2065  ;;  %2363 = vst.msk [vmem:[#allocation3 + $0xd0] sm:$0xff] %vm2336_vm8, %v2281_v61 }
 0x268   : > { %2147 = vst.msk [vmem:[#allocation3 + $0xd8] sm:$0xff] %vm2119_vm7, %v2066_v62  ;;  %2298 = vrot.lane.b32.xlu1 %v2191_v59, %s3910_s24  ;;  %v2734_v59 = vld [vmem:[%s5271_s2 + $0xa0] sm:$0xff] }
 0x269   : > { %2296 = vrot.lane.b32.xlu0 %v2190_v60, %s3910_s24  ;;  %v2735_v60 = vld [vmem:[%s5271_s2 + $0xa8] sm:$0xff]  ;;  %s371_s24 = sand.u32 1, %s3884_s12  }
 0x26a   : > { %v1419_v4 = vpop.permute.xlu1 %1418  ;;  %v4877_v6 = vpop.f32.mrb[12].mxu0  ;;  %s372_s19 = scalar_lea.vmem [#allocation7], %s371_s24  ;;  %s3191_s27 = scalar_lea.sflag [#allocation8], %s371_s24 }
 0x26b   : > { %v770_v5 = vpop.permute.xlu0 %769  ;;  %1498 = vst.msk [vmem:[#allocation3 + $0xe8] sm:$0xff] %vm1468_vm4, %v1419_v4  ;;  %v4879_v7 = vpop.f32.mrb[13].mxu0  ;;  %s3203_s28 = sshll.u32 %s372_s19, 4  ;;  %s5224_s28 = int_to_ptr.vmem [resolvable:$true] %s3203_s28 }
 0x26c   : > { %848 = vst.msk [vmem:[#allocation3 + $0xf0] sm:$0xff] %vm817_vm1, %v770_v5  ;;  %2757 = vperm.xlu1 %3821, %v2715_v63   ;;  %v2736_v63 = vld [vmem:[%s5271_s2 + $0xb0] sm:$0xff]  ;;  %s3822_s29 = scalar_lea.vmem %s5224_s28, 16  ;;  %p3829_p2 = scmp.lt.s32.totalorder %s5224_s28, %s3827_s25 }
 0x26d   : > { %2752 = vperm.xlu0 %3820, %v2714_v1   ;;  %v2737_v1 = vld [vmem:[%s5271_s2 + $0xb8] sm:$0xff]  ;;  %p3823_p13 = scmp.ne.s32.totalorder %s5224_s28, %s3822_s29  ;;  %p3830_p3 = scmp.lt.s32.totalorder %s3828_s26, %s3822_s29 }
 0x26e   : > { %v2283_v10 = vpop.permute.xlu1 %2282  ;;  %v2399_v12 = vld [vmem:[#allocation3 + $0xd0] sm:$0xff] }
 0x26f   : > { %v1634_v11 = vpop.permute.xlu0 %1633  ;;  %2364 = vst.msk [vmem:[#allocation3 + $0xd8] sm:$0xff] %vm2336_vm8, %v2283_v10  ;;  %3587 = vmatprep.mubr.f32.mxu0 %v2399_v12  ;;  %v2739_v10 = vld [vmem:[%s5271_s2 + $0xc8] sm:$0xff]  ;;  %p3824_p0 = pnand %p3823_p13, %p4008_p4  ;;  %p3831_p5 = por %p3830_p3, %p3829_p2 }
 0x270   : > { %1714 = vst.msk [vmem:[#allocation3 + $0xe0] sm:$0xff] %vm1685_vm5, %v1634_v11  ;;  %2762 = vperm.xlu1 %3821, %v2716_v8  }
 0x271   : > { %2767 = vperm.xlu0 %3820, %v2717_v9   ;;  %v2738_v9 = vld [vmem:[%s5271_s2 + $0xc0] sm:$0xff]  ;;  %p3825_p1 = pneg %p3824_p0 }
 0x272   : > { %v987_v17 = vpop.permute.xlu1 %986 }
 0x273   : > { %v772_v18 = vpop.permute.xlu0 %771  ;;  %1065 = vst.msk [vmem:[#allocation3 + $0xf0] sm:$0xff] %vm1034_vm2, %v987_v17  ;;  %p3832_p6 = pnand %p3831_p5, %p3825_p1 }
 0x274   : > { %849 = vst.msk [vmem:[#allocation3 + $0xf8] sm:$0xff] %vm817_vm1, %v772_v18  ;;  %2772 = vperm.xlu1 %3821, %v2718_v13   ;;  %v2740_v13 = vld [vmem:[%s5271_s2 + $0xd0] sm:$0xff] }
 0x275   : > { %2777 = vperm.xlu0 %3820, %v2719_v14   ;;  %v2741_v14 = vld [vmem:[%s5271_s2 + $0xd8] sm:$0xff] }
 0x276   : > { %v1851_v21 = vpop.permute.xlu1 %1850  ;;  %v2400_v23 = vld [vmem:[#allocation3 + $0xd8] sm:$0xff] }
 0x277   : > { %v1636_v22 = vpop.permute.xlu0 %1635  ;;  %1931 = vst.msk [vmem:[#allocation3 + $0xe0] sm:$0xff] %vm1902_vm6, %v1851_v21  ;;  %3588 = vmatmul.mubr.f32.gmra.mrb[26].mxu0 %v2400_v23  ;;  %v2744_v23 = vld [vmem:[%s5271_s2 + $0xf0] sm:$0xff] }
 0x278   : > { %1715 = vst.msk [vmem:[#allocation3 + $0xe8] sm:$0xff] %vm1685_vm5, %v1636_v22  ;;  %2782 = vperm.xlu1 %3821, %v2720_v19   ;;  %v2742_v19 = vld [vmem:[%s5271_s2 + $0xe0] sm:$0xff] }
 0x279   : > { %2787 = vperm.xlu0 %3820, %v2721_v20   ;;  %v2743_v20 = vld [vmem:[%s5271_s2 + $0xe8] sm:$0xff] }
 0x27a   : > { %v1204_v26 = vpop.permute.xlu1 %1203 }
 0x27b   : > { %v989_v31 = vpop.permute.xlu0 %988  ;;  %1282 = vst.msk [vmem:[#allocation3 + $0xf0] sm:$0xff] %vm1251_vm3, %v1204_v26 }
 0x27c   : > { %1066 = vst.msk [vmem:[#allocation3 + $0xf8] sm:$0xff] %vm1034_vm2, %v989_v31  ;;  %2792 = vperm.xlu1 %3821, %v2722_v24   ;;  %v2745_v24 = vld [vmem:[%s5271_s2 + $0xf8] sm:$0xff]  ;;  %v2746_v31 = vld [vmem:[%s5271_s2 + $0x100] sm:$0xff] }
 0x27d   : > { %2797 = vperm.xlu0 %3820, %v2723_v25  }
 0x27e   : > { %v2068_v34 = vpop.permute.xlu1 %2067 }
 0x27f   : > { %v1853_v35 = vpop.permute.xlu0 %1852  ;;  %2148 = vst.msk [vmem:[#allocation3 + $0xe0] sm:$0xff] %vm2119_vm7, %v2068_v34 }
 0x280   : > { %1932 = vst.msk [vmem:[#allocation3 + $0xe8] sm:$0xff] %vm1902_vm6, %v1853_v35  ;;  %2802 = vperm.xlu1 %3821, %v2724_v32   ;;  %v2747_v32 = vld [vmem:[%s5271_s2 + $0x108] sm:$0xff] }
 0x281   : > { %2807 = vperm.xlu0 %3820, %v2725_v33  }
 0x282   : > { %v1421_v38 = vpop.permute.xlu1 %1420 }
 0x283   : > { %v1206_v39 = vpop.permute.xlu0 %1205  ;;  %1499 = vst.msk [vmem:[#allocation3 + $0xf0] sm:$0xff] %vm1468_vm4, %v1421_v38  ;;  %v2749_v38 = vld [vmem:[%s5271_s2 + $0x118] sm:$0xff] }
 0x284   : > { %1283 = vst.msk [vmem:[#allocation3 + $0xf8] sm:$0xff] %vm1251_vm3, %v1206_v39  ;;  %2812 = vperm.xlu1 %3821, %v2726_v36  }
 0x285   : > { %2817 = vperm.xlu0 %3820, %v2727_v37   ;;  %v2748_v37 = vld [vmem:[%s5271_s2 + $0x110] sm:$0xff] }
 0x286   : > { %v2285_v44 = vpop.permute.xlu1 %2284 }
 0x287   : > { %v2070_v45 = vpop.permute.xlu0 %2069  ;;  %2365 = vst.msk [vmem:[#allocation3 + $0xe0] sm:$0xff] %vm2336_vm8, %v2285_v44 }
 0x288   : > { %2149 = vst.msk [vmem:[#allocation3 + $0xe8] sm:$0xff] %vm2119_vm7, %v2070_v45  ;;  %2822 = vperm.xlu1 %3821, %v2728_v40  }
 0x289   : > { %2827 = vperm.xlu0 %3820, %v2729_v43  }
 0x28a   : > { %v1423_v48 = vpop.permute.xlu1 %1422  ;;  %v4945_v50 = vpop.f32.mrb[14].mxu0 }
 0x28b   : > { %v774_v49 = vpop.permute.xlu0 %773  ;;  %1500 = vst.msk [vmem:[#allocation3 + $0xf8] sm:$0xff] %vm1468_vm4, %v1423_v48  ;;  %v4947_v51 = vpop.f32.mrb[15].mxu0 }
 0x28c   : > { %850 = vst.msk [vmem:[#allocation3 + $0x100] sm:$0xff] %vm817_vm1, %v774_v49  ;;  %2832 = vperm.xlu1 %3821, %v2730_v46  }
 0x28d   : > { %2837 = vperm.xlu0 %3820, %v2731_v47  }
 0x28e   : > { %v2287_v56 = vpop.permute.xlu1 %2286  ;;  %v2401_v58 = vld [vmem:[#allocation3 + $0xe0] sm:$0xff] }
 0x28f   : > { %v1638_v57 = vpop.permute.xlu0 %1637  ;;  %2366 = vst.msk [vmem:[#allocation3 + $0xe8] sm:$0xff] %vm2336_vm8, %v2287_v56  ;;  %3590 = vmatprep.mubr.f32.mxu0 %v2401_v58 }
 0x290   : > { %1716 = vst.msk [vmem:[#allocation3 + $0xf0] sm:$0xff] %vm1685_vm5, %v1638_v57  ;;  %2842 = vperm.xlu1 %3821, %v2732_v52  }
 0x291   : > { %2847 = vperm.xlu0 %3820, %v2733_v55  }
 0x292   : > { %v991_v61 = vpop.permute.xlu1 %990 }
 0x293   : > { %v776_v62 = vpop.permute.xlu0 %775  ;;  %1067 = vst.msk [vmem:[#allocation3 + $0x100] sm:$0xff] %vm1034_vm2, %v991_v61 }
 0x294   : > { %851 = vst.msk [vmem:[#allocation3 + $0x108] sm:$0xff] %vm817_vm1, %v776_v62  ;;  %2852 = vperm.xlu1 %3821, %v2734_v59  }
 0x295   : > { %2857 = vperm.xlu0 %3820, %v2735_v60  }
 0x296   : > { %v1855_v4 = vpop.permute.xlu1 %1854  ;;  %v2402_v8 = vld [vmem:[#allocation3 + $0xe8] sm:$0xff] }
 0x297   : > { %v1640_v5 = vpop.permute.xlu0 %1639  ;;  %1933 = vst.msk [vmem:[#allocation3 + $0xf0] sm:$0xff] %vm1902_vm6, %v1855_v4  ;;  %3591 = vmatmul.mubr.f32.gmra.mrb[28].mxu0 %v2402_v8 }
 0x298   : > { %1717 = vst.msk [vmem:[#allocation3 + $0xf8] sm:$0xff] %vm1685_vm5, %v1640_v5  ;;  %2862 = vperm.xlu1 %3821, %v2736_v63  }
 0x299   : > { %2867 = vperm.xlu0 %3820, %v2737_v1  }
 0x29a   : > { %v1208_v11 = vpop.permute.xlu1 %1207 }
 0x29b   : > { %v993_v12 = vpop.permute.xlu0 %992  ;;  %1284 = vst.msk [vmem:[#allocation3 + $0x100] sm:$0xff] %vm1251_vm3, %v1208_v11 }
 0x29c   : > { %1068 = vst.msk [vmem:[#allocation3 + $0x108] sm:$0xff] %vm1034_vm2, %v993_v12  ;;  %2872 = vperm.xlu1 %3821, %v2738_v9  }
 0x29d   : > { %2877 = vperm.xlu0 %3820, %v2739_v10  }
 0x29e   : > { %v2072_v17 = vpop.permute.xlu1 %2071 }
 0x29f   : > { %v1857_v18 = vpop.permute.xlu0 %1856  ;;  %2150 = vst.msk [vmem:[#allocation3 + $0xf0] sm:$0xff] %vm2119_vm7, %v2072_v17 }
 0x2a0   : > { %1934 = vst.msk [vmem:[#allocation3 + $0xf8] sm:$0xff] %vm1902_vm6, %v1857_v18  ;;  %2882 = vperm.xlu1 %3821, %v2740_v13  }
 0x2a1   : > { %2887 = vperm.xlu0 %3820, %v2741_v14  }
 0x2a2   : > { %v1425_v21 = vpop.permute.xlu1 %1424 }
 0x2a3   : > { %v1210_v22 = vpop.permute.xlu0 %1209  ;;  %1501 = vst.msk [vmem:[#allocation3 + $0x100] sm:$0xff] %vm1468_vm4, %v1425_v21 }
 0x2a4   : > { %1285 = vst.msk [vmem:[#allocation3 + $0x108] sm:$0xff] %vm1251_vm3, %v1210_v22  ;;  %2892 = vperm.xlu1 %3821, %v2742_v19   ;;  %v5054_v19 = vld [vmem:[%s5273_s4] ss:$0 sm:$0xff] }
 0x2a5   : > { %2897 = vperm.xlu0 %3820, %v2743_v20   ;;  %v2504_v21 = vadd.f32 %v4611_v28, %v5054_v19  ;;  %v2499_v22 = vadd.f32 %v5054_v19, %v4614_v29  ;;  %v2519_v29 = vadd.f32 %v5054_v19, %v4720_v42  ;;  %v2534_v42 = vadd.f32 %v4759_v15, %v5054_v19 }
 0x2a6   : > { %v2289_v25 = vpop.permute.xlu1 %2288  ;;  %v2549_v15 = vadd.f32 %v5054_v19, %v4837_v30  ;;  %v2564_v30 = vadd.f32 %v4877_v6, %v5054_v19 }
 0x2a7   : > { %v2074_v26 = vpop.permute.xlu0 %2073  ;;  %2367 = vst.msk [vmem:[#allocation3 + $0xf0] sm:$0xff] %vm2336_vm8, %v2289_v25  ;;  %v2509_v25 = vadd.f32 %v5054_v19, %v4668_v3  ;;  %v2524_v3 = vadd.f32 %v4717_v41, %v5054_v19 }
 0x2a8   : > { %2151 = vst.msk [vmem:[#allocation3 + $0xf8] sm:$0xff] %vm2119_vm7, %v2074_v26  ;;  %2902 = vperm.xlu1 %3821, %v2744_v23   ;;  %v2678_v23 = vmax.f32 %v2504_v21, 0.0 }
 0x2a9   : > { %2907 = vperm.xlu0 %3820, %v2745_v24   ;;  %v2677_v24 = vmax.f32 %v2499_v22, 0.0  ;;  %v2679_v28 = vmax.f32 %v2509_v25, 0.0 }
 0x2aa   : > { %v1427_v33 = vpop.permute.xlu1 %1426  ;;  %v5013_v35 = vpop.f32.mrb[16].mxu0 }
 0x2ab   : > { %v778_v34 = vpop.permute.xlu0 %777  ;;  %1502 = vst.msk [vmem:[#allocation3 + $0x108] sm:$0xff] %vm1468_vm4, %v1427_v33  ;;  %v5015_v36 = vpop.f32.mrb[17].mxu0  ;;  %v2514_v33 = vadd.f32 %v4665_v2, %v5054_v19  ;;  %v2529_v2 = vadd.f32 %v5054_v19, %v4762_v16  ;;  %v2544_v16 = vadd.f32 %v4797_v53, %v5054_v19  ;;  %v2559_v53 = vadd.f32 %v5054_v19, %v4879_v7 }
 0x2ac   : > { %852 = vst.msk [vmem:[#allocation3 + $0x110] sm:$0xff] %vm817_vm1, %v778_v34  ;;  %2912 = vperm.xlu1 %3821, %v2746_v31   ;;  %v2574_v7 = vadd.f32 %v4945_v50, %v5054_v19  ;;  %v2579_v6 = vadd.f32 %v5054_v19, %v5015_v36 }
 0x2ad   : > { %2917 = vperm.xlu0 %3820, %v2747_v32  }
 0x2ae   : > { %v2291_v39 = vpop.permute.xlu1 %2290  ;;  %v2403_v43 = vld [vmem:[#allocation3 + $0xf0] sm:$0xff] }
 0x2af   : > { %v1642_v40 = vpop.permute.xlu0 %1641  ;;  %2368 = vst.msk [vmem:[#allocation3 + $0xf8] sm:$0xff] %vm2336_vm8, %v2291_v39  ;;  %3593 = vmatprep.mubr.f32.mxu0 %v2403_v43 }
 0x2b0   : > { %1718 = vst.msk [vmem:[#allocation3 + $0x100] sm:$0xff] %vm1685_vm5, %v1642_v40  ;;  %2922 = vperm.xlu1 %3821, %v2748_v37  }
 0x2b1   : > { %2927 = vperm.xlu0 %3820, %v2749_v38  }
 0x2b2   : > { %v995_v45 = vpop.permute.xlu1 %994 }
 0x2b3   : > { %v780_v44 = vpop.permute.xlu0 %779  ;;  %1069 = vst.msk [vmem:[#allocation3 + $0x110] sm:$0xff] %vm1034_vm2, %v995_v45 }
 0x2b4   : > { %853 = vst.msk [vmem:[#allocation3 + $0x118] sm:$0xff] %vm817_vm1, %v780_v44  ;;  %v2680_v44 = vmax.f32 %v2514_v33, 0.0  ;;  %v2689_v33 = vmax.f32 %v2559_v53, 0.0 }
 0x2b6   : > { %v1859_v47 = vpop.permute.xlu1 %1858  ;;  %v2404_v48 = vld [vmem:[#allocation3 + $0xf8] sm:$0xff] }
 0x2b7   : > { %v1644_v46 = vpop.permute.xlu0 %1643  ;;  %1935 = vst.msk [vmem:[#allocation3 + $0x100] sm:$0xff] %vm1902_vm6, %v1859_v47  ;;  %3594 = vmatmul.mubr.f32.gmra.mrb[30].mxu0 %v2404_v48 }
 0x2b8   : > { %1719 = vst.msk [vmem:[#allocation3 + $0x108] sm:$0xff] %vm1685_vm5, %v1644_v46  ;;  %v2681_v46 = vmax.f32 %v2519_v29, 0.0 }
 0x2ba   : > { %v1212_v52 = vpop.permute.xlu1 %1211 }
 0x2bb   : > { %v997_v49 = vpop.permute.xlu0 %996  ;;  %1286 = vst.msk [vmem:[#allocation3 + $0x110] sm:$0xff] %vm1251_vm3, %v1212_v52 }
 0x2bc   : > { %1070 = vst.msk [vmem:[#allocation3 + $0x118] sm:$0xff] %vm1034_vm2, %v997_v49 }
 0x2be   : > { %v2076_v56 = vpop.permute.xlu1 %2075 }
 0x2bf   : > { %v1861_v55 = vpop.permute.xlu0 %1860  ;;  %2152 = vst.msk [vmem:[#allocation3 + $0x100] sm:$0xff] %vm2119_vm7, %v2076_v56 }
 0x2c0   : > { %1936 = vst.msk [vmem:[#allocation3 + $0x108] sm:$0xff] %vm1902_vm6, %v1861_v55  ;;  %v2682_v55 = vmax.f32 %v2524_v3, 0.0 }
 0x2c2   : > { %v1429_v58 = vpop.permute.xlu1 %1428 }
 0x2c3   : > { %v1214_v57 = vpop.permute.xlu0 %1213  ;;  %1503 = vst.msk [vmem:[#allocation3 + $0x110] sm:$0xff] %vm1468_vm4, %v1429_v58  ;;  %v2683_v58 = vmax.f32 %v2529_v2, 0.0 }
 0x2c4   : > { %1287 = vst.msk [vmem:[#allocation3 + $0x118] sm:$0xff] %vm1251_vm3, %v1214_v57 }
 0x2c6   : > { %v2293_v60 = vpop.permute.xlu1 %2292 }
 0x2c7   : > { %v2078_v59 = vpop.permute.xlu0 %2077  ;;  %2369 = vst.msk [vmem:[#allocation3 + $0x100] sm:$0xff] %vm2336_vm8, %v2293_v60 }
 0x2c8   : > { %2153 = vst.msk [vmem:[#allocation3 + $0x108] sm:$0xff] %vm2119_vm7, %v2078_v59  ;;  %v2539_v59 = vadd.f32 %v5054_v19, %v4800_v54  ;;  %v2554_v54 = vadd.f32 %v4835_v27, %v5054_v19  ;;  %v2569_v27 = vadd.f32 %v5054_v19, %v4947_v51  ;;  %v2584_v51 = vadd.f32 %v5013_v35, %v5054_v19 }
 0x2ca   : > { %v5037_v62 = vpop.f32.mrb[18].mxu0  ;;  %v1646_v63 = vpop.permute.xlu1 %1645  ;;  %v2688_v25 = vmax.f32 %v2554_v54, 0.0  ;;  %v2694_v36 = vmax.f32 %v2584_v51, 0.0  ;;  %v3016_v51 = vld [vmem:[%s5274_s5 + $0x10] sm:$0xff] }
 0x2cb   : > { %v1431_v61 = vpop.permute.xlu0 %1430  ;;  %v5040_v1 = vpop.f32.mrb[19].mxu0  ;;  %1720 = vst.msk [vmem:[#allocation3 + $0x110] sm:$0xff] %vm1685_vm5, %v1646_v63 }
 0x2cc   : > { %1504 = vst.msk [vmem:[#allocation3 + $0x118] sm:$0xff] %vm1468_vm4, %v1431_v61  ;;  %v2589_v50 = vadd.f32 %v5054_v19, %v5040_v1 }
 0x2ce   : > { %v2405_v5 = vld [vmem:[#allocation3 + $0x100] sm:$0xff]  ;;  %v1648_v8 = vpop.permute.xlu1 %1647 }
 0x2cf   : > { %v2295_v4 = vpop.permute.xlu0 %2294  ;;  %3596 = vmatprep.mubr.f32.mxu0 %v2405_v5  ;;  %1721 = vst.msk [vmem:[#allocation3 + $0x118] sm:$0xff] %vm1685_vm5, %v1648_v8 }
 0x2d0   : > { %2370 = vst.msk [vmem:[#allocation3 + $0x108] sm:$0xff] %vm2336_vm8, %v2295_v4  ;;  %v2684_v4 = vmax.f32 %v2534_v42, 0.0 }
 0x2d2   : > { %v1865_v10 = vpop.permute.xlu1 %1864 }
 0x2d3   : > { %v1863_v9 = vpop.permute.xlu0 %1862  ;;  %1938 = vst.msk [vmem:[#allocation3 + $0x118] sm:$0xff] %vm1902_vm6, %v1865_v10 }
 0x2d4   : > { %1937 = vst.msk [vmem:[#allocation3 + $0x110] sm:$0xff] %vm1902_vm6, %v1863_v9  ;;  %v2685_v9 = vmax.f32 %v2539_v59, 0.0  ;;  %v2594_v59 = vadd.f32 %v5037_v62, %v5054_v19 }
 0x2d6   : > { %v2082_v13 = vpop.permute.xlu1 %2081 }
 0x2d7   : > { %v2080_v11 = vpop.permute.xlu0 %2079  ;;  %v2406_v12 = vld [vmem:[#allocation3 + $0x108] sm:$0xff]  ;;  %2155 = vst.msk [vmem:[#allocation3 + $0x118] sm:$0xff] %vm2119_vm7, %v2082_v13 }
 0x2d8   : > { %2154 = vst.msk [vmem:[#allocation3 + $0x110] sm:$0xff] %vm2119_vm7, %v2080_v11  ;;  %3597 = vmatmul.mubr.f32.gmra.mrb[32].mxu0 %v2406_v12 }
 0x2da   : > { %v2299_v17 = vpop.permute.xlu1 %2298 }
 0x2db   : > { %v2297_v14 = vpop.permute.xlu0 %2296  ;;  %2372 = vst.msk [vmem:[#allocation3 + $0x118] sm:$0xff] %vm2336_vm8, %v2299_v17 }
 0x2dc   : > { %2371 = vst.msk [vmem:[#allocation3 + $0x110] sm:$0xff] %vm2336_vm8, %v2297_v14  ;;  %v2686_v14 = vmax.f32 %v2544_v16, 0.0 }
 0x2e2   : > { %v2408_v20 = vld [vmem:[#allocation3 + $0x118] sm:$0xff] }
 0x2e3   : > { %v2407_v18 = vld [vmem:[#allocation3 + $0x110] sm:$0xff] }
 0x2e4   : > { %3599 = vmatprep.mubr.f32.mxu0 %v2407_v18 }
 0x2e5   : > { %3600 = vmatmul.mubr.f32.gmra.mrb[34].mxu0 %v2408_v20  ;;  %v2687_v20 = vmax.f32 %v2549_v15, 0.0 }
 0x2ea   : > { %v5062_v26 = vpop.f32.mrb[20].mxu0 }
 0x2eb   : > { %v2758_v31 = vpop.permute.xlu1 %2757  ;;  %v5066_v38 = vpop.f32.mrb[21].mxu0 }
 0x2ec   : > { %v2753_v32 = vpop.permute.xlu0 %2752  ;;  %v2931_v34 = vmul.f32 %v2758_v31, %v2678_v23  ;;  %v2599_v35 = vadd.f32 %v5054_v19, %v5066_v38 }
 0x2ed   : > { %v2930_v37 = vmul.f32 %v2753_v32, %v2677_v24 }
 0x2ef   : > { %v2966_v39 = vadd.f32 %v2931_v34, %v2930_v37  ;;  %v2763_v40 = vpop.permute.xlu1 %2762 }
 0x2f0   : > { %v2768_v43 = vpop.permute.xlu0 %2767  ;;  %v2932_v45 = vmul.f32 %v2763_v40, %v2679_v28 }
 0x2f1   : > { %v2933_v48 = vmul.f32 %v2768_v43, %v2680_v44  ;;  %v2691_v44 = vmax.f32 %v2569_v27, 0.0 }
 0x2f2   : > { %v2967_v47 = vadd.f32 %v2966_v39, %v2932_v45  ;;  %v2690_v39 = vmax.f32 %v2564_v30, 0.0 }
 0x2f3   : > { %v2773_v49 = vpop.permute.xlu1 %2772 }
 0x2f4   : > { %v2778_v52 = vpop.permute.xlu0 %2777  ;;  %v2968_v56 = vadd.f32 %v2967_v47, %v2933_v48  ;;  %v2934_v57 = vmul.f32 %v2773_v49, %v2681_v46  ;;  %v2692_v47 = vmax.f32 %v2574_v7, 0.0 }
 0x2f5   : > { %v2935_v60 = vmul.f32 %v2778_v52, %v2682_v55  ;;  %v2693_v52 = vmax.f32 %v2579_v6, 0.0 }
 0x2f6   : > { %v2969_v41 = vadd.f32 %v2968_v56, %v2934_v57 }
 0x2f7   : > { %v2783_v61 = vpop.permute.xlu1 %2782 }
 0x2f8   : > { %v2788_v63 = vpop.permute.xlu0 %2787  ;;  %v2970_v5 = vadd.f32 %v2969_v41, %v2935_v60  ;;  %v2936_v8 = vmul.f32 %v2783_v61, %v2683_v58 }
 0x2f9   : > { %v2937_v11 = vmul.f32 %v2788_v63, %v2684_v4  ;;  %v2695_v63 = vmax.f32 %v2589_v50, 0.0  ;;  %v3019_v50 = vld [vmem:[%s5274_s5 + $0x28] sm:$0xff] }
 0x2fa   : > { %v2971_v10 = vadd.f32 %v2970_v5, %v2936_v8  ;;  %v2696_v8 = vmax.f32 %v2594_v59, 0.0  ;;  %v3023_v59 = vld [vmem:[%s5274_s5 + $0x48] sm:$0xff] }
 0x2fb   : > { %v2793_v12 = vpop.permute.xlu1 %2792 }
 0x2fc   : > { %v2798_v13 = vpop.permute.xlu0 %2797  ;;  %v2972_v17 = vadd.f32 %v2971_v10, %v2937_v11  ;;  %v2938_v18 = vmul.f32 %v2793_v12, %v2685_v9  ;;  %v2604_v9 = vadd.f32 %v5062_v26, %v5054_v19  ;;  %v2697_v11 = vmax.f32 %v2599_v35, 0.0 }
 0x2fd   : > { %v2939_v22 = vmul.f32 %v2798_v13, %v2686_v14 }
 0x2fe   : > { %v2973_v21 = vadd.f32 %v2972_v17, %v2938_v18  ;;  %v2698_v17 = vmax.f32 %v2604_v9, 0.0 }
 0x2ff   : > { %v2803_v23 = vpop.permute.xlu1 %2802 }
 0x300   : > { %v2808_v24 = vpop.permute.xlu0 %2807  ;;  %v2974_v31 = vadd.f32 %v2973_v21, %v2939_v22  ;;  %v2940_v32 = vmul.f32 %v2803_v23, %v2687_v20 }
 0x301   : > { %v2941_v37 = vmul.f32 %v2808_v24, %v2688_v25 }
 0x302   : > { %v2975_v34 = vadd.f32 %v2974_v31, %v2940_v32 }
 0x303   : > { %v2813_v28 = vpop.permute.xlu1 %2812 }
 0x304   : > { %v2818_v29 = vpop.permute.xlu0 %2817  ;;  %v2976_v40 = vadd.f32 %v2975_v34, %v2941_v37  ;;  %v2942_v43 = vmul.f32 %v2813_v28, %v2689_v33 }
 0x305   : > { %v2943_v45 = vmul.f32 %v2818_v29, %v2690_v39 }
 0x306   : > { %v2977_v3 = vadd.f32 %v2976_v40, %v2942_v43 }
 0x307   : > { %v2823_v46 = vpop.permute.xlu1 %2822 }
 0x308   : > { %v2828_v2 = vpop.permute.xlu0 %2827  ;;  %v2978_v48 = vadd.f32 %v2977_v3, %v2943_v45  ;;  %v2944_v49 = vmul.f32 %v2823_v46, %v2691_v44  ;;  %v3014_v45 = vld [vmem:[%s5274_s5] sm:$0xff]  ;;  %v3015_v46 = vld [vmem:[%s5274_s5 + $0x8] sm:$0xff] }
 0x309   : > { %v2945_v42 = vmul.f32 %v2828_v2, %v2692_v47  ;;  %v3705_v2 = vpack.c.bf16 %v3015_v46, %v3014_v45  ;;  %v3912_v47 = vmov 0.0|0.0  }
 0x30a   : > { %v2979_v55 = vadd.f32 %v2978_v48, %v2944_v49  ;;  %v3583_v56 = vpop.f32.mrb[22].mxu0  ;;  %3704 = vmatprep.subr.bf16.mxu1 %v3912_v47  ;;  %v3017_v48 = vld [vmem:[%s5274_s5 + $0x18] sm:$0xff] }
 0x30b   : > { %v2833_v57 = vpop.permute.xlu1 %2832  ;;  %v2608_v61 = vpop.f32.mrb[23].mxu0  ;;  %v2614_v38 = vadd.f32 %v3583_v56, %v5054_v19  ;;  %3706 = vmatpush3.bf16.msra.mxu1 %v3705_v2  ;;  %v3708_v49 = vpack.c.bf16 %v3017_v48, %v3016_v51  ;;  %v3021_v56 = vld [vmem:[%s5274_s5 + $0x38] sm:$0xff] }
 0x30c   : > { %v2838_v58 = vpop.permute.xlu0 %2837  ;;  %v2980_v41 = vadd.f32 %v2979_v55, %v2945_v42  ;;  %v2946_v60 = vmul.f32 %v2833_v57, %v2693_v52  ;;  %v2609_v62 = vadd.f32 %v5054_v19, %v2608_v61  ;;  %3707 = vmatprep.subr.bf16.mxu1 %v3912_v47  ;;  %v3018_v52 = vld [vmem:[%s5274_s5 + $0x20] sm:$0xff]  ;;  %v3020_v42 = vld [vmem:[%s5274_s5 + $0x30] sm:$0xff] }
 0x30d   : > { %v2947_v16 = vmul.f32 %v2838_v58, %v2694_v36  ;;  %v2700_v26 = vmax.f32 %v2614_v38, 0.0  ;;  %v3711_v55 = vpack.c.bf16 %v3019_v50, %v3018_v52  ;;  %v3714_v57 = vpack.c.bf16 %v3021_v56, %v3020_v42  ;;  %v3022_v36 = vld [vmem:[%s5274_s5 + $0x40] sm:$0xff] }
 0x30e   : > { %v2981_v4 = vadd.f32 %v2980_v41, %v2946_v60  ;;  %v2699_v53 = vmax.f32 %v2609_v62, 0.0  ;;  %v3717_v61 = vpack.c.bf16 %v3023_v59, %v3022_v36 }
 0x30f   : > { %v2843_v5 = vpop.permute.xlu1 %2842  ;;  %3709 = vmatpush3.bf16.msra.mxu1 %v3708_v49 }
 0x310   : > { %v2848_v1 = vpop.permute.xlu0 %2847  ;;  %v2982_v15 = vadd.f32 %v2981_v4, %v2947_v16  ;;  %v2948_v10 = vmul.f32 %v2843_v5, %v2695_v63  ;;  %3710 = vmatprep.subr.bf16.mxu1 %v3912_v47  ;;  %v3024_v5 = vld [vmem:[%s5274_s5 + $0x50] sm:$0xff] }
 0x311   : > { %v2949_v13 = vmul.f32 %v2848_v1, %v2696_v8  ;;  %v3025_v1 = vld [vmem:[%s5274_s5 + $0x58] sm:$0xff] }
 0x312   : > { %v2983_v12 = vadd.f32 %v2982_v15, %v2948_v10  ;;  %v3720_v9 = vpack.c.bf16 %v3025_v1, %v3024_v5  ;;  %v3026_v10 = vld [vmem:[%s5274_s5 + $0x60] sm:$0xff] }
 0x313   : > { %v2853_v14 = vpop.permute.xlu1 %2852  ;;  %3712 = vmatpush3.bf16.msra.mxu1 %v3711_v55 }
 0x314   : > { %v2858_v54 = vpop.permute.xlu0 %2857  ;;  %v2984_v18 = vadd.f32 %v2983_v12, %v2949_v13  ;;  %v2950_v20 = vmul.f32 %v2853_v14, %v2697_v11  ;;  %3713 = vmatprep.subr.bf16.mxu1 %v3912_v47  ;;  %v3027_v11 = vld [vmem:[%s5274_s5 + $0x68] sm:$0xff]  ;;  %v3028_v14 = vld [vmem:[%s5274_s5 + $0x70] sm:$0xff] }
 0x315   : > { %v2951_v22 = vmul.f32 %v2858_v54, %v2698_v17  ;;  %v3723_v13 = vpack.c.bf16 %v3027_v11, %v3026_v10  ;;  %v3029_v54 = vld [vmem:[%s5274_s5 + $0x78] sm:$0xff]  ;;  %v2713_v11 = vld [vmem:[#allocation4] sm:$0x1] }
 0x316   : > { %v2985_v21 = vadd.f32 %v2984_v18, %v2950_v20  ;;  %v3726_v38 = vpack.c.bf16 %v3029_v54, %v3028_v14 }
 0x317   : > { %v2863_v23 = vpop.permute.xlu1 %2862  ;;  %3715 = vmatpush3.bf16.msra.mxu1 %v3714_v57 }
 0x318   : > { %v2868_v24 = vpop.permute.xlu0 %2867  ;;  %v2986_v25 = vadd.f32 %v2985_v21, %v2951_v22  ;;  %v2952_v30 = vmul.f32 %v2863_v23, %v2699_v53  ;;  %3716 = vmatprep.subr.bf16.mxu1 %v3912_v47 }
 0x319   : > { %v2953_v32 = vmul.f32 %v2868_v24, %v2700_v26 }
 0x31a   : > { %v2987_v31 = vadd.f32 %v2986_v25, %v2952_v30 }
 0x31b   : > { %v2873_v29 = vpop.permute.xlu1 %2872  ;;  %3718 = vmatpush3.bf16.msra.mxu1 %v3717_v61 }
 0x31c   : > { %v2988_v33 = vadd.f32 %v2987_v31, %v2953_v32  ;;  %v2878_v40 = vpop.permute.xlu0 %2877  ;;  %3719 = vmatprep.subr.bf16.mxu1 %v3912_v47 }
 0x31f   : > { %v2883_v35 = vpop.permute.xlu1 %2882  ;;  %3721 = vmatpush3.bf16.msra.mxu1 %v3720_v9 }
 0x320   : > { %v2888_v8 = vpop.permute.xlu0 %2887  ;;  %3722 = vmatprep.subr.bf16.mxu1 %v3912_v47 }
 0x323   : > { %3724 = vmatpush3.bf16.msra.mxu1 %v3723_v13  ;;  %v2893_v24 = vpop.permute.xlu1 %2892  ;;  %v3103_v13 = vld [vmem:[%s5183_s21 + $0x8] sm:$0xff] }
 0x324   : > { %3725 = vmatprep.subr.bf16.mxu1 %v3912_v47  ;;  %v2898_v26 = vpop.permute.xlu0 %2897 }
 0x327   : > { %3727 = vmatpush3.bf16.msra.mxu1 %v3726_v38  ;;  %v3104_v38 = vld [vmem:[%s5183_s21 + $0x10] sm:$0xff] }
 0x328   : > { %3728 = vmatprep.subr.bf16.mxu1 %v3912_v47 }
 0x32a   : > { %v3586_v27 = vpop.f32.mrb[24].mxu0 }
 0x32b   : > { %v2624_v34 = vadd.f32 %v3586_v27, %v5054_v19  ;;  %v2618_v37 = vpop.f32.mrb[25].mxu0 }
 0x32c   : > { %v2619_v28 = vadd.f32 %v5054_v19, %v2618_v37 }
 0x32d   : > { %v2702_v39 = vmax.f32 %v2624_v34, 0.0 }
 0x32e   : > { %v2701_v7 = vmax.f32 %v2619_v28, 0.0 }
 0x32f   : > { %v2955_v6 = vmul.f32 %v2878_v40, %v2702_v39  ;;  %v2903_v39 = vpop.permute.xlu1 %2902  ;;  %v2908_v40 = vpop.permute.xlu0 %2907 }
 0x330   : > { %v2954_v43 = vmul.f32 %v2873_v29, %v2701_v7 }
 0x332   : > { %v2989_v44 = vadd.f32 %v2988_v33, %v2954_v43 }
 0x333   : > { %v2913_v49 = vpop.permute.xlu1 %2912  ;;  %v2918_v50 = vpop.permute.xlu0 %2917 }
 0x334   : > { %v2990_v3 = vadd.f32 %v2989_v44, %v2955_v6 }
 0x337   : > { %v2923_v61 = vpop.permute.xlu1 %2922 }
 0x34a   : > { %v3589_v58 = vpop.f32.mrb[26].mxu0 }
 0x34b   : > { %v2634_v41 = vadd.f32 %v3589_v58, %v5054_v19  ;;  %v2628_v60 = vpop.f32.mrb[27].mxu0 }
 0x34c   : > { %v2629_v63 = vadd.f32 %v5054_v19, %v2628_v60 }
 0x34d   : > { %v2704_v4 = vmax.f32 %v2634_v41, 0.0 }
 0x34e   : > { %v2703_v16 = vmax.f32 %v2629_v63, 0.0 }
 0x34f   : > { %v2957_v12 = vmul.f32 %v2888_v8, %v2704_v4 }
 0x350   : > { %v2956_v15 = vmul.f32 %v2883_v35, %v2703_v16  ;;  %v2928_v35 = vpop.permute.xlu0 %2927 }
 0x352   : > { %v2991_v62 = vadd.f32 %v2990_v3, %v2956_v15 }
 0x354   : > { %v2992_v17 = vadd.f32 %v2991_v62, %v2957_v12  ;;  %v3102_v12 = vld [vmem:[%s5183_s21] sm:$0xff] }
 0x355   : > { %v3729_v54 = vpack.c.bf16 %v3103_v13, %v3102_v12 }
 0x36a   : > { %v3592_v18 = vpop.f32.mrb[28].mxu0 }
 0x36b   : > { %v2644_v20 = vadd.f32 %v3592_v18, %v5054_v19  ;;  %v2638_v53 = vpop.f32.mrb[29].mxu0  ;;  %v3105_v18 = vld [vmem:[%s5183_s21 + $0x18] sm:$0xff] }
 0x36c   : > { %v2639_v21 = vadd.f32 %v5054_v19, %v2638_v53  ;;  %v3106_v53 = vld [vmem:[%s5183_s21 + $0x20] sm:$0xff] }
 0x36d   : > { %v2706_v22 = vmax.f32 %v2644_v20, 0.0  ;;  %v3732_v20 = vpack.c.bf16 %v3105_v18, %v3104_v38 }
 0x36e   : > { %v2705_v23 = vmax.f32 %v2639_v21, 0.0  ;;  %v3107_v21 = vld [vmem:[%s5183_s21 + $0x28] sm:$0xff] }
 0x36f   : > { %v2959_v31 = vmul.f32 %v2898_v26, %v2706_v22  ;;  %v3735_v22 = vpack.c.bf16 %v3107_v21, %v3106_v53 }
 0x370   : > { %v2958_v25 = vmul.f32 %v2893_v24, %v2705_v23  ;;  %v3108_v23 = vld [vmem:[%s5183_s21 + $0x30] sm:$0xff]  ;;  %v3109_v24 = vld [vmem:[%s5183_s21 + $0x38] sm:$0xff] }
 0x371   : > { %v3738_v26 = vpack.c.bf16 %v3109_v24, %v3108_v23 }
 0x372   : > { %v2993_v30 = vadd.f32 %v2992_v17, %v2958_v25  ;;  %v3110_v25 = vld [vmem:[%s5183_s21 + $0x40] sm:$0xff] }
 0x374   : > { %v2994_v32 = vadd.f32 %v2993_v30, %v2959_v31  ;;  %v3112_v31 = vld [vmem:[%s5183_s21 + $0x50] sm:$0xff] }
 0x38a   : > { %v3595_v33 = vpop.f32.mrb[30].mxu0 }
 0x38b   : > { %v2654_v27 = vadd.f32 %v3595_v33, %v5054_v19  ;;  %v2648_v34 = vpop.f32.mrb[31].mxu0 }
 0x38c   : > { %v2649_v37 = vadd.f32 %v5054_v19, %v2648_v34  ;;  %v3115_v34 = vld [vmem:[%s5183_s21 + $0x68] sm:$0xff] }
 0x38d   : > { %v2708_v28 = vmax.f32 %v2654_v27, 0.0  ;;  %v3114_v27 = vld [vmem:[%s5183_s21 + $0x60] sm:$0xff] }
 0x38e   : > { %v2707_v29 = vmax.f32 %v2649_v37, 0.0  ;;  %v3747_v37 = vpack.c.bf16 %v3115_v34, %v3114_v27 }
 0x38f   : > { %v2961_v43 = vmul.f32 %v2908_v40, %v2708_v28  ;;  %v3116_v28 = vld [vmem:[%s5183_s21 + $0x70] sm:$0xff] }
 0x390   : > { %v2960_v7 = vmul.f32 %v2903_v39, %v2707_v29  ;;  %v3117_v29 = vld [vmem:[%s5183_s21 + $0x78] sm:$0xff] }
 0x391   : > { %v3750_v39 = vpack.c.bf16 %v3117_v29, %v3116_v28 }
 0x392   : > { %v2995_v44 = vadd.f32 %v2994_v32, %v2960_v7  ;;  %v3113_v32 = vld [vmem:[%s5183_s21 + $0x58] sm:$0xff]  ;;  %v3030_v7 = vld [vmem:[%s5275_s6] sm:$0x1] }
 0x393   : > { %v3744_v33 = vpack.c.bf16 %v3113_v32, %v3112_v31 }
 0x394   : > { %v2996_v6 = vadd.f32 %v2995_v44, %v2961_v43 }
 0x3ab   : > { %v3598_v3 = vpop.f32.mrb[32].mxu0 }
 0x3ac   : > { %v2664_v45 = vadd.f32 %v3598_v3, %v5054_v19  ;;  %v2658_v46 = vpop.f32.mrb[33].mxu0 }
 0x3ad   : > { %v2659_v2 = vadd.f32 %v5054_v19, %v2658_v46 }
 0x3ae   : > { %v2710_v51 = vmax.f32 %v2664_v45, 0.0 }
 0x3af   : > { %v2709_v48 = vmax.f32 %v2659_v2, 0.0 }
 0x3b0   : > { %v2963_v55 = vmul.f32 %v2918_v50, %v2710_v51 }
 0x3b1   : > { %v2962_v52 = vmul.f32 %v2913_v49, %v2709_v48 }
 0x3b3   : > { %v2997_v42 = vadd.f32 %v2996_v6, %v2962_v52 }
 0x3b5   : > { %v2998_v56 = vadd.f32 %v2997_v42, %v2963_v55 }
 0x3b8   : > { %v3601_v57 = vpop.f32.mrb[34].mxu0 }
 0x3b9   : > { %v2674_v58 = vadd.f32 %v3601_v57, %v5054_v19  ;;  %v2668_v36 = vpop.f32.mrb[35].mxu0 }
 0x3ba   : > { %v2669_v59 = vadd.f32 %v5054_v19, %v2668_v36 }
 0x3bb   : > { %v2712_v41 = vmax.f32 %v2674_v58, 0.0 }
 0x3bc   : > { %v2711_v60 = vmax.f32 %v2669_v59, 0.0 }
 0x3bd   : > { %v2965_v4 = vmul.f32 %v2928_v35, %v2712_v41 }
 0x3be   : > { %v2964_v63 = vmul.f32 %v2923_v61, %v2711_v60 }
 0x3c0   : > { %v2999_v16 = vadd.f32 %v2998_v56, %v2964_v63 }
 0x3c2   : > { %v3000_v5 = vadd.f32 %v2999_v16, %v2965_v4 }
 0x3c4   : > { %v3001_v1 = vrot.slane %v3000_v5, 4 }
 0x3c6   : > { %v3002_v8 = vadd.f32 %v3001_v1, %v3000_v5 }
 0x3c8   : > { %v3003_v9 = vrot.slane %v3002_v8, 2 }
 0x3ca   : > { %v3004_v15 = vadd.f32 %v3003_v9, %v3002_v8 }
 0x3cc   : > { %v3005_v10 = vrot.slane %v3004_v15, 1 }
 0x3ce   : > { %v3006_v19 = vadd.f32 %v3005_v10, %v3004_v15 }
 0x3d0   : > { %v3007_v62 = vadd.f32 %v3006_v19, %v2713_v11 }
 0x3d2   : > { %3008 = vst [vmem:[#allocation4] sm:$0x1] %v3007_v62 }
 0x3d9   : > { %v3012_v14 = vld [vmem:[#allocation4] sm:$0x1] }
 0x3da   : > { %v3013_v17 = vmul.f32 0.00390625, %v3012_v14 }
 0x3dc   : > { %3635 = vmatmul.mubr.f32.vlgmr.msra.gmra.mrb[0].mxu1 %v3013_v17 }
 0x3dd   : > { %3730 = vmatpush3.bf16.msra.mxu1 %v3729_v54  ;;  %3669 = vmatprep.mubr.msk.f32.mxu1 %vm3913_vm10, %v3902_v0  ;;  %v3111_v0 = vld [vmem:[%s5183_s21 + $0x48] sm:$0xff] }
 0x3de   : > { %3731 = vmatprep.subr.bf16.mxu1 %v3912_v47  ;;  %v3741_v30 = vpack.c.bf16 %v3111_v0, %v3110_v25 }
 0x3e1   : > { %3733 = vmatpush3.bf16.msra.mxu1 %v3732_v20 }
 0x3e2   : > { %3734 = vmatprep.subr.bf16.mxu1 %v3912_v47 }
 0x3e5   : > { %3736 = vmatpush3.bf16.msra.mxu1 %v3735_v22 }
 0x3e6   : > { %3737 = vmatprep.subr.bf16.mxu1 %v3912_v47 }
 0x3e9   : > { %3739 = vmatpush3.bf16.msra.mxu1 %v3738_v26 }
 0x3ea   : > { %3740 = vmatprep.subr.bf16.mxu1 %v3912_v47 }
 0x3ed   : > { %3742 = vmatpush3.bf16.msra.mxu1 %v3741_v30 }
 0x3ee   : > { %3743 = vmatprep.subr.bf16.mxu1 %v3912_v47 }
 0x3f1   : > { %3745 = vmatpush3.bf16.msra.mxu1 %v3744_v33 }
 0x3f2   : > { %3746 = vmatprep.subr.bf16.mxu1 %v3912_v47 }
 0x3f5   : > { %3748 = vmatpush3.bf16.msra.mxu1 %v3747_v37 }
 0x3f6   : > { %3749 = vmatprep.subr.bf16.mxu1 %v3912_v47  ;;  %v3118_v47 = vld [vmem:[%s397_s0] sm:$0x1] }
 0x3f9   : > { %3751 = vmatpush3.bf16.msra.mxu1 %v3750_v39 }
 0x4af   : > { %v3097_v40 = vpop.f32.mrb[0].mxu1 }
 0x4b0   : > { %v3098_v43 = vadd.f32 %v3097_v40, %v3030_v7  ;;  %v3636_v44 = vpop.f32.mrb[1].mxu1 }
 0x4b2   : > { %v3101_v6 = vmax.f32 %v3098_v43, 0.0 }
 0x4b4   : > { %3670 = vmatmul.mubr.f32.vlgmr.msra.gmra.mrb[2].mxu1 %v3101_v6 }
 0x587   : > { %v3185_v3 = vpop.f32.mrb[2].mxu1 }
 0x588   : > { %v3186_v45 = vadd.f32 %v3185_v3, %v3118_v47  ;;  %v3671_v46 = vpop.f32.mrb[3].mxu1 }
 0x58a   : > { %3189 = vst [vmem:[%s372_s19] sm:$0x1] %v3186_v45 }
 0x58b   : > { %3835 = shalt.err (!%p3832_p6)
}
 0x58c   : > { %s3836_s24 = scalar_lea.hbm %s5222_s10, 16  ;;  %s3840_s19 = scalar_lea.hbm %s5278_s9, 32 }
 0x58d   : > { %p3837_p7 = scmp.ne.s32.totalorder %s5222_s10, %s3836_s24  ;;  %p3841_p11 = scmp.lt.u32.totalorder %s5222_s10, %s5278_s9 }
 0x58e   : > { %p3842_p12 = scmp.lt.u32.totalorder %s3840_s19, %s3836_s24  ;;  %p3844_p0 = scmp.lt.u32.totalorder %s3836_s24, %s5222_s10 }
 0x58f   : > { %p3838_p9 = pnand %p3837_p7, %p4008_p4 }
 0x590   : > { %p3843_p13 = por %p3842_p12, %p3841_p11 }
 0x591   : > { %p3839_p10 = pneg %p3838_p9 }
 0x592   : > { %p3845_p1 = por %p3844_p0, %p3843_p13 }
 0x594   : > { %p3846_p2 = pnand %p3845_p1, %p3839_p10 }
 0x596   : > { %3849 = shalt.err (!%p3846_p2)
}
 0x597   : > { %3753 = dma.vmem_to_hbm [thread:$0]  (%p4008_p4), %s5224_s28, 16, %s5222_s10, %s3191_s27  }
 0x598 PF: > { %p3759_p3 = scmp.ge.s32.totalorder %s3900_s16, 2  ;;  %s3215_s29 = sand.u32 1, %s3880_s11  }
 0x599   : > { %s3216_s14 = scalar_lea.sflag [#allocation8], %s3215_s29 }
 0x59a   : > { %p3756_p5 = pnand %p3759_p3, %p4015_p8 }
 0x59c   : > { %3875 = dma.done.wait (!%p3756_p5), %s3216_s14, 16  }
 0x59d   : > { %3877 = vsyncadd (!%p3756_p5), %s3216_s14, 4294967280  ;;  %s23_s16 = sadd.s32 1, %s3900_s16   ;;  %s5296_s11 = smov %s3884_s12 }
 0x59e   : > { %p20_p6 = scmp.ge.s32.totalorder %s23_s16, 4   ;;  %s5297_s12 = smov %s3888_s13 }
 0x59f   : > { %s5298_s13 = smov %s4021_s23  ;;  %s5299_s14 = smov %s3896_s15 }
 0x5a0   : > { %s5300_s15 = smov %s5302_s18  ;;  %22 = sbr.rel (!%p20_p6) target bundleno = 6 (0x6), region = 104 }
 0x5a7   :  { %3220 = vsyncpa [#allocation8], 1 }
 0x5a8   :  { %3222 = vsyncpa [#allocation8 + $0x1], 1 }

</bundles_post_ra>
